<compile_context>
chip_gen: v5e
topology: v5e:2x2
jax: 0.10.0
libtpu: 0.0.40
codegen_flags: <defaults>
</compile_context>

<pallas_src>
import jax
import jax.numpy as jnp
from jax.experimental import pallas as pl
from jax.experimental.pallas import tpu as pltpu

MIN_POOL_HALF = (1, 2, 3, 4)      # kernel sizes 3, 5, 7, 9
MAX_POOL_HALF = (5, 6)            # kernel sizes 11, 13
POOL_PAD = 6                      # max pooling half-window
CONV_HALO = 2                     # pooled rows kept on each side for the 3x3 conv
ROW_HALO = POOL_PAD + CONV_HALO   # = 8 depth rows of halo on each side of a tile
NEG_SENTINEL = 999.0              # matches the PyTorch module's -999/999 trick
LEAKY_SLOPE = 0.2
SLAB_DTYPE = jnp.bfloat16         # set to jnp.float32 for bit-faithful intermediates


def _leaky(x):
    return jnp.where(x > 0, x, LEAKY_SLOPE * x)


# ---------------------------------------------------------------------------
# Kernel A: pooling pyramid (+ depth pass-through) for one (batch, H-tile).
# Input strip is the depth tile with an 8-row / 6-col halo, -inf outside the
# image (PyTorch MaxPool2d padding semantics).  Out-of-image slab rows are
# zeroed before the store so nothing non-finite ever reaches HBM / kernel B.
# ---------------------------------------------------------------------------
def _make_pool_kernel(W, R_c, TILE_H, H):
    CP = POOL_PAD                 # column offset of the image inside the strip
    RO = ROW_HALO - CONV_HALO     # row offset of slab row 0 inside the strip (= 6)

    def sliding_vmax(h, p):
        # sliding max over 2p+1 rows, built with log-step doubling (vs 2p maxima)
        L = 2 * p + 1
        acc, span = h, 1
        while span * 2 <= L:
            n = acc.shape[0] - span
            acc = jnp.maximum(acc[:n], acc[span:span + n])
            span *= 2
        rem = L - span
        if rem:
            n = acc.shape[0] - rem
            acc = jnp.maximum(acc[:n], acc[rem:rem + n])
        s = RO - p
        return acc[s:s + R_c]

    def pool_kernel(strip_ref, slab_ref):
        x = strip_ref[0, 0]                                   # (TILE_H+16, W+12) f32

        # validity of each slab row (false on the 2 conv-halo rows that fall
        # outside the image for boundary tiles) -> zero them in the slab.
        t = pl.program_id(1)
        row = jax.lax.broadcasted_iota(jnp.int32, (R_c, W), 0)
        grow = row + (t * TILE_H - CONV_HALO)
        valid = (grow >= 0) & (grow < H)

        def hmax_incr(src, pmax):
            # incremental horizontal sliding maxima for half-widths 1..pmax
            res = {}
            h = jnp.maximum(jnp.maximum(src[:, CP - 1:CP - 1 + W],
                                        src[:, CP:CP + W]),
                            src[:, CP + 1:CP + 1 + W])
            res[1] = h
            for p in range(2, pmax + 1):
                h = jnp.maximum(h, jnp.maximum(src[:, CP - p:CP - p + W],
                                               src[:, CP + p:CP + p + W]))
                res[p] = h
            return res

        # --- min pools (3,5,7,9) over non-zero depth: negate + sentinel ------
        msrc = jnp.where(x == 0.0, -NEG_SENTINEL, -x)
        msrc = jnp.where(x == -jnp.inf, -jnp.inf, msrc)       # halo stays -inf
        hm = hmax_incr(msrc, max(MIN_POOL_HALF))
        for k, p in enumerate(MIN_POOL_HALF):
            z = -sliding_vmax(hm[p], p)
            z = jnp.where(z == NEG_SENTINEL, 0.0, z)          # same test as the torch spec
            slab_ref[0, 0, k] = jnp.where(valid, z, 0.0).astype(slab_ref.dtype)

        # --- max pools (11, 13) on raw depth ---------------------------------
        hx = hmax_incr(x, max(MAX_POOL_HALF))
        for k, p in enumerate(MAX_POOL_HALF):
            z = sliding_vmax(hx[p], p)
            slab_ref[0, 0, len(MIN_POOL_HALF) + k] = (
                jnp.where(valid, z, 0.0).astype(slab_ref.dtype))

        # --- depth pass-through (channel 6) ----------------------------------
        dslice = x[RO:RO + R_c, CP:CP + W]
        slab_ref[0, 0, 6] = jnp.where(valid, dslice, 0.0).astype(slab_ref.dtype)

    return pool_kernel


# ---------------------------------------------------------------------------
# Kernel B: fused 1x1 convs (6->8->16) + 3x3 conv (17->32) on the MXU with
# channels on sublanes and pixels on lanes.  Depth is folded into the 17-row
# matmul operand; Conv2d zero padding is applied with three mask multiplies
# (row-validity and the two column-boundary variants); the 9 tap matmuls form
# a clean accumulation chain with no interleaved VPU work.
# ---------------------------------------------------------------------------
def _make_mlp_conv_kernel(W, TILE_N):
    def kernel(slab_ref, mask_ref, w1_ref, b1_ref, w2_ref, b2_ref,
               w3_ref, b3_ref, out_ref):
        slab = slab_ref[0, 0].astype(jnp.float32)            # (7, P')
        pyr = slab[0:6, :]
        depc = slab[6:7, :]

        h8 = _leaky(jnp.dot(w1_ref[...], pyr,
                            preferred_element_type=jnp.float32) + b1_ref[...])
        h16 = _leaky(jnp.dot(w2_ref[...], h8,
                             preferred_element_type=jnp.float32) + b2_ref[...])

        feat = jnp.concatenate([h16, depc], axis=0)          # (17, P')

        m = mask_ref[0].astype(jnp.float32)                  # (3, P') {0,1}
        f_l = feat * m[0:1]      # row-valid & source-col != W-1  (j = 0 taps)
        f_m = feat * m[1:2]      # row-valid                       (j = 1 taps)
        f_r = feat * m[2:3]      # row-valid & source-col != 0     (j = 2 taps)

        acc = None
        for i in range(3):                                   # tap row offset i-1
            base = (i + 1) * W
            for j, f in enumerate((f_l, f_m, f_r)):          # tap col offset j-1
                start = base + (j - 1)
                tap = f[:, start:start + TILE_N]
                d = jnp.dot(w3_ref[3 * i + j], tap,
                            preferred_element_type=jnp.float32)
                acc = d if acc is None else acc + d
        out_ref[0] = _leaky(acc + b3_ref[...])

    return kernel


# ---------------------------------------------------------------------------
# Wrapper helpers
# ---------------------------------------------------------------------------
def _vmem_budget():
    """(max pixels per tile, vmem_limit_bytes), derived per TPU generation."""
    try:
        cap = int(pltpu.get_tpu_info().vmem_capacity_bytes)
    except Exception:
        cap = 64 * 1024 * 1024
    if cap >= 100 * 1024 * 1024:          # v5e / v6e: 128 MiB physical VMEM
        return 65536, 96 * 1024 * 1024
    return 32768, 48 * 1024 * 1024        # v7x: 64 MiB physical VMEM


def _choose_tile_h(H, W, B, max_pixels):
    """Largest TILE_H dividing H with TILE_H*W a multiple of 128 (or the full
    image) that fits the VMEM pixel budget; force >=2 grid steps for v7x."""
    def ok(th):
        if H % th != 0:
            return False
        return th == H or (th * W) % 128 == 0

    tile_h = None
    upper = min(H, max(1, max_pixels // max(W, 1)))
    for th in range(upper, 1, -1):
        if ok(th):
            tile_h = th
            break
    if tile_h is None:
        tile_h = H                        # full-dim block is always legal
        # TODO(synk): pad H/W so a budget-respecting tile exists for awkward shapes.
    if B * (H // tile_h) < 2:             # keep both v7x TensorCores busy
        for th in range(H // 2, 1, -1):
            if H % th == 0 and (th * W) % 128 == 0 and th * W <= max_pixels:
                tile_h = th
                break
        # TODO(synk): pad H (or W) when no 128-lane-aligned split exists.
    return tile_h


def _make_conv_masks(H, W, TILE_H, n_tiles, R_c):
    """Precombined {0,1} masks, shape (n_tiles, 3, R_c*W) bf16:
    [row&not-last-col, row, row&not-first-col] in slab-pixel order."""
    r = jnp.arange(R_c, dtype=jnp.int32)
    t = jnp.arange(n_tiles, dtype=jnp.int32)
    grow = t[:, None] * TILE_H + r[None, :] - CONV_HALO          # (n_tiles, R_c)
    row_ok = ((grow >= 0) & (grow < H)).astype(jnp.float32)[:, :, None]
    col = jnp.arange(W, dtype=jnp.int32)
    not_last = (col != W - 1).astype(jnp.float32)[None, None, :]
    not_first = (col != 0).astype(jnp.float32)[None, None, :]
    m_l = row_ok * not_last
    m_m = jnp.broadcast_to(row_ok, (n_tiles, R_c, W))
    m_r = row_ok * not_first
    m = jnp.stack([m_l, m_m, m_r], axis=1)                       # (n_tiles,3,R_c,W)
    return m.reshape(n_tiles, 3, R_c * W).astype(jnp.bfloat16)


def prepare_params(torch_params):
    """One-time re-layout of torch Conv2d weights into kernel layouts."""
    # torch conv weight (out, in, kh, kw) -> per-tap (kh*3+kw, out, in)
    w3 = jnp.transpose(torch_params["w3"], (2, 3, 0, 1)).reshape(9, 32, 17)
    return {
        "w1": torch_params["w1"].reshape(8, 6).astype(jnp.float32),
        "b1": torch_params["b1"].reshape(8, 1).astype(jnp.float32),
        "w2": torch_params["w2"].reshape(16, 8).astype(jnp.float32),
        "b2": torch_params["b2"].reshape(16, 1).astype(jnp.float32),
        "w3": w3.astype(jnp.float32),                    # depth folded in (K=17)
        "b3": torch_params["b3"].reshape(32, 1).astype(jnp.float32),
    }


def s2d_forward(dep_nchw, params):
    B, C, H, W = dep_nchw.shape
    assert C == 1
    N = H * W
    max_pixels, vmem_budget = _vmem_budget()
    TILE_H = _choose_tile_h(H, W, B, max_pixels)
    n_tiles = H // TILE_H
    TILE_N = TILE_H * W
    R_c = TILE_H + 2 * CONV_HALO          # pooled rows per slab (with conv halo)
    RS = TILE_H + 2 * ROW_HALO            # depth rows read per tile
    WS = W + 2 * POOL_PAD
    P_slab = R_c * W

    dep = dep_nchw[:, 0].astype(jnp.float32)

    # halo'd depth strips, -inf outside the image (only the 1-channel depth is
    # duplicated across tiles -- cheap).
    dpad = jnp.pad(dep, ((0, 0), (ROW_HALO, ROW_HALO), (POOL_PAD, POOL_PAD)),
                   constant_values=-jnp.inf)
    strips = jnp.stack(
        [dpad[:, t * TILE_H:t * TILE_H + RS, :] for t in range(n_tiles)], axis=1)

    # ---- kernel A: pooling pyramid + depth pass-through -> 7-channel slab ----
    slab = pl.pallas_call(
        _make_pool_kernel(W, R_c, TILE_H, H),
        out_shape=jax.ShapeDtypeStruct((B, n_tiles, 7, R_c, W), SLAB_DTYPE),
        grid_spec=pltpu.PrefetchScalarGridSpec(
            num_scalar_prefetch=0,
            grid=(B, n_tiles),
            in_specs=[pl.BlockSpec((1, 1, RS, WS), lambda b, t: (b, t, 0, 0))],
            out_specs=pl.BlockSpec((1, 1, 7, R_c, W),
                                   lambda b, t: (b, t, 0, 0, 0)),
        ),
        compiler_params=pltpu.CompilerParams(
            dimension_semantics=("parallel", "parallel"),
            vmem_limit_bytes=vmem_budget),
    )(strips)

    # free bitcast: the slab is reinterpreted as (channels, pixels); kernel B's
    # block DMA then performs the spatial -> pixel-major layout pivot for free.
    slab_flat = slab.reshape(B, n_tiles, 7, P_slab)

    masks = _make_conv_masks(H, W, TILE_H, n_tiles, R_c)

    # ---- kernel B: fused 1x1 convs + 3x3 conv, lane-dense NCHW output -------
    out_flat = pl.pallas_call(
        _make_mlp_conv_kernel(W, TILE_N),
        out_shape=jax.ShapeDtypeStruct((B, 32, N), jnp.float32),
        grid_spec=pltpu.PrefetchScalarGridSpec(
            num_scalar_prefetch=0,
            grid=(B, n_tiles),
            in_specs=[
                pl.BlockSpec((1, 1, 7, P_slab), lambda b, t: (b, t, 0, 0)),
                pl.BlockSpec((1, 3, P_slab), lambda b, t: (t, 0, 0)),
                pl.BlockSpec((8, 6), lambda b, t: (0, 0)),
                pl.BlockSpec((8, 1), lambda b, t: (0, 0)),
                pl.BlockSpec((16, 8), lambda b, t: (0, 0)),
                pl.BlockSpec((16, 1), lambda b, t: (0, 0)),
                pl.BlockSpec((9, 32, 17), lambda b, t: (0, 0, 0)),
                pl.BlockSpec((32, 1), lambda b, t: (0, 0)),
            ],
            out_specs=pl.BlockSpec((1, 32, TILE_N), lambda b, t: (b, 0, t)),
        ),
        compiler_params=pltpu.CompilerParams(
            dimension_semantics=("parallel", "parallel"),
            vmem_limit_bytes=vmem_budget),
    )(slab_flat, masks, params["w1"], params["b1"], params["w2"], params["b2"],
      params["w3"], params["b3"])

    # free reshape back to PyTorch NCHW
    return out_flat.reshape(B, 32, H, W)


def init_params(key):
    ks = jax.random.split(key, 6)
    return {
        # torch Conv2d weight layouts
        "w1": 0.1 * jax.random.normal(ks[0], (8, 6, 1, 1), jnp.float32),
        "b1": 0.01 * jax.random.normal(ks[1], (8,), jnp.float32),
        "w2": 0.1 * jax.random.normal(ks[2], (16, 8, 1, 1), jnp.float32),
        "b2": 0.01 * jax.random.normal(ks[3], (16,), jnp.float32),
        "w3": 0.1 * jax.random.normal(ks[4], (32, 17, 3, 3), jnp.float32),
        "b3": 0.01 * jax.random.normal(ks[5], (32,), jnp.float32),
    }


if __name__ == "__main__":
    key = jax.random.PRNGKey(0)
    k_dep, k_mask, k_par = jax.random.split(key, 3)

    B, H, W = 2, 16, 16
    depth_vals = jax.random.uniform(k_dep, (B, 1, H, W), jnp.float32,
                                    minval=0.5, maxval=10.0)
    keep = jax.random.bernoulli(k_mask, 0.3, (B, 1, H, W))   # sparse depth
    dep = jnp.where(keep, depth_vals, 0.0).astype(jnp.float32)

    params = prepare_params(init_params(k_par))   # weight re-layout hoisted out of jit

    out = jax.jit(s2d_forward)(dep, params)
    out = jax.block_until_ready(out)
    assert out.shape == (B, 32, H, W), out.shape
    assert out.dtype == jnp.float32
    assert bool(jnp.isfinite(out).all())
    print("KERNEL_OK")
</pallas_src>

<mosaic_0001>
module attributes {stable_mosaic.version = 11 : i64} {
  func.func @pool_kernel(%arg0: i32, %arg1: i32, %arg2: memref<1x1x32x28xf32, #tpu.memory_space<vmem>>, %arg3: memref<1x1x7x20x16xbf16, #tpu.memory_space<vmem>>) attributes {dimension_semantics = [#tpu.dimension_semantics<parallel>, #tpu.dimension_semantics<parallel>], iteration_bounds = array<i64: 2, 1>, scalar_prefetch = 0 : i64, scratch_operands = 0 : i64, tpu.core_type = #tpu.core_type<tc>, window_params = [{transform_indices = @transform_0, window_bounds = array<i64: 1, 1, 32, 28>}, {transform_indices = @transform_1, window_bounds = array<i64: 1, 1, 7, 20, 16>}]} {
    %c0 = arith.constant 0 : index
    %c0_0 = arith.constant 0 : index
    %c0_1 = arith.constant 0 : index
    %c0_2 = arith.constant 0 : index
    %0 = vector.load %arg2[%c0, %c0_0, %c0_1, %c0_2] : memref<1x1x32x28xf32, #tpu.memory_space<vmem>>, vector<1x1x32x28xf32>
    %1 = vector.shape_cast %0 : vector<1x1x32x28xf32> to vector<32x28xf32>
    %2 = tpu.iota {dimensions = array<i32: 0>} : vector<20x16xi32>
    %c16_i32 = arith.constant 16 : i32
    %3 = arith.muli %arg1, %c16_i32 : i32
    %c2_i32 = arith.constant 2 : i32
    %4 = arith.subi %3, %c2_i32 : i32
    %5 = vector.broadcast %4 : i32 to vector<20x16xi32>
    %6 = arith.addi %2, %5 : vector<20x16xi32>
    %c0_i32 = arith.constant 0 : i32
    %7 = vector.broadcast %c0_i32 : i32 to vector<20x16xi32>
    %8 = arith.cmpi sge, %6, %7 : vector<20x16xi32>
    %c16_i32_3 = arith.constant 16 : i32
    %9 = vector.broadcast %c16_i32_3 : i32 to vector<20x16xi32>
    %10 = arith.cmpi slt, %6, %9 : vector<20x16xi32>
    %11 = arith.andi %8, %10 : vector<20x16xi1>
    %cst = arith.constant 0.000000e+00 : f32
    %12 = vector.broadcast %cst : f32 to vector<32x28xf32>
    %13 = arith.cmpf oeq, %1, %12 : vector<32x28xf32>
    %cst_4 = arith.constant 0.000000e+00 : f32
    %14 = vector.broadcast %cst_4 : f32 to vector<32x28xf32>
    %15 = arith.subf %14, %1 : vector<32x28xf32>
    %cst_5 = arith.constant -9.990000e+02 : f32
    %16 = vector.broadcast %cst_5 : f32 to vector<32x28xf32>
    %17 = arith.select %13, %16, %15 : vector<32x28xi1>, vector<32x28xf32>
    %cst_6 = arith.constant 0xFF800000 : f32
    %18 = vector.broadcast %cst_6 : f32 to vector<32x28xf32>
    %19 = arith.cmpf oeq, %1, %18 : vector<32x28xf32>
    %cst_7 = arith.constant 0xFF800000 : f32
    %20 = vector.broadcast %cst_7 : f32 to vector<32x28xf32>
    %21 = arith.select %19, %20, %17 : vector<32x28xi1>, vector<32x28xf32>
    %22 = vector.extract_strided_slice %21 {offsets = [0, 5], sizes = [32, 16], strides = [1, 1]} : vector<32x28xf32> to vector<32x16xf32>
    %23 = vector.extract_strided_slice %21 {offsets = [0, 6], sizes = [32, 16], strides = [1, 1]} : vector<32x28xf32> to vector<32x16xf32>
    %24 = arith.maximumf %22, %23 : vector<32x16xf32>
    %25 = vector.extract_strided_slice %21 {offsets = [0, 7], sizes = [32, 16], strides = [1, 1]} : vector<32x28xf32> to vector<32x16xf32>
    %26 = arith.maximumf %24, %25 : vector<32x16xf32>
    %27 = vector.extract_strided_slice %21 {offsets = [0, 4], sizes = [32, 16], strides = [1, 1]} : vector<32x28xf32> to vector<32x16xf32>
    %28 = vector.extract_strided_slice %21 {offsets = [0, 8], sizes = [32, 16], strides = [1, 1]} : vector<32x28xf32> to vector<32x16xf32>
    %29 = arith.maximumf %27, %28 : vector<32x16xf32>
    %30 = arith.maximumf %26, %29 : vector<32x16xf32>
    %31 = vector.extract_strided_slice %21 {offsets = [0, 3], sizes = [32, 16], strides = [1, 1]} : vector<32x28xf32> to vector<32x16xf32>
    %32 = vector.extract_strided_slice %21 {offsets = [0, 9], sizes = [32, 16], strides = [1, 1]} : vector<32x28xf32> to vector<32x16xf32>
    %33 = arith.maximumf %31, %32 : vector<32x16xf32>
    %34 = arith.maximumf %30, %33 : vector<32x16xf32>
    %35 = vector.extract_strided_slice %21 {offsets = [0, 2], sizes = [32, 16], strides = [1, 1]} : vector<32x28xf32> to vector<32x16xf32>
    %36 = vector.extract_strided_slice %21 {offsets = [0, 10], sizes = [32, 16], strides = [1, 1]} : vector<32x28xf32> to vector<32x16xf32>
    %37 = arith.maximumf %35, %36 : vector<32x16xf32>
    %38 = arith.maximumf %34, %37 : vector<32x16xf32>
    %39 = vector.extract_strided_slice %26 {offsets = [0, 0], sizes = [31, 16], strides = [1, 1]} : vector<32x16xf32> to vector<31x16xf32>
    %40 = vector.extract_strided_slice %26 {offsets = [1, 0], sizes = [31, 16], strides = [1, 1]} : vector<32x16xf32> to vector<31x16xf32>
    %41 = arith.maximumf %39, %40 : vector<31x16xf32>
    %42 = vector.extract_strided_slice %41 {offsets = [0, 0], sizes = [30, 16], strides = [1, 1]} : vector<31x16xf32> to vector<30x16xf32>
    %43 = vector.extract_strided_slice %41 {offsets = [1, 0], sizes = [30, 16], strides = [1, 1]} : vector<31x16xf32> to vector<30x16xf32>
    %44 = arith.maximumf %42, %43 : vector<30x16xf32>
    %45 = vector.extract_strided_slice %44 {offsets = [5, 0], sizes = [20, 16], strides = [1, 1]} : vector<30x16xf32> to vector<20x16xf32>
    %cst_8 = arith.constant 0.000000e+00 : f32
    %46 = vector.broadcast %cst_8 : f32 to vector<20x16xf32>
    %47 = arith.subf %46, %45 : vector<20x16xf32>
    %cst_9 = arith.constant 9.990000e+02 : f32
    %48 = vector.broadcast %cst_9 : f32 to vector<20x16xf32>
    %49 = arith.cmpf oeq, %47, %48 : vector<20x16xf32>
    %cst_10 = arith.constant 0.000000e+00 : f32
    %50 = vector.broadcast %cst_10 : f32 to vector<20x16xf32>
    %51 = arith.select %49, %50, %47 : vector<20x16xi1>, vector<20x16xf32>
    %cst_11 = arith.constant 0.000000e+00 : f32
    %52 = vector.broadcast %cst_11 : f32 to vector<20x16xf32>
    %53 = arith.select %11, %51, %52 : vector<20x16xi1>, vector<20x16xf32>
    %54 = arith.truncf %53 : vector<20x16xf32> to vector<20x16xbf16>
    %c0_12 = arith.constant 0 : index
    %c0_13 = arith.constant 0 : index
    %c0_14 = arith.constant 0 : index
    %c0_15 = arith.constant 0 : index
    %c0_16 = arith.constant 0 : index
    %55 = vector.load %arg3[%c0_12, %c0_13, %c0_14, %c0_15, %c0_16] : memref<1x1x7x20x16xbf16, #tpu.memory_space<vmem>>, vector<1x1x1x20x16xbf16>
    %56 = vector.shape_cast %55 : vector<1x1x1x20x16xbf16> to vector<20x16xbf16>
    %57 = vector.shape_cast %54 : vector<20x16xbf16> to vector<1x1x1x20x16xbf16>
    tpu.vector_store %arg3[%c0_12, %c0_13, %c0_14, %c0_15, %c0_16], %57 {strides = array<i32>} : memref<1x1x7x20x16xbf16, #tpu.memory_space<vmem>>, vector<1x1x1x20x16xbf16>,
    %58 = vector.extract_strided_slice %30 {offsets = [0, 0], sizes = [31, 16], strides = [1, 1]} : vector<32x16xf32> to vector<31x16xf32>
    %59 = vector.extract_strided_slice %30 {offsets = [1, 0], sizes = [31, 16], strides = [1, 1]} : vector<32x16xf32> to vector<31x16xf32>
    %60 = arith.maximumf %58, %59 : vector<31x16xf32>
    %61 = vector.extract_strided_slice %60 {offsets = [0, 0], sizes = [29, 16], strides = [1, 1]} : vector<31x16xf32> to vector<29x16xf32>
    %62 = vector.extract_strided_slice %60 {offsets = [2, 0], sizes = [29, 16], strides = [1, 1]} : vector<31x16xf32> to vector<29x16xf32>
    %63 = arith.maximumf %61, %62 : vector<29x16xf32>
    %64 = vector.extract_strided_slice %63 {offsets = [0, 0], sizes = [28, 16], strides = [1, 1]} : vector<29x16xf32> to vector<28x16xf32>
    %65 = vector.extract_strided_slice %63 {offsets = [1, 0], sizes = [28, 16], strides = [1, 1]} : vector<29x16xf32> to vector<28x16xf32>
    %66 = arith.maximumf %64, %65 : vector<28x16xf32>
    %67 = vector.extract_strided_slice %66 {offsets = [4, 0], sizes = [20, 16], strides = [1, 1]} : vector<28x16xf32> to vector<20x16xf32>
    %cst_17 = arith.constant 0.000000e+00 : f32
    %68 = vector.broadcast %cst_17 : f32 to vector<20x16xf32>
    %69 = arith.subf %68, %67 : vector<20x16xf32>
    %cst_18 = arith.constant 9.990000e+02 : f32
    %70 = vector.broadcast %cst_18 : f32 to vector<20x16xf32>
    %71 = arith.cmpf oeq, %69, %70 : vector<20x16xf32>
    %cst_19 = arith.constant 0.000000e+00 : f32
    %72 = vector.broadcast %cst_19 : f32 to vector<20x16xf32>
    %73 = arith.select %71, %72, %69 : vector<20x16xi1>, vector<20x16xf32>
    %cst_20 = arith.constant 0.000000e+00 : f32
    %74 = vector.broadcast %cst_20 : f32 to vector<20x16xf32>
    %75 = arith.select %11, %73, %74 : vector<20x16xi1>, vector<20x16xf32>
    %76 = arith.truncf %75 : vector<20x16xf32> to vector<20x16xbf16>
    %c0_21 = arith.constant 0 : index
    %c0_22 = arith.constant 0 : index
    %c1 = arith.constant 1 : index
    %c0_23 = arith.constant 0 : index
    %c0_24 = arith.constant 0 : index
    %77 = vector.load %arg3[%c0_21, %c0_22, %c1, %c0_23, %c0_24] : memref<1x1x7x20x16xbf16, #tpu.memory_space<vmem>>, vector<1x1x1x20x16xbf16>
    %78 = vector.shape_cast %77 : vector<1x1x1x20x16xbf16> to vector<20x16xbf16>
    %79 = vector.shape_cast %76 : vector<20x16xbf16> to vector<1x1x1x20x16xbf16>
    tpu.vector_store %arg3[%c0_21, %c0_22, %c1, %c0_23, %c0_24], %79 {strides = array<i32>} : memref<1x1x7x20x16xbf16, #tpu.memory_space<vmem>>, vector<1x1x1x20x16xbf16>,
    %80 = vector.extract_strided_slice %34 {offsets = [0, 0], sizes = [31, 16], strides = [1, 1]} : vector<32x16xf32> to vector<31x16xf32>
    %81 = vector.extract_strided_slice %34 {offsets = [1, 0], sizes = [31, 16], strides = [1, 1]} : vector<32x16xf32> to vector<31x16xf32>
    %82 = arith.maximumf %80, %81 : vector<31x16xf32>
    %83 = vector.extract_strided_slice %82 {offsets = [0, 0], sizes = [29, 16], strides = [1, 1]} : vector<31x16xf32> to vector<29x16xf32>
    %84 = vector.extract_strided_slice %82 {offsets = [2, 0], sizes = [29, 16], strides = [1, 1]} : vector<31x16xf32> to vector<29x16xf32>
    %85 = arith.maximumf %83, %84 : vector<29x16xf32>
    %86 = vector.extract_strided_slice %85 {offsets = [0, 0], sizes = [26, 16], strides = [1, 1]} : vector<29x16xf32> to vector<26x16xf32>
    %87 = vector.extract_strided_slice %85 {offsets = [3, 0], sizes = [26, 16], strides = [1, 1]} : vector<29x16xf32> to vector<26x16xf32>
    %88 = arith.maximumf %86, %87 : vector<26x16xf32>
    %89 = vector.extract_strided_slice %88 {offsets = [3, 0], sizes = [20, 16], strides = [1, 1]} : vector<26x16xf32> to vector<20x16xf32>
    %cst_25 = arith.constant 0.000000e+00 : f32
    %90 = vector.broadcast %cst_25 : f32 to vector<20x16xf32>
    %91 = arith.subf %90, %89 : vector<20x16xf32>
    %cst_26 = arith.constant 9.990000e+02 : f32
    %92 = vector.broadcast %cst_26 : f32 to vector<20x16xf32>
    %93 = arith.cmpf oeq, %91, %92 : vector<20x16xf32>
    %cst_27 = arith.constant 0.000000e+00 : f32
    %94 = vector.broadcast %cst_27 : f32 to vector<20x16xf32>
    %95 = arith.select %93, %94, %91 : vector<20x16xi1>, vector<20x16xf32>
    %cst_28 = arith.constant 0.000000e+00 : f32
    %96 = vector.broadcast %cst_28 : f32 to vector<20x16xf32>
    %97 = arith.select %11, %95, %96 : vector<20x16xi1>, vector<20x16xf32>
    %98 = arith.truncf %97 : vector<20x16xf32> to vector<20x16xbf16>
    %c0_29 = arith.constant 0 : index
    %c0_30 = arith.constant 0 : index
    %c2 = arith.constant 2 : index
    %c0_31 = arith.constant 0 : index
    %c0_32 = arith.constant 0 : index
    %99 = vector.load %arg3[%c0_29, %c0_30, %c2, %c0_31, %c0_32] : memref<1x1x7x20x16xbf16, #tpu.memory_space<vmem>>, vector<1x1x1x20x16xbf16>
    %100 = vector.shape_cast %99 : vector<1x1x1x20x16xbf16> to vector<20x16xbf16>
    %101 = vector.shape_cast %98 : vector<20x16xbf16> to vector<1x1x1x20x16xbf16>
    tpu.vector_store %arg3[%c0_29, %c0_30, %c2, %c0_31, %c0_32], %101 {strides = array<i32>} : memref<1x1x7x20x16xbf16, #tpu.memory_space<vmem>>, vector<1x1x1x20x16xbf16>,
    %102 = vector.extract_strided_slice %38 {offsets = [0, 0], sizes = [31, 16], strides = [1, 1]} : vector<32x16xf32> to vector<31x16xf32>
    %103 = vector.extract_strided_slice %38 {offsets = [1, 0], sizes = [31, 16], strides = [1, 1]} : vector<32x16xf32> to vector<31x16xf32>
    %104 = arith.maximumf %102, %103 : vector<31x16xf32>
    %105 = vector.extract_strided_slice %104 {offsets = [0, 0], sizes = [29, 16], strides = [1, 1]} : vector<31x16xf32> to vector<29x16xf32>
    %106 = vector.extract_strided_slice %104 {offsets = [2, 0], sizes = [29, 16], strides = [1, 1]} : vector<31x16xf32> to vector<29x16xf32>
    %107 = arith.maximumf %105, %106 : vector<29x16xf32>
    %108 = vector.extract_strided_slice %107 {offsets = [0, 0], sizes = [25, 16], strides = [1, 1]} : vector<29x16xf32> to vector<25x16xf32>
    %109 = vector.extract_strided_slice %107 {offsets = [4, 0], sizes = [25, 16], strides = [1, 1]} : vector<29x16xf32> to vector<25x16xf32>
    %110 = arith.maximumf %108, %109 : vector<25x16xf32>
    %111 = vector.extract_strided_slice %110 {offsets = [0, 0], sizes = [24, 16], strides = [1, 1]} : vector<25x16xf32> to vector<24x16xf32>
    %112 = vector.extract_strided_slice %110 {offsets = [1, 0], sizes = [24, 16], strides = [1, 1]} : vector<25x16xf32> to vector<24x16xf32>
    %113 = arith.maximumf %111, %112 : vector<24x16xf32>
    %114 = vector.extract_strided_slice %113 {offsets = [2, 0], sizes = [20, 16], strides = [1, 1]} : vector<24x16xf32> to vector<20x16xf32>
    %cst_33 = arith.constant 0.000000e+00 : f32
    %115 = vector.broadcast %cst_33 : f32 to vector<20x16xf32>
    %116 = arith.subf %115, %114 : vector<20x16xf32>
    %cst_34 = arith.constant 9.990000e+02 : f32
    %117 = vector.broadcast %cst_34 : f32 to vector<20x16xf32>
    %118 = arith.cmpf oeq, %116, %117 : vector<20x16xf32>
    %cst_35 = arith.constant 0.000000e+00 : f32
    %119 = vector.broadcast %cst_35 : f32 to vector<20x16xf32>
    %120 = arith.select %118, %119, %116 : vector<20x16xi1>, vector<20x16xf32>
    %cst_36 = arith.constant 0.000000e+00 : f32
    %121 = vector.broadcast %cst_36 : f32 to vector<20x16xf32>
    %122 = arith.select %11, %120, %121 : vector<20x16xi1>, vector<20x16xf32>
    %123 = arith.truncf %122 : vector<20x16xf32> to vector<20x16xbf16>
    %c0_37 = arith.constant 0 : index
    %c0_38 = arith.constant 0 : index
    %c3 = arith.constant 3 : index
    %c0_39 = arith.constant 0 : index
    %c0_40 = arith.constant 0 : index
    %124 = vector.load %arg3[%c0_37, %c0_38, %c3, %c0_39, %c0_40] : memref<1x1x7x20x16xbf16, #tpu.memory_space<vmem>>, vector<1x1x1x20x16xbf16>
    %125 = vector.shape_cast %124 : vector<1x1x1x20x16xbf16> to vector<20x16xbf16>
    %126 = vector.shape_cast %123 : vector<20x16xbf16> to vector<1x1x1x20x16xbf16>
    tpu.vector_store %arg3[%c0_37, %c0_38, %c3, %c0_39, %c0_40], %126 {strides = array<i32>} : memref<1x1x7x20x16xbf16, #tpu.memory_space<vmem>>, vector<1x1x1x20x16xbf16>,
    %127 = vector.extract_strided_slice %1 {offsets = [0, 5], sizes = [32, 16], strides = [1, 1]} : vector<32x28xf32> to vector<32x16xf32>
    %128 = vector.extract_strided_slice %1 {offsets = [0, 6], sizes = [32, 16], strides = [1, 1]} : vector<32x28xf32> to vector<32x16xf32>
    %129 = arith.maximumf %127, %128 : vector<32x16xf32>
    %130 = vector.extract_strided_slice %1 {offsets = [0, 7], sizes = [32, 16], strides = [1, 1]} : vector<32x28xf32> to vector<32x16xf32>
    %131 = arith.maximumf %129, %130 : vector<32x16xf32>
    %132 = vector.extract_strided_slice %1 {offsets = [0, 4], sizes = [32, 16], strides = [1, 1]} : vector<32x28xf32> to vector<32x16xf32>
    %133 = vector.extract_strided_slice %1 {offsets = [0, 8], sizes = [32, 16], strides = [1, 1]} : vector<32x28xf32> to vector<32x16xf32>
    %134 = arith.maximumf %132, %133 : vector<32x16xf32>
    %135 = arith.maximumf %131, %134 : vector<32x16xf32>
    %136 = vector.extract_strided_slice %1 {offsets = [0, 3], sizes = [32, 16], strides = [1, 1]} : vector<32x28xf32> to vector<32x16xf32>
    %137 = vector.extract_strided_slice %1 {offsets = [0, 9], sizes = [32, 16], strides = [1, 1]} : vector<32x28xf32> to vector<32x16xf32>
    %138 = arith.maximumf %136, %137 : vector<32x16xf32>
    %139 = arith.maximumf %135, %138 : vector<32x16xf32>
    %140 = vector.extract_strided_slice %1 {offsets = [0, 2], sizes = [32, 16], strides = [1, 1]} : vector<32x28xf32> to vector<32x16xf32>
    %141 = vector.extract_strided_slice %1 {offsets = [0, 10], sizes = [32, 16], strides = [1, 1]} : vector<32x28xf32> to vector<32x16xf32>
    %142 = arith.maximumf %140, %141 : vector<32x16xf32>
    %143 = arith.maximumf %139, %142 : vector<32x16xf32>
    %144 = vector.extract_strided_slice %1 {offsets = [0, 1], sizes = [32, 16], strides = [1, 1]} : vector<32x28xf32> to vector<32x16xf32>
    %145 = vector.extract_strided_slice %1 {offsets = [0, 11], sizes = [32, 16], strides = [1, 1]} : vector<32x28xf32> to vector<32x16xf32>
    %146 = arith.maximumf %144, %145 : vector<32x16xf32>
    %147 = arith.maximumf %143, %146 : vector<32x16xf32>
    %148 = vector.extract_strided_slice %1 {offsets = [0, 0], sizes = [32, 16], strides = [1, 1]} : vector<32x28xf32> to vector<32x16xf32>
    %149 = vector.extract_strided_slice %1 {offsets = [0, 12], sizes = [32, 16], strides = [1, 1]} : vector<32x28xf32> to vector<32x16xf32>
    %150 = arith.maximumf %148, %149 : vector<32x16xf32>
    %151 = arith.maximumf %147, %150 : vector<32x16xf32>
    %152 = vector.extract_strided_slice %147 {offsets = [0, 0], sizes = [31, 16], strides = [1, 1]} : vector<32x16xf32> to vector<31x16xf32>
    %153 = vector.extract_strided_slice %147 {offsets = [1, 0], sizes = [31, 16], strides = [1, 1]} : vector<32x16xf32> to vector<31x16xf32>
    %154 = arith.maximumf %152, %153 : vector<31x16xf32>
    %155 = vector.extract_strided_slice %154 {offsets = [0, 0], sizes = [29, 16], strides = [1, 1]} : vector<31x16xf32> to vector<29x16xf32>
    %156 = vector.extract_strided_slice %154 {offsets = [2, 0], sizes = [29, 16], strides = [1, 1]} : vector<31x16xf32> to vector<29x16xf32>
    %157 = arith.maximumf %155, %156 : vector<29x16xf32>
    %158 = vector.extract_strided_slice %157 {offsets = [0, 0], sizes = [25, 16], strides = [1, 1]} : vector<29x16xf32> to vector<25x16xf32>
    %159 = vector.extract_strided_slice %157 {offsets = [4, 0], sizes = [25, 16], strides = [1, 1]} : vector<29x16xf32> to vector<25x16xf32>
    %160 = arith.maximumf %158, %159 : vector<25x16xf32>
    %161 = vector.extract_strided_slice %160 {offsets = [0, 0], sizes = [22, 16], strides = [1, 1]} : vector<25x16xf32> to vector<22x16xf32>
    %162 = vector.extract_strided_slice %160 {offsets = [3, 0], sizes = [22, 16], strides = [1, 1]} : vector<25x16xf32> to vector<22x16xf32>
    %163 = arith.maximumf %161, %162 : vector<22x16xf32>
    %164 = vector.extract_strided_slice %163 {offsets = [1, 0], sizes = [20, 16], strides = [1, 1]} : vector<22x16xf32> to vector<20x16xf32>
    %cst_41 = arith.constant 0.000000e+00 : f32
    %165 = vector.broadcast %cst_41 : f32 to vector<20x16xf32>
    %166 = arith.select %11, %164, %165 : vector<20x16xi1>, vector<20x16xf32>
    %167 = arith.truncf %166 : vector<20x16xf32> to vector<20x16xbf16>
    %c0_42 = arith.constant 0 : index
    %c0_43 = arith.constant 0 : index
    %c4 = arith.constant 4 : index
    %c0_44 = arith.constant 0 : index
    %c0_45 = arith.constant 0 : index
    %168 = vector.load %arg3[%c0_42, %c0_43, %c4, %c0_44, %c0_45] : memref<1x1x7x20x16xbf16, #tpu.memory_space<vmem>>, vector<1x1x1x20x16xbf16>
    %169 = vector.shape_cast %168 : vector<1x1x1x20x16xbf16> to vector<20x16xbf16>
    %170 = vector.shape_cast %167 : vector<20x16xbf16> to vector<1x1x1x20x16xbf16>
    tpu.vector_store %arg3[%c0_42, %c0_43, %c4, %c0_44, %c0_45], %170 {strides = array<i32>} : memref<1x1x7x20x16xbf16, #tpu.memory_space<vmem>>, vector<1x1x1x20x16xbf16>,
    %171 = vector.extract_strided_slice %151 {offsets = [0, 0], sizes = [31, 16], strides = [1, 1]} : vector<32x16xf32> to vector<31x16xf32>
    %172 = vector.extract_strided_slice %151 {offsets = [1, 0], sizes = [31, 16], strides = [1, 1]} : vector<32x16xf32> to vector<31x16xf32>
    %173 = arith.maximumf %171, %172 : vector<31x16xf32>
    %174 = vector.extract_strided_slice %173 {offsets = [0, 0], sizes = [29, 16], strides = [1, 1]} : vector<31x16xf32> to vector<29x16xf32>
    %175 = vector.extract_strided_slice %173 {offsets = [2, 0], sizes = [29, 16], strides = [1, 1]} : vector<31x16xf32> to vector<29x16xf32>
    %176 = arith.maximumf %174, %175 : vector<29x16xf32>
    %177 = vector.extract_strided_slice %176 {offsets = [0, 0], sizes = [25, 16], strides = [1, 1]} : vector<29x16xf32> to vector<25x16xf32>
    %178 = vector.extract_strided_slice %176 {offsets = [4, 0], sizes = [25, 16], strides = [1, 1]} : vector<29x16xf32> to vector<25x16xf32>
    %179 = arith.maximumf %177, %178 : vector<25x16xf32>
    %180 = vector.extract_strided_slice %179 {offsets = [0, 0], sizes = [20, 16], strides = [1, 1]} : vector<25x16xf32> to vector<20x16xf32>
    %181 = vector.extract_strided_slice %179 {offsets = [5, 0], sizes = [20, 16], strides = [1, 1]} : vector<25x16xf32> to vector<20x16xf32>
    %182 = arith.maximumf %180, %181 : vector<20x16xf32>
    %cst_46 = arith.constant 0.000000e+00 : f32
    %183 = vector.broadcast %cst_46 : f32 to vector<20x16xf32>
    %184 = arith.select %11, %182, %183 : vector<20x16xi1>, vector<20x16xf32>
    %185 = arith.truncf %184 : vector<20x16xf32> to vector<20x16xbf16>
    %c0_47 = arith.constant 0 : index
    %c0_48 = arith.constant 0 : index
    %c5 = arith.constant 5 : index
    %c0_49 = arith.constant 0 : index
    %c0_50 = arith.constant 0 : index
    %186 = vector.load %arg3[%c0_47, %c0_48, %c5, %c0_49, %c0_50] : memref<1x1x7x20x16xbf16, #tpu.memory_space<vmem>>, vector<1x1x1x20x16xbf16>
    %187 = vector.shape_cast %186 : vector<1x1x1x20x16xbf16> to vector<20x16xbf16>
    %188 = vector.shape_cast %185 : vector<20x16xbf16> to vector<1x1x1x20x16xbf16>
    tpu.vector_store %arg3[%c0_47, %c0_48, %c5, %c0_49, %c0_50], %188 {strides = array<i32>} : memref<1x1x7x20x16xbf16, #tpu.memory_space<vmem>>, vector<1x1x1x20x16xbf16>,
    %189 = vector.extract_strided_slice %1 {offsets = [6, 6], sizes = [20, 16], strides = [1, 1]} : vector<32x28xf32> to vector<20x16xf32>
    %cst_51 = arith.constant 0.000000e+00 : f32
    %190 = vector.broadcast %cst_51 : f32 to vector<20x16xf32>
    %191 = arith.select %11, %189, %190 : vector<20x16xi1>, vector<20x16xf32>
    %192 = arith.truncf %191 : vector<20x16xf32> to vector<20x16xbf16>
    %c0_52 = arith.constant 0 : index
    %c0_53 = arith.constant 0 : index
    %c6 = arith.constant 6 : index
    %c0_54 = arith.constant 0 : index
    %c0_55 = arith.constant 0 : index
    %193 = vector.load %arg3[%c0_52, %c0_53, %c6, %c0_54, %c0_55] : memref<1x1x7x20x16xbf16, #tpu.memory_space<vmem>>, vector<1x1x1x20x16xbf16>
    %194 = vector.shape_cast %193 : vector<1x1x1x20x16xbf16> to vector<20x16xbf16>
    %195 = vector.shape_cast %192 : vector<20x16xbf16> to vector<1x1x1x20x16xbf16>
    tpu.vector_store %arg3[%c0_52, %c0_53, %c6, %c0_54, %c0_55], %195 {strides = array<i32>} : memref<1x1x7x20x16xbf16, #tpu.memory_space<vmem>>, vector<1x1x1x20x16xbf16>,
    return
  }
  func.func @transform_0(%arg0: i32, %arg1: i32) -> (i32, i32, i32, i32) {
    %c0_i32 = arith.constant 0 : i32
    %c0_i32_0 = arith.constant 0 : i32
    %c0_i32_1 = arith.constant 0 : i32
    return %arg0, %arg1, %c0_i32, %c0_i32_0 : i32, i32, i32, i32
  }
  func.func @transform_1(%arg0: i32, %arg1: i32) -> (i32, i32, i32, i32, i32) {
    %c0_i32 = arith.constant 0 : i32
    %c0_i32_0 = arith.constant 0 : i32
    %c0_i32_1 = arith.constant 0 : i32
    %c0_i32_2 = arith.constant 0 : i32
    return %arg0, %arg1, %c0_i32, %c0_i32_0, %c0_i32_1 : i32, i32, i32, i32, i32
  }
}

module attributes {stable_mosaic.version = 11 : i64} {
  func.func @kernel(%arg0: i32, %arg1: i32, %arg2: memref<1x1x7x320xbf16, #tpu.memory_space<vmem>>, %arg3: memref<1x3x320xbf16, #tpu.memory_space<vmem>>, %arg4: memref<8x6xf32, #tpu.memory_space<vmem>>, %arg5: memref<8x1xf32, #tpu.memory_space<vmem>>, %arg6: memref<16x8xf32, #tpu.memory_space<vmem>>, %arg7: memref<16x1xf32, #tpu.memory_space<vmem>>, %arg8: memref<9x32x17xf32, #tpu.memory_space<vmem>>, %arg9: memref<32x1xf32, #tpu.memory_space<vmem>>, %arg10: memref<1x32x256xf32, #tpu.memory_space<vmem>>) attributes {dimension_semantics = [#tpu.dimension_semantics<parallel>, #tpu.dimension_semantics<parallel>], iteration_bounds = array<i64: 2, 1>, scalar_prefetch = 0 : i64, scratch_operands = 0 : i64, tpu.core_type = #tpu.core_type<tc>, window_params = [{transform_indices = @transform_0, window_bounds = array<i64: 1, 1, 7, 320>}, {transform_indices = @transform_1, window_bounds = array<i64: 1, 3, 320>}, {pipeline_mode = #tpu.pipeline_mode<synchronous>, transform_indices = @transform_2, window_bounds = array<i64: 8, 6>}, {pipeline_mode = #tpu.pipeline_mode<synchronous>, transform_indices = @transform_3, window_bounds = array<i64: 8, 1>}, {pipeline_mode = #tpu.pipeline_mode<synchronous>, transform_indices = @transform_4, window_bounds = array<i64: 16, 8>}, {pipeline_mode = #tpu.pipeline_mode<synchronous>, transform_indices = @transform_5, window_bounds = array<i64: 16, 1>}, {pipeline_mode = #tpu.pipeline_mode<synchronous>, transform_indices = @transform_6, window_bounds = array<i64: 9, 32, 17>}, {pipeline_mode = #tpu.pipeline_mode<synchronous>, transform_indices = @transform_7, window_bounds = array<i64: 32, 1>}, {transform_indices = @transform_8, window_bounds = array<i64: 1, 32, 256>}]} {
    %c0 = arith.constant 0 : index
    %c0_0 = arith.constant 0 : index
    %c0_1 = arith.constant 0 : index
    %c0_2 = arith.constant 0 : index
    %0 = vector.load %arg2[%c0, %c0_0, %c0_1, %c0_2] : memref<1x1x7x320xbf16, #tpu.memory_space<vmem>>, vector<1x1x7x320xbf16>
    %1 = vector.shape_cast %0 : vector<1x1x7x320xbf16> to vector<7x320xbf16>
    %2 = arith.extf %1 : vector<7x320xbf16> to vector<7x320xf32>
    %3 = vector.extract_strided_slice %2 {offsets = [0, 0], sizes = [6, 320], strides = [1, 1]} : vector<7x320xf32> to vector<6x320xf32>
    %4 = vector.extract_strided_slice %2 {offsets = [6, 0], sizes = [1, 320], strides = [1, 1]} : vector<7x320xf32> to vector<1x320xf32>
    %c0_3 = arith.constant 0 : index
    %c0_4 = arith.constant 0 : index
    %5 = vector.load %arg4[%c0_3, %c0_4] : memref<8x6xf32, #tpu.memory_space<vmem>>, vector<8x6xf32>
    %cst = arith.constant dense<0.000000e+00> : vector<8x320xf32>
    %6 = tpu.matmul %5, %3, %cst {dimension_numbers = #tpu.dot_dimension_numbers<[1], [0], [0], [1], [0, 0, 1, 1], [], []>} : vector<8x6xf32>, vector<6x320xf32>, vector<8x320xf32> -> vector<8x320xf32>
    %c0_5 = arith.constant 0 : index
    %c0_6 = arith.constant 0 : index
    %7 = vector.load %arg5[%c0_5, %c0_6] : memref<8x1xf32, #tpu.memory_space<vmem>>, vector<8x1xf32>
    %8 = vector.broadcast %7 : vector<8x1xf32> to vector<8x320xf32>
    %9 = arith.addf %6, %8 : vector<8x320xf32>
    %cst_7 = arith.constant 0.000000e+00 : f32
    %10 = vector.broadcast %cst_7 : f32 to vector<8x320xf32>
    %11 = arith.cmpf ogt, %9, %10 : vector<8x320xf32>
    %cst_8 = arith.constant 2.000000e-01 : f32
    %12 = vector.broadcast %cst_8 : f32 to vector<8x320xf32>
    %13 = arith.mulf %12, %9 : vector<8x320xf32>
    %14 = arith.select %11, %9, %13 : vector<8x320xi1>, vector<8x320xf32>
    %c0_9 = arith.constant 0 : index
    %c0_10 = arith.constant 0 : index
    %15 = vector.load %arg6[%c0_9, %c0_10] : memref<16x8xf32, #tpu.memory_space<vmem>>, vector<16x8xf32>
    %cst_11 = arith.constant dense<0.000000e+00> : vector<16x320xf32>
    %16 = tpu.matmul %15, %14, %cst_11 {dimension_numbers = #tpu.dot_dimension_numbers<[1], [0], [0], [1], [0, 0, 1, 1], [], []>} : vector<16x8xf32>, vector<8x320xf32>, vector<16x320xf32> -> vector<16x320xf32>
    %c0_12 = arith.constant 0 : index
    %c0_13 = arith.constant 0 : index
    %17 = vector.load %arg7[%c0_12, %c0_13] : memref<16x1xf32, #tpu.memory_space<vmem>>, vector<16x1xf32>
    %18 = vector.broadcast %17 : vector<16x1xf32> to vector<16x320xf32>
    %19 = arith.addf %16, %18 : vector<16x320xf32>
    %cst_14 = arith.constant 0.000000e+00 : f32
    %20 = vector.broadcast %cst_14 : f32 to vector<16x320xf32>
    %21 = arith.cmpf ogt, %19, %20 : vector<16x320xf32>
    %cst_15 = arith.constant 2.000000e-01 : f32
    %22 = vector.broadcast %cst_15 : f32 to vector<16x320xf32>
    %23 = arith.mulf %22, %19 : vector<16x320xf32>
    %24 = arith.select %21, %19, %23 : vector<16x320xi1>, vector<16x320xf32>
    %25 = tpu.concatenate %24, %4 in 0 : vector<16x320xf32>, vector<1x320xf32> -> vector<17x320xf32>
    %c0_16 = arith.constant 0 : index
    %c0_17 = arith.constant 0 : index
    %c0_18 = arith.constant 0 : index
    %26 = vector.load %arg3[%c0_16, %c0_17, %c0_18] : memref<1x3x320xbf16, #tpu.memory_space<vmem>>, vector<1x3x320xbf16>
    %27 = vector.shape_cast %26 : vector<1x3x320xbf16> to vector<3x320xbf16>
    %28 = arith.extf %27 : vector<3x320xbf16> to vector<3x320xf32>
    %29 = vector.extract_strided_slice %28 {offsets = [0, 0], sizes = [1, 320], strides = [1, 1]} : vector<3x320xf32> to vector<1x320xf32>
    %30 = vector.broadcast %29 : vector<1x320xf32> to vector<17x320xf32>
    %31 = arith.mulf %25, %30 : vector<17x320xf32>
    %32 = vector.extract_strided_slice %28 {offsets = [1, 0], sizes = [1, 320], strides = [1, 1]} : vector<3x320xf32> to vector<1x320xf32>
    %33 = vector.broadcast %32 : vector<1x320xf32> to vector<17x320xf32>
    %34 = arith.mulf %25, %33 : vector<17x320xf32>
    %35 = vector.extract_strided_slice %28 {offsets = [2, 0], sizes = [1, 320], strides = [1, 1]} : vector<3x320xf32> to vector<1x320xf32>
    %36 = vector.broadcast %35 : vector<1x320xf32> to vector<17x320xf32>
    %37 = arith.mulf %25, %36 : vector<17x320xf32>
    %38 = vector.extract_strided_slice %31 {offsets = [0, 15], sizes = [17, 256], strides = [1, 1]} : vector<17x320xf32> to vector<17x256xf32>
    %c0_19 = arith.constant 0 : index
    %c0_20 = arith.constant 0 : index
    %c0_21 = arith.constant 0 : index
    %39 = vector.load %arg8[%c0_19, %c0_20, %c0_21] : memref<9x32x17xf32, #tpu.memory_space<vmem>>, vector<1x32x17xf32>
    %40 = vector.shape_cast %39 : vector<1x32x17xf32> to vector<32x17xf32>
    %cst_22 = arith.constant dense<0.000000e+00> : vector<32x256xf32>
    %41 = tpu.matmul %40, %38, %cst_22 {dimension_numbers = #tpu.dot_dimension_numbers<[1], [0], [0], [1], [0, 0, 1, 1], [], []>} : vector<32x17xf32>, vector<17x256xf32>, vector<32x256xf32> -> vector<32x256xf32>
    %42 = vector.extract_strided_slice %34 {offsets = [0, 16], sizes = [17, 256], strides = [1, 1]} : vector<17x320xf32> to vector<17x256xf32>
    %c1 = arith.constant 1 : index
    %c0_23 = arith.constant 0 : index
    %c0_24 = arith.constant 0 : index
    %43 = vector.load %arg8[%c1, %c0_23, %c0_24] : memref<9x32x17xf32, #tpu.memory_space<vmem>>, vector<1x32x17xf32>
    %44 = vector.shape_cast %43 : vector<1x32x17xf32> to vector<32x17xf32>
    %cst_25 = arith.constant dense<0.000000e+00> : vector<32x256xf32>
    %45 = tpu.matmul %44, %42, %cst_25 {dimension_numbers = #tpu.dot_dimension_numbers<[1], [0], [0], [1], [0, 0, 1, 1], [], []>} : vector<32x17xf32>, vector<17x256xf32>, vector<32x256xf32> -> vector<32x256xf32>
    %46 = arith.addf %41, %45 : vector<32x256xf32>
    %47 = vector.extract_strided_slice %37 {offsets = [0, 17], sizes = [17, 256], strides = [1, 1]} : vector<17x320xf32> to vector<17x256xf32>
    %c2 = arith.constant 2 : index
    %c0_26 = arith.constant 0 : index
    %c0_27 = arith.constant 0 : index
    %48 = vector.load %arg8[%c2, %c0_26, %c0_27] : memref<9x32x17xf32, #tpu.memory_space<vmem>>, vector<1x32x17xf32>
    %49 = vector.shape_cast %48 : vector<1x32x17xf32> to vector<32x17xf32>
    %cst_28 = arith.constant dense<0.000000e+00> : vector<32x256xf32>
    %50 = tpu.matmul %49, %47, %cst_28 {dimension_numbers = #tpu.dot_dimension_numbers<[1], [0], [0], [1], [0, 0, 1, 1], [], []>} : vector<32x17xf32>, vector<17x256xf32>, vector<32x256xf32> -> vector<32x256xf32>
    %51 = arith.addf %46, %50 : vector<32x256xf32>
    %52 = vector.extract_strided_slice %31 {offsets = [0, 31], sizes = [17, 256], strides = [1, 1]} : vector<17x320xf32> to vector<17x256xf32>
    %c3 = arith.constant 3 : index
    %c0_29 = arith.constant 0 : index
    %c0_30 = arith.constant 0 : index
    %53 = vector.load %arg8[%c3, %c0_29, %c0_30] : memref<9x32x17xf32, #tpu.memory_space<vmem>>, vector<1x32x17xf32>
    %54 = vector.shape_cast %53 : vector<1x32x17xf32> to vector<32x17xf32>
    %cst_31 = arith.constant dense<0.000000e+00> : vector<32x256xf32>
    %55 = tpu.matmul %54, %52, %cst_31 {dimension_numbers = #tpu.dot_dimension_numbers<[1], [0], [0], [1], [0, 0, 1, 1], [], []>} : vector<32x17xf32>, vector<17x256xf32>, vector<32x256xf32> -> vector<32x256xf32>
    %56 = arith.addf %51, %55 : vector<32x256xf32>
    %57 = vector.extract_strided_slice %34 {offsets = [0, 32], sizes = [17, 256], strides = [1, 1]} : vector<17x320xf32> to vector<17x256xf32>
    %c4 = arith.constant 4 : index
    %c0_32 = arith.constant 0 : index
    %c0_33 = arith.constant 0 : index
    %58 = vector.load %arg8[%c4, %c0_32, %c0_33] : memref<9x32x17xf32, #tpu.memory_space<vmem>>, vector<1x32x17xf32>
    %59 = vector.shape_cast %58 : vector<1x32x17xf32> to vector<32x17xf32>
    %cst_34 = arith.constant dense<0.000000e+00> : vector<32x256xf32>
    %60 = tpu.matmul %59, %57, %cst_34 {dimension_numbers = #tpu.dot_dimension_numbers<[1], [0], [0], [1], [0, 0, 1, 1], [], []>} : vector<32x17xf32>, vector<17x256xf32>, vector<32x256xf32> -> vector<32x256xf32>
    %61 = arith.addf %56, %60 : vector<32x256xf32>
    %62 = vector.extract_strided_slice %37 {offsets = [0, 33], sizes = [17, 256], strides = [1, 1]} : vector<17x320xf32> to vector<17x256xf32>
    %c5 = arith.constant 5 : index
    %c0_35 = arith.constant 0 : index
    %c0_36 = arith.constant 0 : index
    %63 = vector.load %arg8[%c5, %c0_35, %c0_36] : memref<9x32x17xf32, #tpu.memory_space<vmem>>, vector<1x32x17xf32>
    %64 = vector.shape_cast %63 : vector<1x32x17xf32> to vector<32x17xf32>
    %cst_37 = arith.constant dense<0.000000e+00> : vector<32x256xf32>
    %65 = tpu.matmul %64, %62, %cst_37 {dimension_numbers = #tpu.dot_dimension_numbers<[1], [0], [0], [1], [0, 0, 1, 1], [], []>} : vector<32x17xf32>, vector<17x256xf32>, vector<32x256xf32> -> vector<32x256xf32>
    %66 = arith.addf %61, %65 : vector<32x256xf32>
    %67 = vector.extract_strided_slice %31 {offsets = [0, 47], sizes = [17, 256], strides = [1, 1]} : vector<17x320xf32> to vector<17x256xf32>
    %c6 = arith.constant 6 : index
    %c0_38 = arith.constant 0 : index
    %c0_39 = arith.constant 0 : index
    %68 = vector.load %arg8[%c6, %c0_38, %c0_39] : memref<9x32x17xf32, #tpu.memory_space<vmem>>, vector<1x32x17xf32>
    %69 = vector.shape_cast %68 : vector<1x32x17xf32> to vector<32x17xf32>
    %cst_40 = arith.constant dense<0.000000e+00> : vector<32x256xf32>
    %70 = tpu.matmul %69, %67, %cst_40 {dimension_numbers = #tpu.dot_dimension_numbers<[1], [0], [0], [1], [0, 0, 1, 1], [], []>} : vector<32x17xf32>, vector<17x256xf32>, vector<32x256xf32> -> vector<32x256xf32>
    %71 = arith.addf %66, %70 : vector<32x256xf32>
    %72 = vector.extract_strided_slice %34 {offsets = [0, 48], sizes = [17, 256], strides = [1, 1]} : vector<17x320xf32> to vector<17x256xf32>
    %c7 = arith.constant 7 : index
    %c0_41 = arith.constant 0 : index
    %c0_42 = arith.constant 0 : index
    %73 = vector.load %arg8[%c7, %c0_41, %c0_42] : memref<9x32x17xf32, #tpu.memory_space<vmem>>, vector<1x32x17xf32>
    %74 = vector.shape_cast %73 : vector<1x32x17xf32> to vector<32x17xf32>
    %cst_43 = arith.constant dense<0.000000e+00> : vector<32x256xf32>
    %75 = tpu.matmul %74, %72, %cst_43 {dimension_numbers = #tpu.dot_dimension_numbers<[1], [0], [0], [1], [0, 0, 1, 1], [], []>} : vector<32x17xf32>, vector<17x256xf32>, vector<32x256xf32> -> vector<32x256xf32>
    %76 = arith.addf %71, %75 : vector<32x256xf32>
    %77 = vector.extract_strided_slice %37 {offsets = [0, 49], sizes = [17, 256], strides = [1, 1]} : vector<17x320xf32> to vector<17x256xf32>
    %c8 = arith.constant 8 : index
    %c0_44 = arith.constant 0 : index
    %c0_45 = arith.constant 0 : index
    %78 = vector.load %arg8[%c8, %c0_44, %c0_45] : memref<9x32x17xf32, #tpu.memory_space<vmem>>, vector<1x32x17xf32>
    %79 = vector.shape_cast %78 : vector<1x32x17xf32> to vector<32x17xf32>
    %cst_46 = arith.constant dense<0.000000e+00> : vector<32x256xf32>
    %80 = tpu.matmul %79, %77, %cst_46 {dimension_numbers = #tpu.dot_dimension_numbers<[1], [0], [0], [1], [0, 0, 1, 1], [], []>} : vector<32x17xf32>, vector<17x256xf32>, vector<32x256xf32> -> vector<32x256xf32>
    %81 = arith.addf %76, %80 : vector<32x256xf32>
    %c0_47 = arith.constant 0 : index
    %c0_48 = arith.constant 0 : index
    %82 = vector.load %arg9[%c0_47, %c0_48] : memref<32x1xf32, #tpu.memory_space<vmem>>, vector<32x1xf32>
    %83 = vector.broadcast %82 : vector<32x1xf32> to vector<32x256xf32>
    %84 = arith.addf %81, %83 : vector<32x256xf32>
    %cst_49 = arith.constant 0.000000e+00 : f32
    %85 = vector.broadcast %cst_49 : f32 to vector<32x256xf32>
    %86 = arith.cmpf ogt, %84, %85 : vector<32x256xf32>
    %cst_50 = arith.constant 2.000000e-01 : f32
    %87 = vector.broadcast %cst_50 : f32 to vector<32x256xf32>
    %88 = arith.mulf %87, %84 : vector<32x256xf32>
    %89 = arith.select %86, %84, %88 : vector<32x256xi1>, vector<32x256xf32>
    %c0_51 = arith.constant 0 : index
    %c0_52 = arith.constant 0 : index
    %c0_53 = arith.constant 0 : index
    %90 = vector.load %arg10[%c0_51, %c0_52, %c0_53] : memref<1x32x256xf32, #tpu.memory_space<vmem>>, vector<1x32x256xf32>
    %91 = vector.shape_cast %90 : vector<1x32x256xf32> to vector<32x256xf32>
    %92 = vector.shape_cast %89 : vector<32x256xf32> to vector<1x32x256xf32>
    tpu.vector_store %arg10[%c0_51, %c0_52, %c0_53], %92 {strides = array<i32>} : memref<1x32x256xf32, #tpu.memory_space<vmem>>, vector<1x32x256xf32>,
    return
  }
  func.func @transform_0(%arg0: i32, %arg1: i32) -> (i32, i32, i32, i32) {
    %c0_i32 = arith.constant 0 : i32
    %c0_i32_0 = arith.constant 0 : i32
    %c0_i32_1 = arith.constant 0 : i32
    return %arg0, %arg1, %c0_i32, %c0_i32_0 : i32, i32, i32, i32
  }
  func.func @transform_1(%arg0: i32, %arg1: i32) -> (i32, i32, i32) {
    %c0_i32 = arith.constant 0 : i32
    %c0_i32_0 = arith.constant 0 : i32
    %c0_i32_1 = arith.constant 0 : i32
    return %arg1, %c0_i32, %c0_i32_0 : i32, i32, i32
  }
  func.func @transform_2(%arg0: i32, %arg1: i32) -> (i32, i32) {
    %c0_i32 = arith.constant 0 : i32
    %c0_i32_0 = arith.constant 0 : i32
    %c0_i32_1 = arith.constant 0 : i32
    return %c0_i32, %c0_i32_0 : i32, i32
  }
  func.func @transform_3(%arg0: i32, %arg1: i32) -> (i32, i32) {
    %c0_i32 = arith.constant 0 : i32
    %c0_i32_0 = arith.constant 0 : i32
    %c0_i32_1 = arith.constant 0 : i32
    return %c0_i32, %c0_i32_0 : i32, i32
  }
  func.func @transform_4(%arg0: i32, %arg1: i32) -> (i32, i32) {
    %c0_i32 = arith.constant 0 : i32
    %c0_i32_0 = arith.constant 0 : i32
    %c0_i32_1 = arith.constant 0 : i32
    return %c0_i32, %c0_i32_0 : i32, i32
  }
  func.func @transform_5(%arg0: i32, %arg1: i32) -> (i32, i32) {
    %c0_i32 = arith.constant 0 : i32
    %c0_i32_0 = arith.constant 0 : i32
    %c0_i32_1 = arith.constant 0 : i32
    return %c0_i32, %c0_i32_0 : i32, i32
  }
  func.func @transform_6(%arg0: i32, %arg1: i32) -> (i32, i32, i32) {
    %c0_i32 = arith.constant 0 : i32
    %c0_i32_0 = arith.constant 0 : i32
    %c0_i32_1 = arith.constant 0 : i32
    %c0_i32_2 = arith.constant 0 : i32
    return %c0_i32, %c0_i32_0, %c0_i32_1 : i32, i32, i32
  }
  func.func @transform_7(%arg0: i32, %arg1: i32) -> (i32, i32) {
    %c0_i32 = arith.constant 0 : i32
    %c0_i32_0 = arith.constant 0 : i32
    %c0_i32_1 = arith.constant 0 : i32
    return %c0_i32, %c0_i32_0 : i32, i32
  }
  func.func @transform_8(%arg0: i32, %arg1: i32) -> (i32, i32, i32) {
    %c0_i32 = arith.constant 0 : i32
    %c0_i32_0 = arith.constant 0 : i32
    return %arg0, %c0_i32, %arg1 : i32, i32, i32
  }
}

</mosaic_0001>

<bundles_post_ra>
// kernel: s2d_forward.2
= control target key start
LH: loop header
LB: loop body
LE: loop exit
PB: predicated region body
PF: predicated region fallthrough
CT: control target
= control target key end

     0   :  { %s1524_s6 = smov 0   ;;  %s1526_s7 = smov 0   ;;  %s2115_s0 = inlined_call_operand.vmem [shape: f32[2,1,32,28], index: 0, kind: input, shape index: {}]   ;;  %s2116_s1 = inlined_call_operand.vmem [shape: bf16[2,1,7,20,16], index: 1, kind: output, shape index: {}]  }
   0x1   :  { %s1528_s8 = smov 0  }
   0x2 LB: > { %s23_s9 = sadd.s32 1, %s1495_s7  ;;  %p1254_p0 = scmp.ge.s32.totalorder %s1499_s8, 1  ;;  %s1499_s8 = sphi %s1528_s8, %s11_s8   ;;  %s1495_s7 = sphi %s1526_s7, %s2118_s7   ;;  %s1491_s6 = sphi %s1524_s6, %s2117_s6  }
   0x3   : > { %p25_p1 = scmp.ge.s32.totalorder %s23_s9, 2  ;;  %p107_p2 = scmp.lt.s32.totalorder %s1499_s8, 3 }
   0x5   : > { %s2120_s9 = smov (%p25_p1, %s23_s9), 0  ;;  %p108_p3 = pnand %p1254_p0, %p107_p2 }
   0x6   : > { %p135_p4 = scmp.lt.s32.totalorder (!%p108_p3), %s1491_s6, 1  ;;  %s1501_s14 = smov (!%p108_p3), 127  }
   0x7   : > { %111 = sbr.rel (%p108_p3) target bundleno = 539 (0x21b), region = 24  ;;  %s1502_s15 = smov (!%p108_p3), 126  }
   0x8   : > { %s1503_s16 = smov (!%p108_p3), 124   ;;  %s1504_s17 = smov (!%p108_p3), 122  }
   0x9   : > { %s1505_s18 = smov (!%p108_p3), 120   ;;  %s1506_s19 = smov (!%p108_p3), 118  }
   0xa   : > { %s1507_s20 = smov (!%p108_p3), 116   ;;  %s1508_s21 = smov (!%p108_p3), 1  }
   0xb   : > { %s1509_s22 = smov (!%p108_p3), 2   ;;  %s1510_s23 = smov (!%p108_p3), 3  }
   0xc   : > { %s2122_s6 = smov (!%p135_p4, %s1491_s6), 1  ;;  %vm344_vm8 = vcmask 1046528   ;;  %vm395_vm11 = vcmask 1042432   ;;  %s1511_s24 = smov 4   ;;  %vm1131_vm14 = vcmask 1041408   ;;  %vm446_vm15 = vcmask 1045504  }
   0xd   : > { %s1278_s10 = sshll.u32 %s2122_s6, 5  ;;  %s1512_s25 = smov 5  }
   0xe   : > { %s143_s13 = scalar_lea.vmem %s2115_s0, %s1278_s10  ;;  %s1513_s26 = smov 123  }
   0xf   : > { %v1548_v0 = vld [vmem:[%s143_s13 + $0x10] sm:$0xff]  ;;  %v1550_v1 = vld [vmem:[%s143_s13] sm:$0xff]  ;;  %v1552_v2 = vld [vmem:[%s143_s13 + $0x18] sm:$0xff]  ;;  %s1279_s27 = smul.u32 84, %s2122_s6 }
  0x10   : > { %vm178_vm0 = vcmp.eq.f32.partialorder %v1548_v0, 0.0  ;;  %v182_v3 = vsub.f32 0.0, %v1548_v0  ;;  %vm190_vm1 = vcmp.eq.f32.partialorder %v1548_v0, -inf  ;;  %vm176_vm2 = vcmp.eq.f32.partialorder %v1550_v1, 0.0  ;;  %v1558_v4 = vld [vmem:[%s143_s13 + $0x8] sm:$0xff] }
  0x11   : > { %v180_v5 = vsub.f32 0.0, %v1550_v1  ;;  %vm188_vm3 = vcmp.eq.f32.partialorder %v1550_v1, -inf  ;;  %v183_v7 = vsub.f32 0.0, %v1552_v2  ;;  %vm179_vm4 = vcmp.eq.f32.partialorder %v1552_v2, 0.0  ;;  %s1868_s30 = scalar_lea.vmem %s2116_s1, %s1279_s27 }
  0x12   : > { %v186_v6 = vsel %vm178_vm0, -999.0, %v182_v3  ;;  %v181_v10 = vsub.f32 0.0, %v1558_v4  ;;  %vm177_vm5 = vcmp.eq.f32.partialorder %v1558_v4, 0.0  ;;  %vm191_vm6 = vcmp.eq.f32.partialorder %v1552_v2, -inf }
  0x13   : > { %v1563_v8 = vsel %vm190_vm1, -inf, %v186_v6  ;;  %v184_v9 = vsel %vm176_vm2, -999.0, %v180_v5  ;;  %v187_v12 = vsel %vm179_vm4, -999.0, %v183_v7  ;;  %vm189_vm7 = vcmp.eq.f32.partialorder %v1558_v4, -inf }
  0x14   : > { %204 = vrot.lane.b32.xlu1 %v1563_v8, %s1501_s14  ;;  %v1569_v11 = vsel %vm188_vm3, -inf, %v184_v9  ;;  %v185_v13 = vsel %vm177_vm5, -999.0, %v181_v10  ;;  %v1578_v14 = vsel %vm191_vm6, -inf, %v187_v12  ;;  %v1317_v16 = vpack.i.bf16 %v1558_v4, %v1550_v1 }
  0x15   : > { %216 = vrot.lane.b32.xlu2 %v1569_v11, %s1502_s15  ;;  %200 = vrot.lane.b32.xlu0 %v1569_v11, %s1501_s14  ;;  %v1580_v15 = vsel %vm189_vm7, -inf, %v185_v13  ;;  %v1322_v17 = vpack.i.bf16 %v1552_v2, %v1548_v0  ;;  %vm418_vm1 = vcmask 125952   ;;  %vm558_vm2 = vcmask 1044480  }
  0x16   : > { %vm491_vm3 = vcmask 1043456  }
  0x1c   : > { %206 = vrot.lane.b32.xlu1 %v1578_v14, %s1501_s14 }
  0x1d   : > { %218 = vrot.lane.b32.xlu2 %v1580_v15, %s1502_s15  ;;  %202 = vrot.lane.b32.xlu0 %v1580_v15, %s1501_s14 }
  0x24   : > { %222 = vrot.lane.b32.xlu1 %v1578_v14, %s1502_s15 }
  0x25   : > { %232 = vrot.lane.b32.xlu2 %v1569_v11, %s1503_s16  ;;  %220 = vrot.lane.b32.xlu0 %v1563_v8, %s1502_s15 }
  0x2c   : > { %236 = vrot.lane.b32.xlu1 %v1563_v8, %s1503_s16 }
  0x2d   : > { %238 = vrot.lane.b32.xlu2 %v1578_v14, %s1503_s16  ;;  %234 = vrot.lane.b32.xlu0 %v1580_v15, %s1503_s16 }
  0x34   : > { %268 = vrot.lane.b32.xlu1 %v1569_v11, %s1504_s17 }
  0x35   : > { %270 = vrot.lane.b32.xlu2 %v1580_v15, %s1504_s17  ;;  %272 = vrot.lane.b32.xlu0 %v1563_v8, %s1504_s17 }
  0x3c   : > { %274 = vrot.lane.b32.xlu1 %v1578_v14, %s1504_s17 }
  0x3d   : > { %308 = vrot.lane.b32.xlu2 %v1563_v8, %s1505_s18  ;;  %304 = vrot.lane.b32.xlu0 %v1569_v11, %s1505_s18 }
  0x44   : > { %306 = vrot.lane.b32.xlu1 %v1580_v15, %s1505_s18 }
  0x45   : > { %1318 = vrot.lane.b32.xlu2 %v1317_v16, %s1501_s14  ;;  %310 = vrot.lane.b32.xlu0 %v1578_v14, %s1505_s18 }
  0x4c   : > { %1328 = vrot.lane.b32.xlu1 %v1317_v16, %s1502_s15 }
  0x4d   : > { %1333 = vrot.lane.b32.xlu2 %v1317_v16, %s1503_s16  ;;  %1323 = vrot.lane.b32.xlu0 %v1322_v17, %s1501_s14 }
  0x54   : > { %1343 = vrot.lane.b32.xlu1 %v1317_v16, %s1504_s17 }
  0x55   : > { %1348 = vrot.lane.b32.xlu2 %v1322_v17, %s1504_s17  ;;  %1338 = vrot.lane.b32.xlu0 %v1322_v17, %s1503_s16 }
  0x5c   : > { %1358 = vrot.lane.b32.xlu1 %v1322_v17, %s1505_s18 }
  0x5d   : > { %1353 = vrot.lane.b32.xlu0 %v1317_v16, %s1505_s18  ;;  %1363 = vrot.lane.b32.xlu2 %v1317_v16, %s1506_s19 }
  0x64   : > { %1373 = vrot.lane.b32.xlu1 %v1317_v16, %s1507_s20 }
  0x65   : > { %1368 = vrot.lane.b32.xlu0 %v1322_v17, %s1506_s19  ;;  %1378 = vrot.lane.b32.xlu2 %v1322_v17, %s1507_s20 }
  0x6d   : > { %1383 = vrot.lane.b32.xlu0 %v1322_v17, %s1502_s15 }
  0x6f   : > { %v217_v18 = vpop.permute.xlu2 %216 }
  0x77   : > { %v219_v19 = vpop.permute.xlu2 %218 }
  0x7f   : > { %v1618_v20 = vpop.permute.xlu2 %232 }
  0x86   : > { %v205_v21 = vpop.permute.xlu1 %204 }
  0x87   : > { %v1620_v22 = vpop.permute.xlu2 %238  ;;  %v201_v23 = vpop.permute.xlu0 %200  ;;  %v214_v32 = vmax.f32 %v1563_v8, %v205_v21 }
  0x88   : > { %v212_v24 = vmax.f32 %v1569_v11, %v201_v23 }
  0x8a   : > { %v1623_v25 = vmax.f32 %v212_v24, %v217_v18 }
  0x8e   : > { %v207_v26 = vpop.permute.xlu1 %206 }
  0x8f   : > { %v1625_v27 = vpop.permute.xlu2 %270  ;;  %v203_v28 = vpop.permute.xlu0 %202  ;;  %v215_v31 = vmax.f32 %v1578_v14, %v207_v26 }
  0x90   : > { %v213_v29 = vmax.f32 %v1580_v15, %v203_v28 }
  0x92   : > { %v1628_v30 = vmax.f32 %v213_v29, %v219_v19 }
  0x96   : > { %v223_v33 = vpop.permute.xlu1 %222 }
  0x97   : > { %v1632_v34 = vmax.f32 %v215_v31, %v223_v33  ;;  %v1634_v35 = vpop.permute.xlu2 %308  ;;  %v221_v36 = vpop.permute.xlu0 %220 }
  0x98   : > { %v1636_v37 = vmax.f32 %v214_v32, %v221_v36 }
  0x99   : > { %v350_v38 = vrot.slane %v1632_v34, 1 }
  0x9a   : > { %v348_v39 = vrot.slane %v1636_v37, 1 }
  0x9b   : > { %v359_v40 = vmax.f32 %v1632_v34, %v350_v38 }
  0x9c   : > { %v351_v41 = vsel %vm344_vm8, %v348_v39, %v350_v38 }
  0x9d   : > { %v369_v42 = vrot.slane %v359_v40, 1  ;;  %v1645_v43 = vmax.f32 %v1636_v37, %v351_v41 }
  0x9e   : > { %v1647_v44 = vpop.permute.xlu1 %236 }
  0x9f   : > { %v378_v45 = vmax.f32 %v359_v40, %v369_v42  ;;  %v367_v46 = vrot.slane %v1645_v43, 1  ;;  %v1319_v47 = vpop.permute.xlu2 %1318  ;;  %v235_v48 = vpop.permute.xlu0 %234 }
  0xa0   : > { %v1321_v21 = vunpack.i.h.bf16 %v1319_v47  ;;  %v1320_v23 = vunpack.i.l.bf16 %v1319_v47  ;;  %v245_v24 = vmax.f32 %v1580_v15, %v235_v48 }
  0xa1   : > { %v382_v49 = vsub.f32 0.0, %v378_v45  ;;  %v370_v50 = vsel %vm344_vm8, %v367_v46, %v369_v42 }
  0xa2   : > { %v377_v51 = vmax.f32 %v1645_v43, %v370_v50  ;;  %v735_v28 = vmax.f32 %v1558_v4, %v1321_v21  ;;  %v734_v29 = vmax.f32 %v1550_v1, %v1320_v23 }
  0xa3   : > { %vm386_vm9 = vcmp.eq.f32.partialorder %v382_v49, 999.0 }
  0xa4   : > { %v381_v52 = vsub.f32 0.0, %v377_v51  ;;  %v390_v53 = vsel %vm386_vm9, 0.0, %v382_v49 }
  0xa5   : > { %v401_v61 = vrot.slane %v390_v53, 5 }
  0xa6   : > { %vm385_vm10 = vcmp.eq.f32.partialorder %v381_v52, 999.0  ;;  %v1654_v54 = vpop.permute.xlu1 %268 }
  0xa7   : > { %v1656_v55 = vsel %vm385_vm10, 0.0, %v381_v52  ;;  %v1334_v56 = vpop.permute.xlu2 %1333  ;;  %v273_v57 = vpop.permute.xlu0 %272 }
  0xa8   : > { %v1336_v58 = vunpack.i.h.bf16 %v1334_v56  ;;  %v1335_v59 = vunpack.i.l.bf16 %v1334_v56  ;;  %v399_v60 = vrot.slane %v1656_v55, 5  ;;  %v282_v40 = vmax.f32 %v1563_v8, %v273_v57 }
  0xaa   : > { %v767_v62 = vmax.f32 %v1558_v4, %v1336_v58  ;;  %v766_v63 = vmax.f32 %v1550_v1, %v1335_v59  ;;  %v1664_v3 = vsel %vm395_vm11, %v399_v60, %v401_v61 }
  0xac   : > { %v1387_v5 = vpack.i.bf16 %v767_v62, %v766_v63 }
  0xae   : > { %1388 = vrot.lane.b32.xlu1 %v1387_v5, %s1508_s21  ;;  %v1667_v6 = vpop.permute.xlu1 %274 }
  0xaf   : > { %v1349_v7 = vpop.permute.xlu2 %1348  ;;  %v305_v9 = vpop.permute.xlu0 %304 }
  0xb0   : > { %v1351_v10 = vunpack.i.h.bf16 %v1349_v7  ;;  %v1350_v12 = vunpack.i.l.bf16 %v1349_v7  ;;  %v316_v58 = vmax.f32 %v1569_v11, %v305_v9  ;;  %v244_v9 = vmax.f32 %v1569_v11, %v1618_v20 }
  0xb1   : > { %v247_v20 = vmax.f32 %v1578_v14, %v1620_v22 }
  0xb2   : > { %v805_v13 = vmax.f32 %v1552_v2, %v1351_v10  ;;  %v804_v16 = vmax.f32 %v1548_v0, %v1350_v12 }
  0xb4   : > { %v1402_v17 = vpack.i.bf16 %v805_v13, %v804_v16 }
  0xb6   : > { %1403 = vrot.lane.b32.xlu1 %v1402_v17, %s1509_s22  ;;  %v1672_v18 = vpop.permute.xlu1 %306 }
  0xb7   : > { %v311_v19 = vpop.permute.xlu0 %310  ;;  %v1364_v61 = vpop.permute.xlu2 %1363 }
  0xb8   : > { %v1366_v10 = vunpack.i.h.bf16 %v1364_v61  ;;  %v1365_v12 = vunpack.i.l.bf16 %v1364_v61  ;;  %v319_v13 = vmax.f32 %v1578_v14, %v311_v19  ;;  %v246_v19 = vmax.f32 %v1563_v8, %v1647_v44 }
  0xba   : > { %v875_v17 = vmax.f32 %v1558_v4, %v1366_v10  ;;  %v874_v21 = vmax.f32 %v1550_v1, %v1365_v12 }
  0xbe   : > { %254 = vrot.lane.b32.xlu1 %v245_v24, %s1508_s21  ;;  %v1329_v26 = vpop.permute.xlu1 %1328  ;;  %v1417_v24 = vpack.i.bf16 %v875_v17, %v874_v21 }
  0xbf   : > { %v1331_v31 = vunpack.i.h.bf16 %v1329_v26  ;;  %v1330_v32 = vunpack.i.l.bf16 %v1329_v26  ;;  %v1678_v33 = vpop.permute.xlu0 %1323  ;;  %v1379_v23 = vpop.permute.xlu2 %1378 }
  0xc0   : > { %v1381_v26 = vunpack.i.h.bf16 %v1379_v23 }
  0xc1   : > { %v1680_v36 = vmax.f32 %v734_v29, %v1330_v32  ;;  %v1682_v38 = vmax.f32 %v735_v28, %v1331_v31  ;;  %v1380_v28 = vunpack.i.l.bf16 %v1379_v23  ;;  %v346_v32 = vrot.slane %v1628_v30, 1 }
  0xc2   : > { %v913_v29 = vmax.f32 %v1552_v2, %v1381_v26 }
  0xc3   : > { %v912_v31 = vmax.f32 %v1548_v0, %v1380_v28  ;;  %v349_v22 = vsel %vm344_vm8, %v346_v32, %v348_v39 }
  0xc5   : > { %v1432_v44 = vpack.i.bf16 %v913_v29, %v912_v31  ;;  %v1325_v29 = vunpack.i.l.bf16 %v1678_v33 }
  0xc6   : > { %292 = vrot.lane.b32.xlu1 %v282_v40, %s1509_s22  ;;  %v1344_v41 = vpop.permute.xlu1 %1343  ;;  %v345_v40 = vrot.slane %v1623_v25, 1 }
  0xc7   : > { %v1346_v42 = vunpack.i.h.bf16 %v1344_v41  ;;  %v1345_v45 = vunpack.i.l.bf16 %v1344_v41  ;;  %v1339_v47 = vpop.permute.xlu0 %1338  ;;  %v281_v41 = vmax.f32 %v1580_v15, %v1625_v27 }
  0xc8   : > { %v1341_v48 = vunpack.i.h.bf16 %v1339_v47  ;;  %v1340_v49 = vunpack.i.l.bf16 %v1339_v47  ;;  %v280_v47 = vmax.f32 %v1569_v11, %v1654_v54  ;;  %v283_v54 = vmax.f32 %v1578_v14, %v1667_v6 }
  0xc9   : > { %v803_v50 = vmax.f32 %v1558_v4, %v1346_v42  ;;  %v802_v51 = vmax.f32 %v1550_v1, %v1345_v45  ;;  %v347_v42 = vsel %vm344_vm8, %v345_v40, %v346_v32  ;;  %v357_v45 = vmax.f32 %v1628_v30, %v349_v22 }
  0xca   : > { %v769_v52 = vmax.f32 %v1552_v2, %v1341_v48  ;;  %v768_v53 = vmax.f32 %v1548_v0, %v1340_v49  ;;  %v356_v49 = vmax.f32 %v1623_v25, %v347_v42  ;;  %v736_v22 = vmax.f32 %v1548_v0, %v1325_v29 }
  0xcb   : > { %v1397_v56 = vpack.i.bf16 %v803_v50, %v802_v51  ;;  %v365_v39 = vrot.slane %v357_v45, 1 }
  0xcc   : > { %v1392_v57 = vpack.i.bf16 %v769_v52, %v768_v53  ;;  %v364_v51 = vrot.slane %v356_v49, 1  ;;  %v318_v52 = vmax.f32 %v1563_v8, %v1634_v35 }
  0xcd   : > { %1398 = vrot.lane.b32.xlu0 %v1397_v56, %s1509_s22  ;;  %v368_v11 = vsel %vm344_vm8, %v365_v39, %v367_v46 }
  0xce   : > { %324 = vrot.lane.b32.xlu1 %v316_v58, %s1510_s23  ;;  %1393 = vrot.lane.b32.xlu2 %v1392_v57, %s1508_s21  ;;  %v1359_v48 = vpop.permute.xlu1 %1358  ;;  %v366_v53 = vsel %vm344_vm8, %v364_v51, %v365_v39  ;;  %v376_v8 = vmax.f32 %v357_v45, %v368_v11 }
  0xcf   : > { %v1354_v59 = vpop.permute.xlu0 %1353  ;;  %v1361_v50 = vunpack.i.h.bf16 %v1359_v48  ;;  %v1360_v27 = vunpack.i.l.bf16 %v1359_v48 }
  0xd0   : > { %v1356_v62 = vunpack.i.h.bf16 %v1354_v59  ;;  %v1355_v63 = vunpack.i.l.bf16 %v1354_v59  ;;  %v375_v59 = vmax.f32 %v356_v49, %v366_v53  ;;  %v380_v6 = vsub.f32 0.0, %v376_v8 }
  0xd1   : > { %v841_v56 = vmax.f32 %v1552_v2, %v1361_v50  ;;  %v840_v58 = vmax.f32 %v1548_v0, %v1360_v27 }
  0xd2   : > { %v839_v5 = vmax.f32 %v1558_v4, %v1356_v62  ;;  %v838_v7 = vmax.f32 %v1550_v1, %v1355_v63  ;;  %v379_v14 = vsub.f32 0.0, %v375_v59  ;;  %vm384_vm13 = vcmp.eq.f32.partialorder %v380_v6, 999.0 }
  0xd3   : > { %v1412_v43 = vpack.i.bf16 %v841_v56, %v840_v58  ;;  %v388_v21 = vsel %vm384_vm13, 0.0, %v380_v6 }
  0xd4   : > { %v1407_v16 = vpack.i.bf16 %v839_v5, %v838_v7  ;;  %v317_v5 = vmax.f32 %v1580_v15, %v1672_v18  ;;  %vm383_vm12 = vcmp.eq.f32.partialorder %v379_v14, 999.0  ;;  %v397_v18 = vrot.slane %v388_v21, 5 }
  0xd5   : > { %252 = vrot.lane.b32.xlu0 %v244_v9, %s1508_s21  ;;  %v387_v17 = vsel %vm383_vm12, 0.0, %v379_v14 }
  0xd6   : > { %330 = vrot.lane.b32.xlu1 %v319_v13, %s1510_s23  ;;  %1408 = vrot.lane.b32.xlu2 %v1407_v16, %s1510_s23  ;;  %v1374_v57 = vpop.permute.xlu1 %1373  ;;  %v396_v15 = vrot.slane %v387_v17, 5 }
  0xd7   : > { %v1369_v35 = vpop.permute.xlu0 %1368  ;;  %v1376_v61 = vunpack.i.h.bf16 %v1374_v57  ;;  %v1375_v46 = vunpack.i.l.bf16 %v1374_v57 }
  0xd8   : > { %v1371_v62 = vunpack.i.h.bf16 %v1369_v35  ;;  %v1370_v63 = vunpack.i.l.bf16 %v1369_v35  ;;  %v398_v23 = vsel %vm395_vm11, %v396_v15, %v397_v18  ;;  %v157_v15 = vlaneseq }
  0xd9   : > { %v911_v7 = vmax.f32 %v1558_v4, %v1376_v61  ;;  %v910_v10 = vmax.f32 %v1550_v1, %v1375_v46 }
  0xda   : > { %v877_v12 = vmax.f32 %v1552_v2, %v1371_v62  ;;  %v876_v9 = vmax.f32 %v1548_v0, %v1370_v63  ;;  %v1132_v62 = vrot.slane %v1550_v1, 6  ;;  %v1137_v63 = vrot.slane %v1552_v2, 6 }
  0xdb   : > { %v1427_v13 = vpack.i.bf16 %v911_v7, %v910_v10 }
  0xdc   : > { %v1422_v16 = vpack.i.bf16 %v877_v12, %v876_v9 }
  0xdd   : > { %258 = vrot.lane.b32.xlu0 %v247_v20, %s1508_s21 }
  0xde   : > { %1418 = vrot.lane.b32.xlu1 %v1417_v24, %s1511_s24  ;;  %256 = vrot.lane.b32.xlu2 %v246_v19, %s1508_s21  ;;  %v400_v24 = vsel %vm395_vm11, %v397_v18, %v399_v60  ;;  %v1326_v19 = vunpack.i.h.bf16 %v1678_v33 }
  0xdf   : > { %v1442_v26 = vpack.i.bf16 %v400_v24, %v398_v23  ;;  %v1384_v20 = vpop.permute.xlu0 %1383 }
  0xe0   : > { %v1386_v31 = vunpack.i.h.bf16 %v1384_v20  ;;  %v1385_v32 = vunpack.i.l.bf16 %v1384_v20  ;;  %v737_v40 = vmax.f32 %v1552_v2, %v1326_v19 }
  0xe2   : > { %v752_v60 = vmax.f32 %v736_v22, %v1385_v32 }
  0xe5   : > { %290 = vrot.lane.b32.xlu0 %v281_v41, %s1509_s22  ;;  %v753_v41 = vmax.f32 %v737_v40, %v1386_v31 }
  0xe6   : > { %288 = vrot.lane.b32.xlu2 %v280_v47, %s1509_s22  ;;  %1433 = vrot.lane.b32.xlu1 %v1432_v44, %s1512_s25 }
  0xed   : > { %328 = vrot.lane.b32.xlu0 %v318_v52, %s1510_s23 }
  0xee   : > { %294 = vrot.lane.b32.xlu2 %v283_v54, %s1509_s22 }
  0xf5   : > { %1413 = vrot.lane.b32.xlu0 %v1412_v43, %s1510_s23 }
  0xf6   : > { %326 = vrot.lane.b32.xlu2 %v317_v5, %s1510_s23 }
  0xfd   : > { %1428 = vrot.lane.b32.xlu0 %v1427_v13, %s1512_s25 }
  0xfe   : > { %1423 = vrot.lane.b32.xlu2 %v1422_v16, %s1511_s24 }
 0x106   : > { %1443 = vrot.lane.b32.xlu2 %v1442_v26, %s1513_s26 }
 0x120   : > { %v1389_v28 = vpop.permute.xlu1 %1388 }
 0x121   : > { %v1391_v27 = vunpack.i.h.bf16 %v1389_v28  ;;  %v1390_v51 = vunpack.i.l.bf16 %v1389_v28 }
 0x123   : > { %v786_v52 = vmax.f32 %v1680_v36, %v1390_v51  ;;  %v787_v11 = vmax.f32 %v1682_v38, %v1391_v27  ;;  %v1133_v36 = vrot.slane %v1558_v4, 6  ;;  %v1135_v38 = vrot.slane %v1548_v0, 6 }
 0x125   : > { %v1134_v5 = vsel %vm1131_vm14, %v1132_v62, %v1133_v36  ;;  %v1138_v7 = vsel %vm1131_vm14, %v1135_v38, %v1137_v63  ;;  %v1136_v18 = vsel %vm1131_vm14, %v1133_v36, %v1135_v38 }
 0x126   : > { %v1437_v10 = vpack.i.bf16 %v1138_v7, %v1134_v5  ;;  %1141 = vrot.lane.b32.xlu2 %v1136_v18, %s1504_s17 }
 0x128   : > { %v1759_v44 = vpop.permute.xlu1 %1403  ;;  %v1394_v55 = vpop.permute.xlu2 %1393  ;;  %1438 = vrot.lane.b32.xlu0 %v1437_v10, %s1504_s17 }
 0x129   : > { %v1396_v42 = vunpack.i.h.bf16 %v1394_v55  ;;  %v1395_v45 = vunpack.i.l.bf16 %v1394_v55  ;;  %v1405_v21 = vunpack.i.l.bf16 %v1759_v44  ;;  %v1406_v31 = vunpack.i.h.bf16 %v1759_v44 }
 0x12b   : > { %v1761_v47 = vmax.f32 %v752_v60, %v1395_v45  ;;  %v1763_v48 = vmax.f32 %v753_v41, %v1396_v42  ;;  %v1794_v41 = vshrl.u32 %v157_v15, 7 }
 0x12d   : > { %v1797_v42 = vmax.f32 %v1761_v47, %v1405_v21 }
 0x130   : > { %v255_v49 = vpop.permute.xlu1 %254  ;;  %v1409_v39 = vpop.permute.xlu2 %1408 }
 0x131   : > { %v1411_v54 = vunpack.i.h.bf16 %v1409_v39  ;;  %v1410_v56 = vunpack.i.l.bf16 %v1409_v39  ;;  %v1769_v43 = vmax.f32 %v1628_v30, %v255_v49 }
 0x133   : > { %v428_v30 = vrot.slane %v1769_v43, 1 }
 0x138   : > { %v293_v33 = vpop.permute.xlu1 %292  ;;  %v257_v50 = vpop.permute.xlu2 %256 }
 0x139   : > { %v266_v58 = vmax.f32 %v1636_v37, %v257_v50 }
 0x13b   : > { %v430_v14 = vrot.slane %v266_v58, 1  ;;  %v1787_v23 = vmax.f32 %v266_v58, %v293_v33 }
 0x13d   : > { %v431_v1 = vsel %vm344_vm8, %v428_v30, %v430_v14  ;;  %v523_v45 = vrot.slane %v1787_v23, 1 }
 0x13e   : > { %v1782_v2 = vmax.f32 %v1769_v43, %v431_v1 }
 0x13f   : > { %v1399_v53 = vpop.permute.xlu0 %1398 }
 0x140   : > { %v325_v57 = vpop.permute.xlu1 %324  ;;  %v1401_v59 = vunpack.i.h.bf16 %v1399_v53  ;;  %v1400_v8 = vunpack.i.l.bf16 %v1399_v53  ;;  %v289_v35 = vpop.permute.xlu2 %288  ;;  %v448_v26 = vrot.slane %v1782_v2, 2 }
 0x142   : > { %v823_v61 = vmax.f32 %v787_v11, %v1401_v59  ;;  %v822_v46 = vmax.f32 %v786_v52, %v1400_v8 }
 0x144   : > { %v858_v37 = vmax.f32 %v822_v46, %v1410_v56  ;;  %v859_v6 = vmax.f32 %v823_v61, %v1411_v54  ;;  %v1815_v56 = vadd.s32 4294967294, %v1794_v41 }
 0x146   : > { %vm167_vm0 = vcmp.ge.s32.totalorder %v1815_v56, 0 }
 0x147   : > { %v253_v12 = vpop.permute.xlu0 %252 }
 0x148   : > { %v331_v9 = vpop.permute.xlu1 %330  ;;  %v264_v4 = vmax.f32 %v1623_v25, %v253_v12  ;;  %v295_v13 = vpop.permute.xlu2 %294 }
 0x14a   : > { %v427_v0 = vrot.slane %v264_v4, 1  ;;  %v300_v24 = vmax.f32 %v264_v4, %v289_v35 }
 0x14c   : > { %v429_v16 = vsel %vm344_vm8, %v427_v0, %v428_v30  ;;  %v1800_v49 = vmax.f32 %v300_v24, %v325_v57  ;;  %v1818_v57 = vmax.f32 %v1763_v48, %v1406_v31 }
 0x14d   : > { %v438_v17 = vmax.f32 %v264_v4, %v429_v16 }
 0x14f   : > { %v447_v25 = vrot.slane %v438_v17, 2  ;;  %v259_v28 = vpop.permute.xlu0 %258 }
 0x150   : > { %v1419_v20 = vpop.permute.xlu1 %1418  ;;  %v267_v19 = vmax.f32 %v1632_v34, %v259_v28  ;;  %v327_v29 = vpop.permute.xlu2 %326 }
 0x151   : > { %v449_v32 = vsel %vm446_vm15, %v447_v25, %v448_v26  ;;  %v1421_v40 = vunpack.i.h.bf16 %v1419_v20  ;;  %v1420_v22 = vunpack.i.l.bf16 %v1419_v20 }
 0x152   : > { %v303_v55 = vmax.f32 %v267_v19, %v295_v13  ;;  %v432_v60 = vrot.slane %v267_v19, 1  ;;  %v1806_v44 = vmax.f32 %v438_v17, %v449_v32 }
 0x153   : > { %v1802_v39 = vmax.f32 %v858_v37, %v1420_v22  ;;  %v1804_v34 = vmax.f32 %v859_v6, %v1421_v40 }
 0x154   : > { %v1808_v33 = vmax.f32 %v303_v55, %v331_v9  ;;  %v433_v50 = vsel %vm344_vm8, %v430_v14, %v432_v60  ;;  %v441_v27 = vmax.f32 %v267_v19, %v432_v60  ;;  %v525_v11 = vrot.slane %v303_v55, 1 }
 0x155   : > { %v938_v51 = vrot.slane %v1802_v39, 1  ;;  %v939_v47 = vrot.slane %v1804_v34, 1  ;;  %v440_v52 = vmax.f32 %v266_v58, %v433_v50  ;;  %v520_v58 = vrot.slane %v300_v24, 1 }
 0x156   : > { %v452_v54 = vrot.slane %v441_v27, 2  ;;  %v617_v53 = vrot.slane %v1808_v33, 1  ;;  %v526_v35 = vsel %vm344_vm8, %v523_v45, %v525_v11  ;;  %v534_v61 = vmax.f32 %v303_v55, %v525_v11 }
 0x157   : > { %v940_v59 = vsel %vm344_vm8, %v938_v51, %v939_v47  ;;  %v450_v8 = vrot.slane %v440_v52, 2  ;;  %v291_v46 = vpop.permute.xlu0 %290  ;;  %v533_v38 = vmax.f32 %v1787_v23, %v526_v35  ;;  %v466_v48 = vrot.slane %v1806_v44, 1 }
 0x158   : > { %v1825_v62 = vmax.f32 %v1802_v39, %v940_v59  ;;  %v301_v36 = vmax.f32 %v1769_v43, %v291_v46  ;;  %v1829_v63 = vpop.permute.xlu2 %1423  ;;  %v612_v14 = vrot.slane %v1800_v49, 1  ;;  %v461_v37 = vmax.f32 %v441_v27, %v452_v54 }
 0x159   : > { %v544_v6 = vrot.slane %v534_v61, 2  ;;  %v453_v5 = vsel %vm446_vm15, %v450_v8, %v452_v54  ;;  %v1426_v10 = vunpack.i.h.bf16 %v1829_v63  ;;  %v542_v43 = vrot.slane %v533_v38, 2 }
 0x15a   : > { %v337_v7 = vmax.f32 %v301_v36, %v327_v29  ;;  %v521_v30 = vrot.slane %v301_v36, 1  ;;  %v1425_v12 = vunpack.i.l.bf16 %v1829_v63  ;;  %v1840_v1 = vmax.f32 %v1808_v33, %v617_v53 }
 0x15b   : > { %v451_v9 = vsel %vm446_vm15, %v448_v26, %v450_v8  ;;  %v957_v17 = vrot.slane %v1825_v62, 2  ;;  %v545_v18 = vsel %vm446_vm15, %v542_v43, %v544_v6  ;;  %v471_v25 = vrot.slane %v461_v37, 1 }
 0x15c   : > { %v522_v4 = vsel %vm344_vm8, %v520_v58, %v521_v30  ;;  %v524_v13 = vsel %vm344_vm8, %v521_v30, %v523_v45  ;;  %v613_v0 = vrot.slane %v337_v7, 1  ;;  %v1846_v16 = vmax.f32 %v1782_v2, %v451_v9 }
 0x15d   : > { %v531_v21 = vmax.f32 %v300_v24, %v522_v4  ;;  %v532_v15 = vmax.f32 %v301_v36, %v524_v13  ;;  %v636_v26 = vrot.slane %v1840_v1, 2  ;;  %v460_v20 = vmax.f32 %v440_v52, %v453_v5 }
 0x15e   : > { %v614_v28 = vsel %vm344_vm8, %v612_v14, %v613_v0  ;;  %v1853_v19 = vmax.f32 %v534_v61, %v544_v6  ;;  %v467_v32 = vrot.slane %v1846_v16, 1  ;;  %v1856_v40 = vmax.f32 %v533_v38, %v545_v18 }
 0x15f   : > { %v539_v29 = vrot.slane %v531_v21, 2  ;;  %v540_v31 = vrot.slane %v532_v15, 2  ;;  %v329_v2 = vpop.permute.xlu0 %328  ;;  %v1860_v22 = vmax.f32 %v1840_v1, %v636_v26  ;;  %v469_v60 = vrot.slane %v460_v20, 1 }
 0x160   : > { %v338_v24 = vmax.f32 %v1787_v23, %v329_v2  ;;  %v1444_v55 = vpop.permute.xlu2 %1443  ;;  %v623_v27 = vmax.f32 %v1800_v49, %v614_v28  ;;  %v562_v46 = vrot.slane %v1856_v40, 3 }
 0x161   : > { %v541_v45 = vsel %vm446_vm15, %v539_v29, %v540_v31  ;;  %v543_v50 = vsel %vm446_vm15, %v540_v31, %v542_v43  ;;  %v1446_v51 = vunpack.i.h.bf16 %v1444_v55  ;;  %v655_v54 = vrot.slane %v1860_v22, 4 }
 0x162   : > { %v1870_v52 = vmax.f32 %v531_v21, %v541_v45  ;;  %v1872_v23 = vmax.f32 %v532_v15, %v543_v50  ;;  %v615_v11 = vrot.slane %v338_v24, 1  ;;  %v1445_v8 = vunpack.i.l.bf16 %v1444_v55 }
 0x163   : > { %v416_v59 = vpack.c.bf16 %v1446_v51, %v1446_v51  ;;  %v470_v35 = vsel %vm344_vm8, %v467_v32, %v469_v60  ;;  %v472_v49 = vsel %vm344_vm8, %v469_v60, %v471_v25  ;;  %v1884_v37 = vmax.f32 %v1860_v22, %v655_v54 }
 0x164   : > { %v560_v61 = vrot.slane %v1872_v23, 3  ;;  %v616_v58 = vsel %vm344_vm8, %v613_v0, %v615_v11  ;;  %v618_v36 = vsel %vm344_vm8, %v615_v11, %v617_v53  ;;  %v412_v6 = vsel %vm167_vm0, %v1445_v8, 0.0  ;;  %v1434_v11 = vpop.permute.xlu1 %1433 }
 0x165   : > { %v624_v38 = vmax.f32 %v337_v7, %v616_v58  ;;  %v625_v14 = vmax.f32 %v338_v24, %v618_v36  ;;  %420 = vst.msk [vmem:[%s1868_s30 + $0x4] sm:$0xf] %vm418_vm1, %v416_v59  ;;  %v415_v5 = vpack.c.bf16 %v412_v6, %v412_v6  ;;  %v477_v53 = vmax.f32 %v1846_v16, %v470_v35 }
 0x166   : > { %v563_v33 = vsel %vm558_vm2, %v560_v61, %v562_v46  ;;  %v478_v30 = vmax.f32 %v460_v20, %v472_v49  ;;  %v559_v7 = vrot.slane %v1870_v52, 3  ;;  %v631_v43 = vrot.slane %v623_v27, 2 }
 0x167   : > { %v632_v1 = vrot.slane %v624_v38, 2  ;;  %v634_v9 = vrot.slane %v625_v14, 2  ;;  %v1414_v4 = vpop.permute.xlu0 %1413  ;;  %419 = vst.msk [vmem:[%s1868_s30] sm:$0xf] %vm418_vm1, %v415_v5  ;;  %v480_v21 = vsub.f32 0.0, %v477_v53  ;;  %v570_v18 = vmax.f32 %v1872_v23, %v563_v33 }
 0x168   : > { %v1416_v13 = vunpack.i.h.bf16 %v1414_v4  ;;  %v1415_v0 = vunpack.i.l.bf16 %v1414_v4  ;;  %v481_v15 = vsub.f32 0.0, %v478_v30  ;;  %v674_v31 = vrot.slane %v1884_v37, 1 }
 0x169   : > { %v633_v25 = vsel %vm446_vm15, %v631_v43, %v632_v1  ;;  %v635_v28 = vsel %vm446_vm15, %v632_v1, %v634_v9  ;;  %v637_v16 = vsel %vm446_vm15, %v634_v9, %v636_v26  ;;  %vm483_vm4 = vcmp.eq.f32.partialorder %v480_v21, 999.0 }
 0x16a   : > { %v1903_v20 = vmax.f32 %v624_v38, %v635_v28  ;;  %v644_v29 = vmax.f32 %v625_v14, %v637_v16  ;;  %v860_v2 = vmax.f32 %v1797_v42, %v1415_v0  ;;  %v861_v24 = vmax.f32 %v1818_v57, %v1416_v13 }
 0x16b   : > { %vm484_vm5 = vcmp.eq.f32.partialorder %v481_v15, 999.0  ;;  %v468_v22 = vsel %vm344_vm8, %v466_v48, %v467_v32  ;;  %v1911_v55 = vmax.f32 %v623_v27, %v633_v25  ;;  %v486_v50 = vsel %vm483_vm4, 0.0, %v480_v21 }
 0x16c   : > { %v651_v60 = vrot.slane %v1903_v20, 4  ;;  %v653_v26 = vrot.slane %v644_v29, 4  ;;  %v1916_v45 = vmax.f32 %v860_v2, %v1425_v12  ;;  %v897_v42 = vmax.f32 %v861_v24, %v1426_v10 }
 0x16d   : > { %v487_v57 = vsel %vm484_vm5, 0.0, %v481_v15  ;;  %v476_v51 = vmax.f32 %v1806_v44, %v468_v22  ;;  %v493_v59 = vrot.slane %v486_v50, 4  ;;  %v1436_v44 = vunpack.i.h.bf16 %v1434_v11 }
 0x16e   : > { %v654_v48 = vsel %vm491_vm3, %v651_v60, %v653_v26  ;;  %v656_v32 = vsel %vm491_vm3, %v653_v26, %v655_v54  ;;  %v941_v27 = vrot.slane %v1916_v45, 1  ;;  %v943_v63 = vrot.slane %v897_v42, 1 }
 0x16f   : > { %v1927_v12 = vmax.f32 %v1903_v20, %v654_v48  ;;  %v1929_v8 = vmax.f32 %v644_v29, %v656_v32  ;;  %v495_v10 = vrot.slane %v487_v57, 4  ;;  %v1429_v35 = vpop.permute.xlu0 %1428  ;;  %v479_v49 = vsub.f32 0.0, %v476_v51 }
 0x170   : > { %v1435_v58 = vunpack.i.l.bf16 %v1434_v11  ;;  %v1431_v36 = vunpack.i.h.bf16 %v1429_v35  ;;  %v944_v54 = vsel %vm344_vm8, %v941_v27, %v943_v63  ;;  %v1936_v37 = vmax.f32 %v897_v42, %v943_v63 }
 0x171   : > { %v670_v38 = vrot.slane %v1927_v12, 1  ;;  %v672_v14 = vrot.slane %v1929_v8, 1  ;;  %v1939_v6 = vmax.f32 %v1916_v45, %v944_v54  ;;  %v496_v33 = vsel %vm491_vm3, %v493_v59, %v495_v10 }
 0x172   : > { %vm482_vm6 = vcmp.eq.f32.partialorder %v479_v49, 999.0  ;;  %v932_v5 = vmax.f32 %v1916_v45, %v1435_v58  ;;  %v564_v53 = vrot.slane %v1853_v19, 3  ;;  %v573_v30 = vsub.f32 0.0, %v570_v18 }
 0x173   : > { %v650_v43 = vrot.slane %v1911_v55, 4  ;;  %v1452_v1 = vpack.i.bf16 %v495_v10, %v496_v33  ;;  %v1948_v9 = vsel %vm344_vm8, %v670_v38, %v672_v14  ;;  %v1951_v4 = vsel %vm344_vm8, %v672_v14, %v674_v31 }
 0x174   : > { %v485_v13 = vsel %vm482_vm6, 0.0, %v479_v49  ;;  %v933_v0 = vmax.f32 %v897_v42, %v1436_v44  ;;  %v962_v21 = vrot.slane %v1936_v37, 2  ;;  %v1042_v19 = vrot.slane %v932_v5, 1 }
 0x175   : > { %1453 = vrot.lane.b32.xlu1 %v1452_v1, %s1513_s26  ;;  %v492_v15 = vrot.slane %v485_v13, 4  ;;  %v1430_v18 = vunpack.i.l.bf16 %v1429_v35  ;;  %v931_v28 = vmax.f32 %v1804_v34, %v1431_v36  ;;  %v561_v16 = vsel %vm558_vm2, %v559_v7, %v560_v61 }
 0x176   : > { %v1044_v25 = vrot.slane %v933_v0, 1  ;;  %v565_v29 = vsel %vm558_vm2, %v562_v46, %v564_v53  ;;  %v569_v24 = vmax.f32 %v1870_v52, %v561_v16  ;;  %v681_v46 = vmax.f32 %v1929_v8, %v1951_v4 }
 0x177   : > { %v494_v31 = vsel %vm491_vm3, %v492_v15, %v493_v59  ;;  %v930_v2 = vmax.f32 %v1802_v39, %v1430_v18  ;;  %v571_v22 = vmax.f32 %v1856_v40, %v565_v29  ;;  %v1040_v50 = vrot.slane %v931_v28, 1 }
 0x178   : > { %v1447_v26 = vpack.i.bf16 %v494_v31, %v1664_v3  ;;  %v1045_v23 = vsel %vm344_vm8, %v1042_v19, %v1044_v25  ;;  %v1053_v42 = vmax.f32 %v933_v0, %v1044_v25  ;;  %v572_v7 = vsub.f32 0.0, %v569_v24 }
 0x179   : > { %v1052_v57 = vmax.f32 %v932_v5, %v1045_v23  ;;  %v1039_v61 = vrot.slane %v930_v2, 1  ;;  %v574_v51 = vsub.f32 0.0, %v571_v22  ;;  %v1043_v52 = vsel %vm344_vm8, %v1040_v50, %v1042_v19 }
 0x17a   : > { %1448 = vrot.lane.b32.xlu0 %v1447_v26, %s1513_s26  ;;  %v1063_v39 = vrot.slane %v1053_v42, 2  ;;  %vm576_vm7 = vcmp.eq.f32.partialorder %v573_v30, 999.0  ;;  %v1051_v11 = vmax.f32 %v931_v28, %v1043_v52  ;;  %vm575_vm9 = vcmp.eq.f32.partialorder %v572_v7, 999.0 }
 0x17b   : > { %v1061_v40 = vrot.slane %v1052_v57, 2  ;;  %v1041_v3 = vsel %vm344_vm8, %v1039_v61, %v1040_v50  ;;  %vm577_vm10 = vcmp.eq.f32.partialorder %v574_v51, 999.0  ;;  %v578_v32 = vsel %vm575_vm9, 0.0, %v572_v7 }
 0x17c   : > { %v1050_v48 = vmax.f32 %v930_v2, %v1041_v3  ;;  %v652_v59 = vsel %vm491_vm3, %v650_v43, %v651_v60  ;;  %v1059_v10 = vrot.slane %v1051_v11, 2  ;;  %v579_v35 = vsel %vm576_vm7, 0.0, %v573_v30 }
 0x17d   : > { %v1064_v63 = vsel %vm446_vm15, %v1061_v40, %v1063_v39  ;;  %v580_v49 = vsel %vm577_vm10, 0.0, %v574_v51  ;;  %v960_v44 = vrot.slane %v1939_v6, 2  ;;  %v584_v14 = vrot.slane %v578_v32, 3 }
 0x17e   : > { %v1980_v58 = vmax.f32 %v1052_v57, %v1064_v63  ;;  %v1058_v36 = vrot.slane %v1050_v48, 2  ;;  %v1062_v54 = vsel %vm446_vm15, %v1059_v10, %v1061_v40  ;;  %v585_v33 = vrot.slane %v579_v35, 3 }
 0x17f   : > { %v587_v5 = vrot.slane %v580_v49, 3  ;;  %v661_v53 = vmax.f32 %v1911_v55, %v652_v59  ;;  %v971_v20 = vmax.f32 %v1936_v37, %v962_v21  ;;  %v1072_v60 = vmax.f32 %v1053_v42, %v1063_v39 }
 0x180   : > { %v1060_v43 = vsel %vm446_vm15, %v1058_v36, %v1059_v10  ;;  %v1070_v1 = vmax.f32 %v1051_v11, %v1062_v54  ;;  %v586_v13 = vsel %vm558_vm2, %v584_v14, %v585_v33  ;;  %v1080_v19 = vrot.slane %v1980_v58, 4 }
 0x181   : > { %v1069_v30 = vmax.f32 %v1050_v48, %v1060_v43  ;;  %v588_v0 = vsel %vm558_vm2, %v585_v33, %v587_v5  ;;  %v669_v15 = vrot.slane %v661_v53, 1  ;;  %v680_v28 = vmax.f32 %v1927_v12, %v1948_v9 }
 0x182   : > { %v1078_v18 = vrot.slane %v1070_v1, 4  ;;  %v1457_v25 = vpack.i.bf16 %v588_v0, %v586_v13  ;;  %v942_v16 = vsel %vm344_vm8, %v939_v47, %v941_v27  ;;  %v963_v29 = vsel %vm446_vm15, %v960_v44, %v962_v21 }
 0x183   : > { %v1077_v55 = vrot.slane %v1069_v30, 4  ;;  %v671_v37 = vsel %vm344_vm8, %v669_v15, %v670_v38  ;;  %v683_v24 = vsub.f32 0.0, %v680_v28  ;;  %v950_v9 = vmax.f32 %v1804_v34, %v942_v16 }
 0x184   : > { %v1081_v31 = vsel %vm491_vm3, %v1078_v18, %v1080_v19  ;;  %1458 = vrot.lane.b32.xlu2 %v1457_v25, %s1513_s26  ;;  %v679_v2 = vmax.f32 %v661_v53, %v671_v37  ;;  %v970_v12 = vmax.f32 %v1939_v6, %v963_v29  ;;  %v981_v38 = vrot.slane %v971_v20, 4 }
 0x185   : > { %v1089_v22 = vmax.f32 %v1070_v1, %v1081_v31  ;;  %v1079_v45 = vsel %vm491_vm3, %v1077_v55, %v1078_v18  ;;  %vm686_vm12 = vcmp.eq.f32.partialorder %v683_v24, 999.0  ;;  %v958_v23 = vrot.slane %v950_v9, 2 }
 0x186   : > { %v682_v26 = vsub.f32 0.0, %v679_v2  ;;  %v1088_v47 = vmax.f32 %v1069_v30, %v1079_v45  ;;  %v2005_v27 = vsel %vm686_vm12, 0.0, %v683_v24  ;;  %v979_v21 = vrot.slane %v970_v12, 4 }
 0x187   : > { %v990_v42 = vmax.f32 %v971_v20, %v981_v38  ;;  %v1097_v50 = vrot.slane %v1089_v22, 5  ;;  %v695_v57 = vrot.slane %v2005_v27, 2  ;;  %v961_v34 = vsel %vm446_vm15, %v958_v23, %v960_v44 }
 0x188   : > { %vm685_vm13 = vcmp.eq.f32.partialorder %v682_v26, 999.0  ;;  %v959_v6 = vsel %vm446_vm15, %v957_v17, %v958_v23  ;;  %v1082_v61 = vrot.slane %v1072_v60, 4  ;;  %v969_v51 = vmax.f32 %v950_v9, %v961_v34 }
 0x189   : > { %v688_v7 = vsel %vm685_vm13, 0.0, %v682_v26  ;;  %v982_v39 = vsel %vm491_vm3, %v979_v21, %v981_v38  ;;  %v968_v3 = vmax.f32 %v1825_v62, %v959_v6  ;;  %v1096_v11 = vrot.slane %v1088_v47, 5 }
 0x18a   : > { %v694_v52 = vrot.slane %v688_v7, 2  ;;  %v989_v40 = vmax.f32 %v970_v12, %v982_v39  ;;  %v977_v48 = vrot.slane %v969_v51, 4  ;;  %v1000_v32 = vrot.slane %v990_v42, 3 }
 0x18b   : > { %v1083_v59 = vsel %vm491_vm3, %v1080_v19, %v1082_v61  ;;  %v976_v35 = vrot.slane %v968_v3, 4  ;;  %v1098_v17 = vsel %vm395_vm11, %v1096_v11, %v1097_v50  ;;  %v684_v14 = vsub.f32 0.0, %v681_v46 }
 0x18c   : > { %v696_v63 = vsel %vm446_vm15, %v694_v52, %v695_v57  ;;  %v998_v10 = vrot.slane %v989_v40, 3  ;;  %v980_v44 = vsel %vm491_vm3, %v977_v48, %v979_v21  ;;  %v1106_v36 = vmax.f32 %v1088_v47, %v1098_v17  ;;  %v1142_v47 = vpop.permute.xlu2 %1141 }
 0x18d   : > { %v1467_v49 = vpack.i.bf16 %v696_v63, %v587_v5  ;;  %v1091_v62 = vmax.f32 %v1072_v60, %v1082_v61  ;;  %v988_v54 = vmax.f32 %v969_v51, %v980_v44  ;;  %v978_v53 = vsel %vm491_vm3, %v976_v35, %v977_v48 }
 0x18e   : > { %v1001_v33 = vsel %vm558_vm2, %v998_v10, %v1000_v32  ;;  %v987_v43 = vmax.f32 %v968_v3, %v978_v53  ;;  %v1109_v5 = vsel %vm167_vm0, %v1106_v36, 0.0  ;;  %v1090_v30 = vmax.f32 %v1980_v58, %v1083_v59 }
 0x18f   : > { %1468 = vrot.lane.b32.xlu0 %v1467_v49, %s1513_s26  ;;  %v1007_v20 = vmax.f32 %v989_v40, %v1001_v33  ;;  %v996_v1 = vrot.slane %v988_v54, 3  ;;  %vm687_vm14 = vcmp.eq.f32.partialorder %v684_v14, 999.0  ;;  %v1101_v8 = vrot.slane %v1091_v62, 5 }
 0x190   : > { %v995_v13 = vrot.slane %v987_v43, 3  ;;  %v160_v46 = vadd.s32 16, %v1794_v41  ;;  %v1099_v60 = vrot.slane %v1090_v30, 5  ;;  %v1112_v18 = vpack.c.bf16 %v1109_v5, %v1109_v5 }
 0x191   : > { %v999_v4 = vsel %vm558_vm2, %v996_v1, %v998_v10  ;;  %v1014_v15 = vrot.slane %v1007_v20, 1  ;;  %v690_v28 = vsel %vm687_vm14, 0.0, %v684_v14  ;;  %v1152_v27 = vpack.c.bf16 %v1142_v47, %v1142_v47 }
 0x192   : > { %v1006_v0 = vmax.f32 %v988_v54, %v999_v4  ;;  %v997_v19 = vsel %vm558_vm2, %v995_v13, %v996_v1  ;;  %v1102_v55 = vsel %vm395_vm11, %v1099_v60, %v1101_v8  ;;  %v1100_v37 = vsel %vm395_vm11, %v1097_v50, %v1099_v60 }
 0x193   : > { %v1005_v25 = vmax.f32 %v987_v43, %v997_v19  ;;  %v1108_v16 = vmax.f32 %v1090_v30, %v1102_v55  ;;  %v1107_v29 = vmax.f32 %v1089_v22, %v1100_v37  ;;  %v697_v41 = vrot.slane %v690_v28, 2  ;;  %1274 = vst.msk [vmem:[%s1868_s30 + $0x4c] sm:$0xf] %vm418_vm1, %v1152_v27 }
 0x194   : > { %v1012_v58 = vrot.slane %v1006_v0, 1  ;;  %v2034_v24 = vadd.s32 4294967294, %v160_v46 }
 0x195   : > { %v1011_v31 = vrot.slane %v1005_v25, 1  ;;  %v698_v38 = vsel %vm446_vm15, %v695_v57, %v697_v41  ;;  %v1113_v23 = vpack.c.bf16 %v1107_v29, %v1107_v29 }
 0x196   : > { %v1015_v2 = vsel %vm344_vm8, %v1012_v58, %v1014_v15  ;;  %vm172_vm11 = vcmp.lt.s32.totalorder %v2034_v24, 16  ;;  %v1472_v22 = vpack.i.bf16 %v697_v41, %v698_v38 }
 0x197   : > { %1118 = vrot.lane.b32.xlu0 %v1112_v18, %s1513_s26  ;;  %1018 = vrot.lane.b32.xlu1 %v1015_v2, %s1513_s26  ;;  %v1013_v9 = vsel %vm344_vm8, %v1011_v31, %v1012_v58  ;;  %v1111_v45 = vsel %vm172_vm11, %v1108_v16, 0.0  ;;  %vm421_vm8 = vcmask 123904  }
 0x198   : > { %v1462_v12 = vpack.i.bf16 %v1014_v15, %v1013_v9  ;;  %v1114_v26 = vpack.c.bf16 %v1111_v45, %v1111_v45 }
 0x19a   : > { %1463 = vrot.lane.b32.xlu2 %v1462_v12, %s1513_s26  ;;  %v1439_v21 = vpop.permute.xlu0 %1438 }
 0x19b   : > { %v1441_v42 = vunpack.i.h.bf16 %v1439_v21  ;;  %v1440_v50 = vunpack.i.l.bf16 %v1439_v21 }
 0x19d   : > { %v1150_v57 = vsel %vm172_vm11, %v1441_v42, 0.0  ;;  %v1148_v34 = vsel %vm167_vm0, %v1440_v50, 0.0 }
 0x19e   : > { %v1153_v6 = vpack.c.bf16 %v1150_v57, %v1150_v57  ;;  %v1151_v61 = vpack.c.bf16 %v1148_v34, %v1148_v34 }
 0x19f   : > { %1473 = vrot.lane.b32.xlu1 %v1472_v22, %s1513_s26 }
 0x1a0   : > { %1275 = vst.msk [vmem:[%s1868_s30 + $0x50] sm:$0x3] %vm421_vm8, %v1153_v6 }
 0x1a1   : > { %1273 = vst.msk [vmem:[%s1868_s30 + $0x48] sm:$0xf] %vm418_vm1, %v1151_v61 }
 0x1a2   : > { %1122 = vrot.lane.b32.xlu2 %v1114_v26, %s1513_s26 }
 0x1a7   : > { %1120 = vrot.lane.b32.xlu1 %v1113_v23, %s1513_s26 }
 0x1de   : > { %v1459_v7 = vpop.permute.xlu2 %1458 }
 0x1df   : > { %v1461_v51 = vunpack.i.h.bf16 %v1459_v7  ;;  %v1460_v39 = vunpack.i.l.bf16 %v1459_v7 }
 0x1e1   : > { %v602_v52 = vpack.c.bf16 %v1461_v51, %v1461_v51  ;;  %v598_v40 = vsel %vm167_vm0, %v1460_v39, 0.0 }
 0x1e2   : > { %v601_v3 = vpack.c.bf16 %v598_v40, %v598_v40 }
 0x1e3   : > { %1262 = vst.msk [vmem:[%s1868_s30 + $0x1c] sm:$0xf] %vm418_vm1, %v602_v52 }
 0x1e4   : > { %1261 = vst.msk [vmem:[%s1868_s30 + $0x18] sm:$0xf] %vm418_vm1, %v601_v3 }
 0x1e7   : > { %v1454_v11 = vpop.permute.xlu1 %1453 }
 0x1e8   : > { %v1456_v48 = vunpack.i.h.bf16 %v1454_v11  ;;  %v1455_v32 = vunpack.i.l.bf16 %v1454_v11 }
 0x1ea   : > { %v508_v59 = vsel %vm172_vm11, %v1456_v48, 0.0  ;;  %v510_v63 = vpack.c.bf16 %v1455_v32, %v1455_v32 }
 0x1eb   : > { %v511_v10 = vpack.c.bf16 %v508_v59, %v508_v59 }
 0x1ec   : > { %1259 = vst.msk [vmem:[%s1868_s30 + $0x10] sm:$0xf] %vm418_vm1, %v510_v63  ;;  %v1449_v35 = vpop.permute.xlu0 %1448 }
 0x1ed   : > { %1260 = vst.msk [vmem:[%s1868_s30 + $0x14] sm:$0x3] %vm421_vm8, %v511_v10  ;;  %v1451_v17 = vunpack.i.h.bf16 %v1449_v35  ;;  %v1450_v49 = vunpack.i.l.bf16 %v1449_v35 }
 0x1ef   : > { %v506_v44 = vsel %vm167_vm0, %v1451_v17, 0.0  ;;  %v414_v36 = vsel %vm172_vm11, %v1450_v49, 0.0 }
 0x1f0   : > { %v509_v14 = vpack.c.bf16 %v506_v44, %v506_v44  ;;  %v417_v62 = vpack.c.bf16 %v414_v36, %v414_v36 }
 0x1f2   : > { %1258 = vst.msk [vmem:[%s1868_s30 + $0xc] sm:$0xf] %vm418_vm1, %v509_v14 }
 0x1f3   : > { %422 = vst.msk [vmem:[%s1868_s30 + $0x8] sm:$0x3] %vm421_vm8, %v417_v62 }
 0x1f4   : > { %v1464_v54 = vpop.permute.xlu2 %1463 }
 0x1f5   : > { %v1466_v33 = vunpack.i.h.bf16 %v1464_v54  ;;  %v1465_v53 = vunpack.i.l.bf16 %v1464_v54 }
 0x1f7   : > { %v1027_v20 = vsel %vm172_vm11, %v1466_v33, 0.0  ;;  %v1025_v43 = vsel %vm167_vm0, %v1465_v53, 0.0 }
 0x1f8   : > { %v1030_v1 = vpack.c.bf16 %v1027_v20, %v1027_v20  ;;  %v1028_v5 = vpack.c.bf16 %v1025_v43, %v1025_v43 }
 0x1fa   : > { %1269 = vst.msk [vmem:[%s1868_s30 + $0x38] sm:$0x3] %vm421_vm8, %v1030_v1 }
 0x1fb   : > { %1267 = vst.msk [vmem:[%s1868_s30 + $0x30] sm:$0xf] %vm418_vm1, %v1028_v5 }
 0x1fc   : > { %v1123_v30 = vpop.permute.xlu2 %1122 }
 0x1fd   : > { %1272 = vst.msk [vmem:[%s1868_s30 + $0x44] sm:$0x3] %vm421_vm8, %v1123_v30 }
 0x201   : > { %v1469_v13 = vpop.permute.xlu0 %1468 }
 0x202   : > { %v1471_v8 = vunpack.i.h.bf16 %v1469_v13  ;;  %v1470_v4 = vunpack.i.l.bf16 %v1469_v13 }
 0x204   : > { %v708_v46 = vsel %vm167_vm0, %v1471_v8, 0.0  ;;  %v600_v60 = vsel %vm172_vm11, %v1470_v4, 0.0 }
 0x205   : > { %v711_v0 = vpack.c.bf16 %v708_v46, %v708_v46  ;;  %v603_v15 = vpack.c.bf16 %v600_v60, %v600_v60 }
 0x207   : > { %1264 = vst.msk [vmem:[%s1868_s30 + $0x24] sm:$0xf] %vm418_vm1, %v711_v0 }
 0x208   : > { %1263 = vst.msk [vmem:[%s1868_s30 + $0x20] sm:$0x3] %vm421_vm8, %v603_v15 }
 0x209   : > { %v1119_v19 = vpop.permute.xlu0 %1118  ;;  %v1019_v18 = vpop.permute.xlu1 %1018 }
 0x20a   : > { %1270 = vst.msk [vmem:[%s1868_s30 + $0x3c] sm:$0xf] %vm418_vm1, %v1119_v19  ;;  %v1029_v25 = vpack.c.bf16 %v1019_v18, %v1019_v18 }
 0x20c   : > { %1268 = vst.msk [vmem:[%s1868_s30 + $0x34] sm:$0xf] %vm418_vm1, %v1029_v25 }
 0x211   : > { %v1474_v56 = vpop.permute.xlu1 %1473 }
 0x212   : > { %v1476_v28 = vunpack.i.h.bf16 %v1474_v56  ;;  %v1475_v55 = vunpack.i.l.bf16 %v1474_v56 }
 0x214   : > { %v710_v37 = vsel %vm172_vm11, %v1476_v28, 0.0  ;;  %v712_v58 = vpack.c.bf16 %v1475_v55, %v1475_v55 }
 0x215   : > { %v713_v16 = vpack.c.bf16 %v710_v37, %v710_v37 }
 0x216   : > { %1265 = vst.msk [vmem:[%s1868_s30 + $0x28] sm:$0xf] %vm418_vm1, %v712_v58 }
 0x217   : > { %1266 = vst.msk [vmem:[%s1868_s30 + $0x2c] sm:$0x3] %vm421_vm8, %v713_v16 }
 0x219   : > { %v1121_v29 = vpop.permute.xlu1 %1120 }
 0x21a   : > { %1271 = vst.msk [vmem:[%s1868_s30 + $0x40] sm:$0xf] %vm418_vm1, %v1121_v29 }
 0x21b PF: > { %s11_s8 = sadd.s32 1, %s1499_s8   ;;  %s2117_s6 = smov %s1495_s7 }
 0x21c   : > { %p8_p5 = scmp.ge.s32.totalorder %s11_s8, 4   ;;  %s2118_s7 = smov %s2120_s9 }
 0x21e   :  { %10 = sbr.rel (!%p8_p5) target bundleno = 2 (0x2), region = 60 }

// kernel: s2d_forward.3
= control target key start
LH: loop header
LB: loop body
LE: loop exit
PB: predicated region body
PF: predicated region fallthrough
CT: control target
= control target key end

     0   :  { %s2254_s27 = smov 0   ;;  %s2256_s28 = smov 0   ;;  %s2777_s0 = inlined_call_operand.vmem [shape: bf16[2,1,7,320], index: 0, kind: input, shape index: {}]   ;;  %s2778_s1 = inlined_call_operand.vmem [shape: bf16[1,3,320], index: 1, kind: input, shape index: {}]   ;;  %s2779_s2 = inlined_call_operand.vmem [shape: f32[8,6], index: 2, kind: input, shape index: {}]   ;;  %s2780_s3 = inlined_call_operand.vmem [shape: f32[8,1], index: 3, kind: input, shape index: {}]   ;;  %s2781_s4 = inlined_call_operand.vmem [shape: f32[16,8], index: 4, kind: input, shape index: {}]   ;;  %s2782_s5 = inlined_call_operand.vmem [shape: f32[16,1], index: 5, kind: input, shape index: {}]   ;;  %s2783_s6 = inlined_call_operand.vmem [shape: f32[9,32,17], index: 6, kind: input, shape index: {}]   ;;  %s2784_s7 = inlined_call_operand.vmem [shape: f32[32,1], index: 7, kind: input, shape index: {}]   ;;  %s2785_s8 = inlined_call_operand.vmem [shape: f32[2,32,256], index: 8, kind: output, shape index: {}]  }
   0x1   :  { %s2258_s29 = smov 0  }
   0x2 LB: > { %s30_s30 = sadd.s32 1, %s2193_s28  ;;  %p1861_p0 = scmp.ge.s32.totalorder %s2197_s29, 1  ;;  %s2197_s29 = sphi %s2258_s29, %s18_s29   ;;  %s2193_s28 = sphi %s2256_s28, %s2787_s28   ;;  %s2189_s27 = sphi %s2254_s27, %s2786_s27  }
   0x3   : > { %p32_p1 = scmp.ge.s32.totalorder %s30_s30, 2  ;;  %p292_p2 = scmp.lt.s32.totalorder %s2197_s29, 3 }
   0x5   : > { %s2789_s30 = smov (%p32_p1, %s30_s30), 0  ;;  %p293_p3 = pnand %p1861_p0, %p292_p2 }
   0x6   : > { %p339_p4 = scmp.lt.s32.totalorder (!%p293_p3), %s2189_s27, 1  ;;  %s2200_s9 = smov (!%p293_p3), 112  }
   0x7   : > { %296 = sbr.rel (%p293_p3) target bundleno = 726 (0x2d6), region = 52  ;;  %s2201_s10 = smov (!%p293_p3), 111  }
   0x8   : > { %s2203_s12 = smov (!%p293_p3), 96   ;;  %s2204_s13 = smov (!%p293_p3), 97  }
   0x9   : > { %s2206_s15 = smov (!%p293_p3), 95   ;;  %s2207_s16 = smov (!%p293_p3), 79  }
   0xa   : > { %s2208_s17 = smov (!%p293_p3), 80  }
   0xc   : > { %v369_v0 = vld [vmem:[%s2780_s3] sm:$0xff]  ;;  %v2199_v1 = vmov 0   ;;  %s2791_s27 = smov (!%p339_p4, %s2189_s27), 1  ;;  %vm379_vm0 = vcmask 1045504   ;;  %vm375_vm1 = vcmask 48128   ;;  %v461_v8 = vld [vmem:[%s2782_s5 + $0x8] sm:$0xff] }
   0xd   : > { %2037 = vset.pattern.permute.xlu0 %v2199_v1  ;;  %2038 = vset.pattern.permute.xlu1 %v2199_v1  ;;  %s2002_s11 = smul.u32 12, %s2791_s27  ;;  %v368_v7 = vld [vmem:[%s2779_s2] sm:$0xff]  ;;  %vm472_vm3 = vcmask 64512   ;;  %v459_v23 = vld [vmem:[%s2781_s4 + $0x8] sm:$0xff]  ;;  %vm667_vm12 = vcmask 916480   ;;  %vm691_vm13 = vcmask 1040384  }
   0xe   : > { %372 = vperm.xlu0 %2037, %v369_v0   ;;  %2174 = vset.pattern.permute.xlu2 %v2199_v1  ;;  %v460_v9 = vld [vmem:[%s2782_s5] sm:$0xff]  ;;  %vm678_vm14 = vcmask 138240   ;;  %vm898_vm15 = vcmask 908288   ;;  %s2001_s26 = sshll.u32 %s2791_s27, 6 }
   0xf   : > { %s347_s14 = scalar_lea.vmem %s2777_s0, %s2002_s11  ;;  %464 = vperm.xlu1 %2038, %v460_v9   ;;  %v458_v14 = vld [vmem:[%s2781_s4] sm:$0xff]  ;;  %s2202_s11 = smov 113  }
  0x10   : > { %v363_v2 = vld [vmem:[%s347_s14] sm:$0xff]  ;;  %v364_v3 = vld [vmem:[%s347_s14 + $0x8] sm:$0xf]  ;;  %s2205_s14 = smov 81  }
  0x11   : > { %v365_v4 = vunpack.c.l.bf16 %v363_v2  ;;  %v366_v5 = vunpack.c.h.bf16 %v363_v2  ;;  %v367_v6 = vunpack.c.l.bf16 %v364_v3  ;;  %v572_v25 = vld [vmem:[%s2778_s1] sm:$0x3f] }
  0x12   : > { %v573_v26 = vunpack.c.l.bf16 %v572_v25  ;;  %v2315_v33 = vunpack.c.h.bf16 %v572_v25 }
  0x13   : > { %1865 = vmatpush.msk.msra.mxu1 %vm379_vm0, %v365_v4  ;;  %1869 = vmatpush.msk.msra.mxu2 %vm379_vm0, %v367_v6  ;;  %v2305_v27 = vrot.slane %v366_v5, 6  ;;  %v2313_v32 = vrot.slane %v365_v4, 6  ;;  %v2319_v34 = vrot.slane %v367_v6, 6 }
  0x14   : > { %1866 = vmatmul.msk.f32.vlgmr.msra.gmra.mxu1 %vm375_vm1, %v368_v7  ;;  %1870 = vmatmul.msk.f32.vlgmr.msra.gmra.mxu2 %vm375_vm1, %v368_v7  ;;  %v596_v28 = vperm.slane %v573_v26, 5  ;;  %v595_v30 = vperm.slane %v573_v26, 1  ;;  %v597_v36 = vperm.slane %v2315_v33, 1  ;;  %v577_v41 = vperm.slane %v573_v26, 0 }
  0x15   : > { %1867 = vmatpush.msk.msrb.mxu1 %vm379_vm0, %v366_v5  ;;  %v578_v49 = vperm.slane %v573_v26, 4  ;;  %v615_v53 = vperm.slane %v2315_v33, 2  ;;  %v614_v55 = vperm.slane %v573_v26, 6  ;;  %v613_v59 = vperm.slane %v573_v26, 2 }
  0x16   : > { %469 = vperm.xlu0 %2037, %v461_v8   ;;  %v2307_v29 = vperm.slane %v596_v28, 1  ;;  %v2321_v35 = vperm.slane %v595_v30, 1  ;;  %v603_v37 = vperm.slane %v597_v36, 1  ;;  %v2335_v43 = vperm.slane %v577_v41, 0 }
  0x17   : > { %v2342_v57 = vperm.slane %v578_v49, 0  ;;  %v621_v2 = vperm.slane %v615_v53, 2  ;;  %v620_v3 = vperm.slane %v614_v55, 2  ;;  %vm781_vm0 = vcmask 924672  }
  0x18   : > { %v2311_v31 = vmul.f32 %v2307_v29, %v2305_v27  ;;  %v2326_v38 = vmul.f32 %v2321_v35, %v2313_v32  ;;  %v2331_v39 = vmul.f32 %v603_v37, %v2319_v34  ;;  %v2339_v47 = vmul.f32 %v2335_v43, %v2313_v32 }
  0x19   : > { %v2346_v0 = vmul.f32 %v2342_v57, %v2305_v27  ;;  %v2363_v25 = vmul.f32 %v620_v3, %v2305_v27  ;;  %v579_v27 = vperm.slane %v2315_v33, 0 }
  0x1a   : > { %663 = vrot.lane.b32.xlu2 %v2311_v31, %s2200_s9  ;;  %661 = vrot.lane.b32.xlu1 %v2326_v38, %s2200_s9 }
  0x1c   : > { %1868 = vmatmul.msk.f32.vlgmr.msrb.gmra.mxu1 %vm375_vm1, %v368_v7  ;;  %v619_v7 = vperm.slane %v613_v59, 2  ;;  %vm1130_vm1 = vcmask 785408  }
  0x22   : > { %665 = vrot.lane.b32.xlu2 %v2331_v39, %s2200_s9 }
  0x80   : > { %v373_v10 = vpop.permute.xlu0 %372 }
  0x81   : > { %v465_v42 = vpop.permute.xlu1 %464 }
  0x88   : > { %v470_v51 = vpop.permute.xlu0 %469 }
  0x8c   : > { %v662_v53 = vpop.permute.xlu1 %661 }
  0x91   : > { %v406_v11 = vpop.f32.mrf.mxu1 }
  0x92   : > { %v407_v12 = vadd.f32 %v406_v11, %v373_v10 }
  0x94   : > { %vm449_vm2 = vcmp.gt.f32.partialorder %v407_v12, 0.0  ;;  %v452_v13 = vmul.f32 0.2, %v407_v12 }
  0x96   : > { %v455_v15 = vsel %vm449_vm2, %v407_v12, %v452_v13  ;;  %vm1014_vm2 = vcmask 793600  }
  0x97   : > { %v446_v16 = vpop.f32.mrf.mxu2  ;;  %494 = vmatpush.msra.mxu0 %v455_v15 }
  0x98   : > { %v447_v17 = vadd.f32 %v446_v16, %v373_v10  ;;  %1871 = vmatmul.msk.f32.vlgmr.msra.gmra.mxu0 %vm472_vm3, %v458_v14 }
  0x99   : > { %v426_v18 = vpop.f32.mrf.mxu1 }
  0x9a   : > { %vm451_vm4 = vcmp.gt.f32.partialorder %v447_v17, 0.0  ;;  %v454_v19 = vmul.f32 0.2, %v447_v17  ;;  %v427_v20 = vadd.f32 %v426_v18, %v373_v10 }
  0x9c   : > { %v457_v21 = vsel %vm451_vm4, %v447_v17, %v454_v19  ;;  %vm450_vm5 = vcmp.gt.f32.partialorder %v427_v20, 0.0  ;;  %v453_v22 = vmul.f32 0.2, %v427_v20  ;;  %vm1246_vm4 = vcmask 777216  }
  0x9d   : > { %540 = vmatpush.msra.mxu1 %v457_v21 }
  0x9e   : > { %1875 = vmatmul.msk.f32.vlgmr.msra.gmra.mxu1 %vm472_vm3, %v458_v14  ;;  %v456_v24 = vsel %vm450_vm5, %v427_v20, %v453_v22  ;;  %vm1594_vm5 = vcmask 646144  }
  0x9f   : > { %517 = vmatpush.msrb.mxu0 %v456_v24 }
  0xa0   : > { %1872 = vmatmul.msk.f32.gmra.mxu0 %vm472_vm3, %v459_v23 }
  0xa6   : > { %1876 = vmatmul.msk.f32.gmra.mxu1 %vm472_vm3, %v459_v23 }
  0xa8   : > { %1873 = vmatmul.msk.f32.vlgmr.msrb.gmra.mxu0 %vm472_vm3, %v458_v14 }
  0xb0   : > { %1874 = vmatmul.msk.f32.gmra.mxu0 %vm472_vm3, %v459_v23  ;;  %vm1362_vm3 = vcmask 662528  }
 0x115   : > { %v496_v40 = vpop.f32.mrf.mxu0 }
 0x116   : > { %v497_v45 = vadd.f32 %v496_v40, %v465_v42 }
 0x118   : > { %v554_v50 = vmul.f32 0.2, %v497_v45  ;;  %vm548_vm6 = vcmp.gt.f32.partialorder %v497_v45, 0.0 }
 0x11a   : > { %v560_v58 = vsel %vm548_vm6, %v497_v45, %v554_v50  ;;  %vm1478_vm6 = vcmask 654336  }
 0x11b   : > { %v542_v44 = vpop.f32.mrf.mxu1  ;;  %v604_v6 = vmul.f32 %v2321_v35, %v560_v58  ;;  %v622_v16 = vmul.f32 %v619_v7, %v560_v58  ;;  %v586_v33 = vmul.f32 %v2335_v43, %v560_v58 }
 0x11c   : > { %v543_v48 = vadd.f32 %v542_v44, %v465_v42 }
 0x11d   : > { %v499_v46 = vpop.f32.mrf.mxu0 }
 0x11e   : > { %v556_v52 = vmul.f32 0.2, %v543_v48  ;;  %vm550_vm7 = vcmp.gt.f32.partialorder %v543_v48, 0.0  ;;  %v500_v60 = vadd.f32 %v499_v46, %v470_v51 }
 0x120   : > { %v562_v1 = vsel %vm550_vm7, %v543_v48, %v556_v52  ;;  %vm551_vm10 = vcmp.gt.f32.partialorder %v500_v60, 0.0  ;;  %v557_v10 = vmul.f32 0.2, %v500_v60 }
 0x121   : > { %v606_v9 = vmul.f32 %v603_v37, %v562_v1  ;;  %v624_v17 = vmul.f32 %v621_v2, %v562_v1 }
 0x122   : > { %v563_v20 = vsel %vm551_vm10, %v500_v60, %v557_v10 }
 0x123   : > { %v545_v54 = vpop.f32.mrf.mxu1  ;;  %v607_v28 = vmul.f32 %v2321_v35, %v563_v20  ;;  %v625_v40 = vmul.f32 %v619_v7, %v563_v20  ;;  %v585_v35 = vperm.slane %v579_v27, 0 }
 0x124   : > { %v546_v56 = vadd.f32 %v545_v54, %v470_v51 }
 0x125   : > { %v519_v61 = vpop.f32.mrf.mxu0  ;;  %v594_v44 = vmul.f32 %v585_v35, %v2319_v34  ;;  %v588_v46 = vmul.f32 %v585_v35, %v562_v1 }
 0x126   : > { %vm553_vm8 = vcmp.gt.f32.partialorder %v546_v56, 0.0  ;;  %v559_v62 = vmul.f32 0.2, %v546_v56  ;;  %v520_v63 = vadd.f32 %v519_v61, %v465_v42 }
 0x128   : > { %v565_v4 = vsel %vm553_vm8, %v546_v56, %v559_v62  ;;  %vm549_vm9 = vcmp.gt.f32.partialorder %v520_v63, 0.0  ;;  %v555_v5 = vmul.f32 0.2, %v520_v63 }
 0x129   : > { %v609_v8 = vmul.f32 %v603_v37, %v565_v4  ;;  %v627_v12 = vmul.f32 %v621_v2, %v565_v4  ;;  %v2368_v37 = vmul.f32 %v621_v2, %v2319_v34  ;;  %v591_v45 = vmul.f32 %v585_v35, %v565_v4 }
 0x12a   : > { %v561_v11 = vsel %vm549_vm9, %v520_v63, %v555_v5  ;;  %v589_v34 = vmul.f32 %v2335_v43, %v563_v20  ;;  %v664_v43 = vpop.permute.xlu2 %663 }
 0x12b   : > { %v605_v13 = vmul.f32 %v2307_v29, %v561_v11  ;;  %v623_v14 = vmul.f32 %v620_v3, %v561_v11  ;;  %v2350_v15 = vpack.i.bf16 %v604_v6, %v609_v8  ;;  %v2358_v22 = vpack.i.bf16 %v622_v16, %v627_v12  ;;  %v1878_v12 = vld [vmem:[%s2783_s6 + $0x28] sm:$0xff] }
 0x12c   : > { %v2064_v48 = vpack.i.bf16 %v586_v33, %v591_v45  ;;  %v672_v54 = vsel %vm667_vm12, %v662_v53, %v664_v43 }
 0x12d   : > { %v522_v18 = vpop.f32.mrf.mxu0  ;;  %2045 = vrot.lane.b32.xlu1 %v2350_v15, %s2200_s9  ;;  %v2354_v19 = vpack.i.bf16 %v606_v9, %v605_v13  ;;  %v2360_v23 = vpack.i.bf16 %v624_v17, %v623_v14  ;;  %1881 = vmatpush.msk.msrb.mxu2 %vm691_vm13, %v672_v54  ;;  %v1901_v54 = vld [vmem:[%s2783_s6 + $0x40] sm:$0xff] }
 0x12e   : > { %v523_v21 = vadd.f32 %v522_v18, %v470_v51  ;;  %v1687_v18 = vld [vmem:[%s2784_s7] sm:$0xff] }
 0x12f   : > { %2050 = vrot.lane.b32.xlu2 %v2354_v19, %s2200_s9 }
 0x130   : > { %vm552_vm11 = vcmp.gt.f32.partialorder %v523_v21, 0.0  ;;  %v558_v24 = vmul.f32 0.2, %v523_v21 }
 0x132   : > { %v564_v26 = vsel %vm552_vm11, %v523_v21, %v558_v24  ;;  %v666_v52 = vpop.permute.xlu2 %665 }
 0x133   : > { %v608_v30 = vmul.f32 %v2307_v29, %v564_v26  ;;  %v626_v36 = vmul.f32 %v620_v3, %v564_v26  ;;  %v2380_v29 = vmul.f32 %v619_v7, %v2313_v32  ;;  %v587_v32 = vmul.f32 %v2342_v57, %v561_v11  ;;  %v1688_v11 = vld [vmem:[%s2784_s7 + $0x8] sm:$0xff] }
 0x134   : > { %v590_v50 = vmul.f32 %v2342_v57, %v564_v26  ;;  %v673_v55 = vsel %vm667_vm12, %v664_v43, %v666_v52  ;;  %v631_v43 = vld [vmem:[%s2783_s6] sm:$0xff] }
 0x135   : > { %894 = vrot.lane.b32.xlu1 %v2363_v25, %s2201_s10  ;;  %v2371_v41 = vpack.i.bf16 %v608_v30, %v607_v28  ;;  %v2373_v42 = vpack.i.bf16 %v626_v36, %v625_v40  ;;  %v2069_v49 = vpack.i.bf16 %v588_v46, %v587_v32  ;;  %1886 = vmatpush.msk.msra.mxu3 %vm691_vm13, %v673_v55  ;;  %v1690_v40 = vld [vmem:[%s2784_s7 + $0x18] sm:$0xff] }
 0x136   : > { %v2079_v51 = vpack.i.bf16 %v590_v50, %v589_v34 }
 0x137   : > { %896 = vrot.lane.b32.xlu2 %v2368_v37, %s2201_s10  ;;  %2040 = vrot.lane.b32.xlu0 %v2371_v41, %s2200_s9 }
 0x13d   : > { %2055 = vrot.lane.b32.xlu1 %v2358_v22, %s2201_s10 }
 0x13f   : > { %775 = vrot.lane.b32.xlu2 %v2339_v47, %s2202_s11  ;;  %892 = vrot.lane.b32.xlu0 %v2380_v29, %s2201_s10 }
 0x145   : > { %779 = vrot.lane.b32.xlu1 %v594_v44, %s2202_s11 }
 0x147   : > { %2060 = vrot.lane.b32.xlu2 %v2360_v23, %s2201_s10  ;;  %777 = vrot.lane.b32.xlu0 %v2346_v0, %s2202_s11 }
 0x14d   : > { %2065 = vrot.lane.b32.xlu1 %v2064_v48, %s2202_s11 }
 0x14f   : > { %2070 = vrot.lane.b32.xlu2 %v2069_v49, %s2202_s11  ;;  %2075 = vrot.lane.b32.xlu0 %v2373_v42, %s2201_s10 }
 0x155   : > { %1126 = vrot.lane.b32.xlu1 %v2311_v31, %s2203_s12 }
 0x157   : > { %1128 = vrot.lane.b32.xlu2 %v2331_v39, %s2203_s12  ;;  %2080 = vrot.lane.b32.xlu0 %v2079_v51, %s2202_s11  ;;  %s2744_s11 = scalar_lea.vmem %s2785_s8, %s2001_s26 }
 0x15d   : > { %2085 = vrot.lane.b32.xlu1 %v2350_v15, %s2203_s12 }
 0x15f   : > { %1008 = vrot.lane.b32.xlu2 %v2339_v47, %s2204_s13  ;;  %1124 = vrot.lane.b32.xlu0 %v2326_v38, %s2203_s12 }
 0x165   : > { %1012 = vrot.lane.b32.xlu1 %v594_v44, %s2204_s13 }
 0x167   : > { %2090 = vrot.lane.b32.xlu2 %v2354_v19, %s2203_s12  ;;  %1010 = vrot.lane.b32.xlu0 %v2346_v0, %s2204_s13 }
 0x16d   : > { %2095 = vrot.lane.b32.xlu1 %v2064_v48, %s2204_s13 }
 0x16f   : > { %2100 = vrot.lane.b32.xlu2 %v2069_v49, %s2204_s13  ;;  %2105 = vrot.lane.b32.xlu0 %v2371_v41, %s2203_s12 }
 0x175   : > { %1358 = vrot.lane.b32.xlu1 %v2346_v0, %s2205_s14 }
 0x177   : > { %1360 = vrot.lane.b32.xlu2 %v594_v44, %s2205_s14  ;;  %2110 = vrot.lane.b32.xlu0 %v2079_v51, %s2204_s13 }
 0x17d   : > { %2115 = vrot.lane.b32.xlu1 %v2064_v48, %s2205_s14 }
 0x17f   : > { %1240 = vrot.lane.b32.xlu2 %v2380_v29, %s2206_s15  ;;  %1356 = vrot.lane.b32.xlu0 %v2339_v47, %s2205_s14 }
 0x185   : > { %1244 = vrot.lane.b32.xlu1 %v2368_v37, %s2206_s15 }
 0x187   : > { %2120 = vrot.lane.b32.xlu2 %v2069_v49, %s2205_s14  ;;  %1242 = vrot.lane.b32.xlu0 %v2363_v25, %s2206_s15 }
 0x189   : > { %v2051_v56 = vpop.permute.xlu2 %2050 }
 0x18a   : > { %v2053_v0 = vunpack.i.h.bf16 %v2051_v56  ;;  %v2052_v1 = vunpack.i.l.bf16 %v2051_v56 }
 0x18c   : > { %v669_v7 = vsel %vm667_vm12, %v2052_v1, %v2053_v0  ;;  %v1903_v0 = vld [vmem:[%s2783_s6 + $0x50] sm:$0xff] }
 0x18d   : > { %2125 = vrot.lane.b32.xlu1 %v2358_v22, %s2206_s15 }
 0x18f   : > { %2130 = vrot.lane.b32.xlu2 %v2360_v23, %s2206_s15  ;;  %2135 = vrot.lane.b32.xlu0 %v2079_v51, %s2205_s14 }
 0x191   : > { %v897_v47 = vpop.permute.xlu2 %896 }
 0x195   : > { %1590 = vrot.lane.b32.xlu1 %v2363_v25, %s2207_s16 }
 0x197   : > { %1592 = vrot.lane.b32.xlu2 %v2368_v37, %s2207_s16  ;;  %2140 = vrot.lane.b32.xlu0 %v2373_v42, %s2206_s15 }
 0x199   : > { %v776_v57 = vpop.permute.xlu2 %775 }
 0x19d   : > { %2145 = vrot.lane.b32.xlu1 %v2358_v22, %s2207_s16 }
 0x19f   : > { %1472 = vrot.lane.b32.xlu2 %v2326_v38, %s2208_s17  ;;  %1588 = vrot.lane.b32.xlu0 %v2380_v29, %s2207_s16  ;;  %v2046_v58 = vpop.permute.xlu1 %2045 }
 0x1a0   : > { %v2047_v62 = vunpack.i.l.bf16 %v2046_v58  ;;  %v2048_v2 = vunpack.i.h.bf16 %v2046_v58  ;;  %v632_v58 = vld [vmem:[%s2783_s6 + $0x8] sm:$0xff] }
 0x1a1   : > { %v2423_v59 = vpop.permute.xlu2 %2060 }
 0x1a2   : > { %v668_v6 = vsel %vm667_vm12, %v2048_v2, %v2052_v1  ;;  %v2063_v28 = vunpack.i.h.bf16 %v2423_v59  ;;  %v2062_v30 = vunpack.i.l.bf16 %v2423_v59  ;;  %v1902_v59 = vld [vmem:[%s2783_s6 + $0x48] sm:$0xff] }
 0x1a4   : > { %v900_v27 = vsel %vm898_vm15, %v2062_v30, %v2063_v28 }
 0x1a5   : > { %1476 = vrot.lane.b32.xlu1 %v2331_v39, %s2208_s17 }
 0x1a7   : > { %2150 = vrot.lane.b32.xlu2 %v2360_v23, %s2207_s16  ;;  %1474 = vrot.lane.b32.xlu0 %v2311_v31, %s2208_s17  ;;  %v895_v60 = vpop.permute.xlu1 %894  ;;  %v1877_v31 = vld [vmem:[%s2783_s6 + $0x20] sm:$0xff] }
 0x1a8   : > { %v904_v8 = vsel %vm898_vm15, %v895_v60, %v897_v47 }
 0x1a9   : > { %v2041_v61 = vpop.permute.xlu0 %2040  ;;  %v2433_v5 = vpop.permute.xlu2 %2070 }
 0x1aa   : > { %v2043_v63 = vunpack.i.h.bf16 %v2041_v61  ;;  %v2042_v38 = vunpack.i.l.bf16 %v2041_v61  ;;  %v2073_v44 = vunpack.i.h.bf16 %v2433_v5  ;;  %v2072_v45 = vunpack.i.l.bf16 %v2433_v5 }
 0x1ac   : > { %v670_v3 = vsel %vm667_vm12, %v2042_v38, %v2043_v63  ;;  %v671_v4 = vsel %vm667_vm12, %v2043_v63, %v2047_v62  ;;  %v783_v53 = vsel %vm781_vm0, %v2072_v45, %v2073_v44  ;;  %v633_v38 = vld [vmem:[%s2783_s6 + $0x10] sm:$0xff] }
 0x1ad   : > { %710 = vmatpush.msrb.mxu2 %v670_v3  ;;  %739 = vmatpush.msra.mxu3 %v671_v4 }
 0x1ae   : > { %2165 = vrot.lane.b32.xlu1 %v2350_v15, %s2208_s17 }
 0x1af   : > { %2170 = vrot.lane.b32.xlu2 %v2354_v19, %s2208_s17  ;;  %2155 = vrot.lane.b32.xlu0 %v2373_v42, %s2207_s16  ;;  %v2056_v39 = vpop.permute.xlu1 %2055  ;;  %v1879_v19 = vld [vmem:[%s2783_s6 + $0x30] sm:$0xff]  ;;  %v1880_v42 = vld [vmem:[%s2783_s6 + $0x38] sm:$0xff] }
 0x1b0   : > { %711 = vmatpush.msrb.mxu2 %v668_v6  ;;  %740 = vmatpush.msra.mxu3 %v669_v7  ;;  %v2058_v23 = vunpack.i.h.bf16 %v2056_v39  ;;  %v2057_v24 = vunpack.i.l.bf16 %v2056_v39 }
 0x1b1   : > { %1882 = vmatmul.msk.f32.vlgmr.msrb.gmra.mxu2 %vm678_vm14, %v1877_v31  ;;  %1887 = vmatmul.msk.f32.vlgmr.msra.gmra.mxu3 %vm678_vm14, %v1877_v31  ;;  %v893_v9 = vpop.permute.xlu0 %892  ;;  %v1129_v13 = vpop.permute.xlu2 %1128 }
 0x1b2   : > { %v903_v10 = vsel %vm898_vm15, %v893_v9, %v895_v60  ;;  %1910 = vmatpush.msk.msrb.mxu3 %vm691_vm13, %v904_v8 }
 0x1b3   : > { %1905 = vmatpush.msk.msra.mxu2 %vm691_vm13, %v903_v10  ;;  %v634_v10 = vld [vmem:[%s2783_s6 + $0x18] sm:$0xff] }
 0x1b6   : > { %1698 = vperm.xlu1 %2038, %v1688_v11  }
 0x1b7   : > { %2160 = vrot.lane.b32.xlu0 %v2371_v41, %s2208_s17  ;;  %v780_v14 = vpop.permute.xlu1 %779  ;;  %v899_v41 = vsel %vm898_vm15, %v2058_v23, %v2062_v30 }
 0x1b9   : > { %1883 = vmatmul.msk.f32.gmra.mxu2 %vm678_vm14, %v1878_v12  ;;  %1888 = vmatmul.msk.f32.gmra.mxu3 %vm678_vm14, %v1878_v12  ;;  %v778_v15 = vpop.permute.xlu0 %777  ;;  %v2472_v21 = vpop.permute.xlu2 %1008 }
 0x1ba   : > { %v786_v16 = vsel %vm781_vm0, %v776_v57, %v778_v15  ;;  %v787_v17 = vsel %vm781_vm0, %v778_v15, %v780_v14 }
 0x1bb   : > { %1891 = vmatpush.msk.msra.mxu0 %vm691_vm13, %v786_v16  ;;  %1896 = vmatpush.msk.msrb.mxu1 %vm691_vm13, %v787_v17 }
 0x1bf   : > { %1693 = vperm.xlu0 %2037, %v1687_v18   ;;  %v2066_v20 = vpop.permute.xlu1 %2065 }
 0x1c0   : > { %v2068_v32 = vunpack.i.h.bf16 %v2066_v20  ;;  %v2067_v46 = vunpack.i.l.bf16 %v2066_v20 }
 0x1c1   : > { %1884 = vmatmul.msk.f32.gmra.mxu2 %vm678_vm14, %v1879_v19  ;;  %1889 = vmatmul.msk.f32.gmra.mxu3 %vm678_vm14, %v1879_v19  ;;  %v2076_v22 = vpop.permute.xlu0 %2075  ;;  %v2091_v50 = vpop.permute.xlu2 %2090 }
 0x1c2   : > { %v2078_v25 = vunpack.i.h.bf16 %v2076_v22  ;;  %v2077_v26 = vunpack.i.l.bf16 %v2076_v22  ;;  %v782_v52 = vsel %vm781_vm0, %v2068_v32, %v2072_v45  ;;  %v2093_v3 = vunpack.i.h.bf16 %v2091_v50 }
 0x1c3   : > { %v2092_v4 = vunpack.i.l.bf16 %v2091_v50 }
 0x1c4   : > { %v901_v36 = vsel %vm898_vm15, %v2077_v26, %v2078_v25  ;;  %v902_v37 = vsel %vm898_vm15, %v2078_v25, %v2057_v24  ;;  %v1915_v26 = vld [vmem:[%s2783_s6 + $0x60] sm:$0xff] }
 0x1c5   : > { %939 = vmatpush.msra.mxu2 %v901_v36  ;;  %968 = vmatpush.msrb.mxu3 %v902_v37  ;;  %v1132_v12 = vsel %vm1130_vm1, %v2092_v4, %v2093_v3  ;;  %v1929_v36 = vld [vmem:[%s2783_s6 + $0x80] sm:$0xff] }
 0x1c7   : > { %1708 = vperm.xlu0 %2037, %v1690_v40   ;;  %940 = vmatpush.msra.mxu2 %v899_v41  ;;  %v1127_v29 = vpop.permute.xlu1 %1126 }
 0x1c8   : > { %969 = vmatpush.msrb.mxu3 %v900_v27  ;;  %v1136_v35 = vsel %vm1130_vm1, %v1127_v29, %v1129_v13  ;;  %v1904_v13 = vld [vmem:[%s2783_s6 + $0x58] sm:$0xff]  ;;  %v1916_v27 = vld [vmem:[%s2783_s6 + $0x68] sm:$0xff] }
 0x1c9   : > { %1885 = vmatmul.msk.f32.gmra.mxu2 %vm678_vm14, %v1880_v42  ;;  %1890 = vmatmul.msk.f32.gmra.mxu3 %vm678_vm14, %v1880_v42  ;;  %v2081_v33 = vpop.permute.xlu0 %2080  ;;  %v2510_v57 = vpop.permute.xlu2 %2100 }
 0x1ca   : > { %v2083_v48 = vunpack.i.h.bf16 %v2081_v33  ;;  %v2082_v49 = vunpack.i.l.bf16 %v2081_v33  ;;  %1938 = vmatpush.msk.msra.mxu3 %vm691_vm13, %v1136_v35  ;;  %v2103_v16 = vunpack.i.h.bf16 %v2510_v57  ;;  %v2102_v17 = vunpack.i.l.bf16 %v2510_v57 }
 0x1cc   : > { %v784_v34 = vsel %vm781_vm0, %v2082_v49, %v2083_v48  ;;  %v785_v51 = vsel %vm781_vm0, %v2083_v48, %v2067_v46  ;;  %v1016_v30 = vsel %vm1014_vm2, %v2102_v17, %v2103_v16  ;;  %v1917_v46 = vld [vmem:[%s2783_s6 + $0x70] sm:$0xff] }
 0x1cd   : > { %822 = vmatpush.msra.mxu0 %v784_v34  ;;  %851 = vmatpush.msrb.mxu1 %v785_v51  ;;  %v1931_v48 = vld [vmem:[%s2783_s6 + $0x90] sm:$0xff] }
 0x1cf   : > { %v2086_v55 = vpop.permute.xlu1 %2085  ;;  %823 = vmatpush.msra.mxu0 %v782_v52  ;;  %852 = vmatpush.msrb.mxu1 %v783_v53 }
 0x1d0   : > { %1892 = vmatmul.msk.f32.vlgmr.msra.gmra.mxu0 %vm678_vm14, %v631_v43  ;;  %1897 = vmatmul.msk.f32.vlgmr.msrb.gmra.mxu1 %vm678_vm14, %v631_v43  ;;  %v2088_v31 = vunpack.i.h.bf16 %v2086_v55  ;;  %v2087_v39 = vunpack.i.l.bf16 %v2086_v55 }
 0x1d1   : > { %1906 = vmatmul.msk.f32.vlgmr.msra.gmra.mxu2 %vm678_vm14, %v1901_v54  ;;  %1911 = vmatmul.msk.f32.vlgmr.msrb.gmra.mxu3 %vm678_vm14, %v1901_v54  ;;  %v1125_v56 = vpop.permute.xlu0 %1124  ;;  %v1361_v1 = vpop.permute.xlu2 %1360 }
 0x1d2   : > { %v1135_v47 = vsel %vm1130_vm1, %v1125_v56, %v1127_v29  ;;  %v1131_v11 = vsel %vm1130_vm1, %v2088_v31, %v2092_v4  ;;  %v1930_v29 = vld [vmem:[%s2783_s6 + $0x88] sm:$0xff] }
 0x1d3   : > { %1933 = vmatpush.msk.msrb.mxu2 %vm691_vm13, %v1135_v47  ;;  %v1918_v47 = vld [vmem:[%s2783_s6 + $0x78] sm:$0xff] }
 0x1d7   : > { %v1013_v60 = vpop.permute.xlu1 %1012 }
 0x1d8   : > { %1893 = vmatmul.msk.f32.gmra.mxu0 %vm678_vm14, %v632_v58  ;;  %1898 = vmatmul.msk.f32.gmra.mxu1 %vm678_vm14, %v632_v58 }
 0x1d9   : > { %1907 = vmatmul.msk.f32.gmra.mxu2 %vm678_vm14, %v1902_v59  ;;  %1912 = vmatmul.msk.f32.gmra.mxu3 %vm678_vm14, %v1902_v59  ;;  %v1011_v61 = vpop.permute.xlu0 %1010  ;;  %v1241_v18 = vpop.permute.xlu2 %1240  ;;  %v1932_v59 = vld [vmem:[%s2783_s6 + $0x98] sm:$0xff] }
 0x1da   : > { %v1019_v62 = vsel %vm1014_vm2, %v2472_v21, %v1011_v61  ;;  %v1020_v63 = vsel %vm1014_vm2, %v1011_v61, %v1013_v60 }
 0x1db   : > { %1919 = vmatpush.msk.msrb.mxu0 %vm691_vm13, %v1019_v62  ;;  %1924 = vmatpush.msk.msra.mxu1 %vm691_vm13, %v1020_v63 }
 0x1df   : > { %v2096_v2 = vpop.permute.xlu1 %2095 }
 0x1e0   : > { %1894 = vmatmul.msk.f32.gmra.mxu0 %vm678_vm14, %v633_v38  ;;  %1899 = vmatmul.msk.f32.gmra.mxu1 %vm678_vm14, %v633_v38  ;;  %v2098_v20 = vunpack.i.h.bf16 %v2096_v2  ;;  %v2097_v21 = vunpack.i.l.bf16 %v2096_v2 }
 0x1e1   : > { %1908 = vmatmul.msk.f32.gmra.mxu2 %vm678_vm14, %v1903_v0  ;;  %1913 = vmatmul.msk.f32.gmra.mxu3 %vm678_vm14, %v1903_v0  ;;  %v2106_v5 = vpop.permute.xlu0 %2105  ;;  %v2121_v42 = vpop.permute.xlu2 %2120 }
 0x1e2   : > { %v2108_v6 = vunpack.i.h.bf16 %v2106_v5  ;;  %v2107_v7 = vunpack.i.l.bf16 %v2106_v5  ;;  %v1015_v28 = vsel %vm1014_vm2, %v2098_v20, %v2102_v17  ;;  %v2123_v50 = vunpack.i.h.bf16 %v2121_v42  ;;  %v1945_v20 = vld [vmem:[%s2783_s6 + $0xb0] sm:$0xff] }
 0x1e3   : > { %v2122_v34 = vunpack.i.l.bf16 %v2121_v42 }
 0x1e4   : > { %v1133_v8 = vsel %vm1130_vm1, %v2107_v7, %v2108_v6  ;;  %v1134_v9 = vsel %vm1130_vm1, %v2108_v6, %v2087_v39  ;;  %v1943_v39 = vld [vmem:[%s2783_s6 + $0xa0] sm:$0xff] }
 0x1e5   : > { %1171 = vmatpush.msrb.mxu2 %v1133_v8  ;;  %1200 = vmatpush.msra.mxu3 %v1134_v9  ;;  %v1364_v58 = vsel %vm1362_vm3, %v2122_v34, %v2123_v50  ;;  %v1957_v8 = vld [vmem:[%s2783_s6 + $0xc0] sm:$0xff] }
 0x1e7   : > { %v1359_v14 = vpop.permute.xlu1 %1358  ;;  %1172 = vmatpush.msrb.mxu2 %v1131_v11  ;;  %1201 = vmatpush.msra.mxu3 %v1132_v12 }
 0x1e8   : > { %v1368_v15 = vsel %vm1362_vm3, %v1359_v14, %v1361_v1  ;;  %1895 = vmatmul.msk.f32.gmra.mxu0 %vm678_vm14, %v634_v10  ;;  %1900 = vmatmul.msk.f32.gmra.mxu1 %vm678_vm14, %v634_v10 }
 0x1e9   : > { %1909 = vmatmul.msk.f32.gmra.mxu2 %vm678_vm14, %v1904_v13  ;;  %1914 = vmatmul.msk.f32.gmra.mxu3 %vm678_vm14, %v1904_v13  ;;  %v2111_v19 = vpop.permute.xlu0 %2110  ;;  %v2131_v32 = vpop.permute.xlu2 %2130  ;;  %v1944_v13 = vld [vmem:[%s2783_s6 + $0xa8] sm:$0xff] }
 0x1ea   : > { %v2113_v22 = vunpack.i.h.bf16 %v2111_v19  ;;  %v2112_v23 = vunpack.i.l.bf16 %v2111_v19  ;;  %1966 = vmatpush.msk.msrb.mxu3 %vm691_vm13, %v1368_v15  ;;  %v2133_v63 = vunpack.i.h.bf16 %v2131_v32  ;;  %v2132_v38 = vunpack.i.l.bf16 %v2131_v32 }
 0x1ec   : > { %v1017_v24 = vsel %vm1014_vm2, %v2112_v23, %v2113_v22  ;;  %v1018_v25 = vsel %vm1014_vm2, %v2113_v22, %v2097_v21  ;;  %v1248_v7 = vsel %vm1246_vm4, %v2132_v38, %v2133_v63  ;;  %v1959_v21 = vld [vmem:[%s2783_s6 + $0xd0] sm:$0xff]  ;;  %v1974_v63 = vld [vmem:[%s2783_s6 + $0xf8] sm:$0xff] }
 0x1ed   : > { %1055 = vmatpush.msrb.mxu0 %v1017_v24  ;;  %1084 = vmatpush.msra.mxu1 %v1018_v25 }
 0x1ef   : > { %v2116_v37 = vpop.permute.xlu1 %2115  ;;  %1056 = vmatpush.msrb.mxu0 %v1015_v28  ;;  %1085 = vmatpush.msra.mxu1 %v1016_v30 }
 0x1f0   : > { %1920 = vmatmul.msk.f32.vlgmr.msrb.gmra.mxu0 %vm678_vm14, %v1915_v26  ;;  %1925 = vmatmul.msk.f32.vlgmr.msra.gmra.mxu1 %vm678_vm14, %v1915_v26  ;;  %v2118_v43 = vunpack.i.h.bf16 %v2116_v37  ;;  %v2117_v52 = vunpack.i.l.bf16 %v2116_v37 }
 0x1f1   : > { %1934 = vmatmul.msk.f32.vlgmr.msrb.gmra.mxu2 %vm678_vm14, %v1929_v36  ;;  %1939 = vmatmul.msk.f32.vlgmr.msra.gmra.mxu3 %vm678_vm14, %v1929_v36  ;;  %v1357_v40 = vpop.permute.xlu0 %1356  ;;  %v1593_v60 = vpop.permute.xlu2 %1592 }
 0x1f2   : > { %v1367_v41 = vsel %vm1362_vm3, %v1357_v40, %v1359_v14  ;;  %v1363_v57 = vsel %vm1362_vm3, %v2118_v43, %v2122_v34  ;;  %v1958_v14 = vld [vmem:[%s2783_s6 + $0xc8] sm:$0xff]  ;;  %v1946_v40 = vld [vmem:[%s2783_s6 + $0xb8] sm:$0xff] }
 0x1f3   : > { %1961 = vmatpush.msk.msra.mxu2 %vm691_vm13, %v1367_v41 }
 0x1f7   : > { %v1245_v35 = vpop.permute.xlu1 %1244 }
 0x1f8   : > { %1921 = vmatmul.msk.f32.gmra.mxu0 %vm678_vm14, %v1916_v27  ;;  %1926 = vmatmul.msk.f32.gmra.mxu1 %vm678_vm14, %v1916_v27 }
 0x1f9   : > { %1935 = vmatmul.msk.f32.gmra.mxu2 %vm678_vm14, %v1930_v29  ;;  %1940 = vmatmul.msk.f32.gmra.mxu3 %vm678_vm14, %v1930_v29  ;;  %v1243_v44 = vpop.permute.xlu0 %1242  ;;  %v1473_v11 = vpop.permute.xlu2 %1472  ;;  %v1960_v29 = vld [vmem:[%s2783_s6 + $0xd8] sm:$0xff] }
 0x1fa   : > { %v1251_v45 = vsel %vm1246_vm4, %v1241_v18, %v1243_v44  ;;  %v1252_v33 = vsel %vm1246_vm4, %v1243_v44, %v1245_v35 }
 0x1fb   : > { %1947 = vmatpush.msk.msra.mxu0 %vm691_vm13, %v1251_v45  ;;  %1952 = vmatpush.msk.msrb.mxu1 %vm691_vm13, %v1252_v33 }
 0x1ff   : > { %v2126_v49 = vpop.permute.xlu1 %2125 }
 0x200   : > { %1922 = vmatmul.msk.f32.gmra.mxu0 %vm678_vm14, %v1917_v46  ;;  %1927 = vmatmul.msk.f32.gmra.mxu1 %vm678_vm14, %v1917_v46  ;;  %v2128_v1 = vunpack.i.h.bf16 %v2126_v49  ;;  %v2127_v2 = vunpack.i.l.bf16 %v2126_v49 }
 0x201   : > { %1936 = vmatmul.msk.f32.gmra.mxu2 %vm678_vm14, %v1931_v48  ;;  %1941 = vmatmul.msk.f32.gmra.mxu3 %vm678_vm14, %v1931_v48  ;;  %v2136_v51 = vpop.permute.xlu0 %2135  ;;  %v2151_v19 = vpop.permute.xlu2 %2150 }
 0x202   : > { %v2138_v53 = vunpack.i.h.bf16 %v2136_v51  ;;  %v2137_v54 = vunpack.i.l.bf16 %v2136_v51  ;;  %v1247_v6 = vsel %vm1246_vm4, %v2128_v1, %v2132_v38  ;;  %v2153_v22 = vunpack.i.h.bf16 %v2151_v19  ;;  %v1971_v51 = vld [vmem:[%s2783_s6 + $0xe0] sm:$0xff]  ;;  %v1988_v38 = vld [vmem:[%s2783_s6 + $0x118] sm:$0xff] }
 0x203   : > { %v2152_v23 = vunpack.i.l.bf16 %v2151_v19 }
 0x204   : > { %v1365_v55 = vsel %vm1362_vm3, %v2137_v54, %v2138_v53  ;;  %v1366_v56 = vsel %vm1362_vm3, %v2138_v53, %v2117_v52  ;;  %v1985_v53 = vld [vmem:[%s2783_s6 + $0x100] sm:$0xff] }
 0x205   : > { %1403 = vmatpush.msra.mxu2 %v1365_v55  ;;  %1432 = vmatpush.msrb.mxu3 %v1366_v56  ;;  %v1596_v27 = vsel %vm1594_vm5, %v2152_v23, %v2153_v22  ;;  %v1972_v56 = vld [vmem:[%s2783_s6 + $0xe8] sm:$0xff] }
 0x207   : > { %v1591_v61 = vpop.permute.xlu1 %1590  ;;  %1404 = vmatpush.msra.mxu2 %v1363_v57  ;;  %1433 = vmatpush.msrb.mxu3 %v1364_v58 }
 0x208   : > { %v1600_v62 = vsel %vm1594_vm5, %v1591_v61, %v1593_v60  ;;  %1923 = vmatmul.msk.f32.gmra.mxu0 %vm678_vm14, %v1918_v47  ;;  %1928 = vmatmul.msk.f32.gmra.mxu1 %vm678_vm14, %v1918_v47  ;;  %v1986_v47 = vld [vmem:[%s2783_s6 + $0x108] sm:$0xff]  ;;  %v1987_v60 = vld [vmem:[%s2783_s6 + $0x110] sm:$0xff] }
 0x209   : > { %1937 = vmatmul.msk.f32.gmra.mxu2 %vm678_vm14, %v1932_v59  ;;  %1942 = vmatmul.msk.f32.gmra.mxu3 %vm678_vm14, %v1932_v59  ;;  %v2141_v0 = vpop.permute.xlu0 %2140  ;;  %v2171_v41 = vpop.permute.xlu2 %2170  ;;  %v1973_v59 = vld [vmem:[%s2783_s6 + $0xf0] sm:$0xff] }
 0x20a   : > { %v2143_v3 = vunpack.i.h.bf16 %v2141_v0  ;;  %v2142_v4 = vunpack.i.l.bf16 %v2141_v0  ;;  %1994 = vmatpush.msk.msra.mxu3 %vm691_vm13, %v1600_v62  ;;  %v2173_v44 = vunpack.i.h.bf16 %v2171_v41  ;;  %v2172_v45 = vunpack.i.l.bf16 %v2171_v41  ;;  %v1689_v0 = vld [vmem:[%s2784_s7 + $0x10] sm:$0xff] }
 0x20b   : > { %1703 = vperm.xlu2 %2174, %v1689_v0  }
 0x20c   : > { %v1249_v5 = vsel %vm1246_vm4, %v2142_v4, %v2143_v3  ;;  %v1250_v31 = vsel %vm1246_vm4, %v2143_v3, %v2127_v2  ;;  %v1480_v52 = vsel %vm1478_vm6, %v2172_v45, %v2173_v44 }
 0x20d   : > { %1287 = vmatpush.msra.mxu0 %v1249_v5  ;;  %1316 = vmatpush.msrb.mxu1 %v1250_v31 }
 0x20f   : > { %v2146_v9 = vpop.permute.xlu1 %2145  ;;  %1288 = vmatpush.msra.mxu0 %v1247_v6  ;;  %1317 = vmatpush.msrb.mxu1 %v1248_v7 }
 0x210   : > { %1948 = vmatmul.msk.f32.vlgmr.msra.gmra.mxu0 %vm678_vm14, %v1943_v39  ;;  %1953 = vmatmul.msk.f32.vlgmr.msrb.gmra.mxu1 %vm678_vm14, %v1943_v39  ;;  %v2148_v25 = vunpack.i.h.bf16 %v2146_v9  ;;  %v2147_v26 = vunpack.i.l.bf16 %v2146_v9 }
 0x211   : > { %1962 = vmatmul.msk.f32.vlgmr.msra.gmra.mxu2 %vm678_vm14, %v1957_v8  ;;  %1967 = vmatmul.msk.f32.vlgmr.msrb.gmra.mxu3 %vm678_vm14, %v1957_v8  ;;  %v1589_v10 = vpop.permute.xlu0 %1588 }
 0x212   : > { %v1599_v12 = vsel %vm1594_vm5, %v1589_v10, %v1591_v61  ;;  %v1595_v42 = vsel %vm1594_vm5, %v2148_v25, %v2152_v23 }
 0x213   : > { %1989 = vmatpush.msk.msrb.mxu2 %vm691_vm13, %v1599_v12 }
 0x217   : > { %v1477_v15 = vpop.permute.xlu1 %1476 }
 0x218   : > { %1949 = vmatmul.msk.f32.gmra.mxu0 %vm678_vm14, %v1944_v13  ;;  %1954 = vmatmul.msk.f32.gmra.mxu1 %vm678_vm14, %v1944_v13 }
 0x219   : > { %1963 = vmatmul.msk.f32.gmra.mxu2 %vm678_vm14, %v1958_v14  ;;  %1968 = vmatmul.msk.f32.gmra.mxu3 %vm678_vm14, %v1958_v14  ;;  %v1475_v16 = vpop.permute.xlu0 %1474 }
 0x21a   : > { %v1483_v17 = vsel %vm1478_vm6, %v1473_v11, %v1475_v16  ;;  %v1484_v18 = vsel %vm1478_vm6, %v1475_v16, %v1477_v15 }
 0x21b   : > { %1975 = vmatpush.msk.msrb.mxu0 %vm691_vm13, %v1483_v17  ;;  %1980 = vmatpush.msk.msra.mxu1 %vm691_vm13, %v1484_v18 }
 0x220   : > { %1950 = vmatmul.msk.f32.gmra.mxu0 %vm678_vm14, %v1945_v20  ;;  %1955 = vmatmul.msk.f32.gmra.mxu1 %vm678_vm14, %v1945_v20  ;;  %v2166_v35 = vpop.permute.xlu1 %2165 }
 0x221   : > { %1964 = vmatmul.msk.f32.gmra.mxu2 %vm678_vm14, %v1959_v21  ;;  %1969 = vmatmul.msk.f32.gmra.mxu3 %vm678_vm14, %v1959_v21  ;;  %v2156_v24 = vpop.permute.xlu0 %2155  ;;  %v2168_v32 = vunpack.i.h.bf16 %v2166_v35  ;;  %v2167_v46 = vunpack.i.l.bf16 %v2166_v35 }
 0x222   : > { %v2158_v28 = vunpack.i.h.bf16 %v2156_v24  ;;  %v2157_v30 = vunpack.i.l.bf16 %v2156_v24 }
 0x223   : > { %v1479_v43 = vsel %vm1478_vm6, %v2168_v32, %v2172_v45 }
 0x224   : > { %v1597_v36 = vsel %vm1594_vm5, %v2157_v30, %v2158_v28  ;;  %v1598_v37 = vsel %vm1594_vm5, %v2158_v28, %v2147_v26 }
 0x225   : > { %1635 = vmatpush.msrb.mxu2 %v1597_v36  ;;  %1664 = vmatpush.msra.mxu3 %v1598_v37 }
 0x227   : > { %1636 = vmatpush.msrb.mxu2 %v1595_v42  ;;  %1665 = vmatpush.msra.mxu3 %v1596_v27 }
 0x228   : > { %1951 = vmatmul.msk.f32.gmra.mxu0 %vm678_vm14, %v1946_v40  ;;  %1956 = vmatmul.msk.f32.gmra.mxu1 %vm678_vm14, %v1946_v40 }
 0x229   : > { %1965 = vmatmul.msk.f32.gmra.mxu2 %vm678_vm14, %v1960_v29  ;;  %1970 = vmatmul.msk.f32.gmra.mxu3 %vm678_vm14, %v1960_v29  ;;  %v2161_v33 = vpop.permute.xlu0 %2160 }
 0x22a   : > { %v2163_v48 = vunpack.i.h.bf16 %v2161_v33  ;;  %v2162_v49 = vunpack.i.l.bf16 %v2161_v33 }
 0x22c   : > { %v1481_v50 = vsel %vm1478_vm6, %v2162_v49, %v2163_v48  ;;  %v1482_v34 = vsel %vm1478_vm6, %v2163_v48, %v2167_v46 }
 0x22d   : > { %1519 = vmatpush.msrb.mxu0 %v1481_v50  ;;  %1548 = vmatpush.msra.mxu1 %v1482_v34 }
 0x22f   : > { %1520 = vmatpush.msrb.mxu0 %v1479_v43  ;;  %1549 = vmatpush.msra.mxu1 %v1480_v52 }
 0x230   : > { %1976 = vmatmul.msk.f32.vlgmr.msrb.gmra.mxu0 %vm678_vm14, %v1971_v51  ;;  %1981 = vmatmul.msk.f32.vlgmr.msra.gmra.mxu1 %vm678_vm14, %v1971_v51 }
 0x231   : > { %1990 = vmatmul.msk.f32.vlgmr.msrb.gmra.mxu2 %vm678_vm14, %v1985_v53  ;;  %1995 = vmatmul.msk.f32.vlgmr.msra.gmra.mxu3 %vm678_vm14, %v1985_v53 }
 0x234   : > { %v713_v54 = vpop.f32.mrf.mxu2  ;;  %v742_v55 = vpop.f32.mrf.mxu3 }
 0x238   : > { %1977 = vmatmul.msk.f32.gmra.mxu0 %vm678_vm14, %v1972_v56  ;;  %1982 = vmatmul.msk.f32.gmra.mxu1 %vm678_vm14, %v1972_v56 }
 0x239   : > { %1991 = vmatmul.msk.f32.gmra.mxu2 %vm678_vm14, %v1986_v47  ;;  %1996 = vmatmul.msk.f32.gmra.mxu3 %vm678_vm14, %v1986_v47 }
 0x23c   : > { %v716_v57 = vpop.f32.mrf.mxu2  ;;  %v745_v58 = vpop.f32.mrf.mxu3 }
 0x240   : > { %1978 = vmatmul.msk.f32.gmra.mxu0 %vm678_vm14, %v1973_v59  ;;  %1983 = vmatmul.msk.f32.gmra.mxu1 %vm678_vm14, %v1973_v59 }
 0x241   : > { %1992 = vmatmul.msk.f32.gmra.mxu2 %vm678_vm14, %v1987_v60  ;;  %1997 = vmatmul.msk.f32.gmra.mxu3 %vm678_vm14, %v1987_v60 }
 0x244   : > { %v719_v61 = vpop.f32.mrf.mxu2  ;;  %v748_v62 = vpop.f32.mrf.mxu3 }
 0x248   : > { %1979 = vmatmul.msk.f32.gmra.mxu0 %vm678_vm14, %v1974_v63  ;;  %1984 = vmatmul.msk.f32.gmra.mxu1 %vm678_vm14, %v1974_v63 }
 0x249   : > { %1993 = vmatmul.msk.f32.gmra.mxu2 %vm678_vm14, %v1988_v38  ;;  %1998 = vmatmul.msk.f32.gmra.mxu3 %vm678_vm14, %v1988_v38 }
 0x24c   : > { %v722_v1 = vpop.f32.mrf.mxu2  ;;  %v751_v2 = vpop.f32.mrf.mxu3 }
 0x24d   : > { %v825_v3 = vpop.f32.mrf.mxu0  ;;  %v854_v4 = vpop.f32.mrf.mxu1 }
 0x24e   : > { %v826_v5 = vadd.f32 %v825_v3, %v713_v54  ;;  %v855_v31 = vadd.f32 %v854_v4, %v742_v55 }
 0x254   : > { %v942_v39 = vpop.f32.mrf.mxu2  ;;  %v971_v6 = vpop.f32.mrf.mxu3 }
 0x255   : > { %v983_v7 = vadd.f32 %v942_v39, %v826_v5  ;;  %v984_v8 = vadd.f32 %v971_v6, %v855_v31  ;;  %v828_v9 = vpop.f32.mrf.mxu0  ;;  %v857_v10 = vpop.f32.mrf.mxu1 }
 0x256   : > { %v829_v11 = vadd.f32 %v828_v9, %v716_v57  ;;  %v858_v12 = vadd.f32 %v857_v10, %v745_v58 }
 0x25c   : > { %v945_v13 = vpop.f32.mrf.mxu2  ;;  %v974_v14 = vpop.f32.mrf.mxu3 }
 0x25d   : > { %v985_v15 = vadd.f32 %v945_v13, %v829_v11  ;;  %v986_v16 = vadd.f32 %v974_v14, %v858_v12  ;;  %v831_v17 = vpop.f32.mrf.mxu0  ;;  %v860_v18 = vpop.f32.mrf.mxu1 }
 0x25e   : > { %v832_v19 = vadd.f32 %v831_v17, %v719_v61  ;;  %v861_v20 = vadd.f32 %v860_v18, %v748_v62 }
 0x264   : > { %v948_v21 = vpop.f32.mrf.mxu2  ;;  %v977_v22 = vpop.f32.mrf.mxu3 }
 0x265   : > { %v2712_v23 = vadd.f32 %v948_v21, %v832_v19  ;;  %v2714_v24 = vadd.f32 %v977_v22, %v861_v20  ;;  %v834_v25 = vpop.f32.mrf.mxu0  ;;  %v863_v26 = vpop.f32.mrf.mxu1 }
 0x266   : > { %v835_v28 = vadd.f32 %v834_v25, %v722_v1  ;;  %v864_v30 = vadd.f32 %v863_v26, %v751_v2 }
 0x26c   : > { %v951_v36 = vpop.f32.mrf.mxu2  ;;  %v980_v37 = vpop.f32.mrf.mxu3 }
 0x26d   : > { %v2716_v40 = vadd.f32 %v951_v36, %v835_v28  ;;  %v2718_v41 = vadd.f32 %v980_v37, %v864_v30  ;;  %v1058_v42 = vpop.f32.mrf.mxu0  ;;  %v1087_v27 = vpop.f32.mrf.mxu1 }
 0x26e   : > { %v1099_v1 = vadd.f32 %v1058_v42, %v983_v7  ;;  %v1100_v2 = vadd.f32 %v1087_v27, %v984_v8  ;;  %v1694_v28 = vpop.permute.xlu0 %1693 }
 0x274   : > { %v1174_v29 = vpop.f32.mrf.mxu2  ;;  %v1203_v35 = vpop.f32.mrf.mxu3 }
 0x275   : > { %v1061_v44 = vpop.f32.mrf.mxu0  ;;  %v1090_v45 = vpop.f32.mrf.mxu1  ;;  %v1215_v5 = vadd.f32 %v1174_v29, %v1099_v1  ;;  %v1216_v31 = vadd.f32 %v1203_v35, %v1100_v2 }
 0x276   : > { %v1101_v13 = vadd.f32 %v1061_v44, %v985_v15  ;;  %v1102_v14 = vadd.f32 %v1090_v45, %v986_v16 }
 0x27c   : > { %v1177_v33 = vpop.f32.mrf.mxu2  ;;  %v1206_v32 = vpop.f32.mrf.mxu3 }
 0x27d   : > { %v1064_v46 = vpop.f32.mrf.mxu0  ;;  %v1093_v48 = vpop.f32.mrf.mxu1  ;;  %v1217_v19 = vadd.f32 %v1177_v33, %v1101_v13  ;;  %v1218_v7 = vadd.f32 %v1206_v32, %v1102_v14 }
 0x27e   : > { %v1103_v35 = vadd.f32 %v1064_v46, %v2712_v23  ;;  %v1104_v44 = vadd.f32 %v1093_v48, %v2714_v24 }
 0x284   : > { %v2720_v49 = vpop.f32.mrf.mxu2  ;;  %v2722_v50 = vpop.f32.mrf.mxu3 }
 0x285   : > { %v2724_v34 = vpop.f32.mrf.mxu0  ;;  %v2726_v51 = vpop.f32.mrf.mxu1 }
 0x28c   : > { %v2728_v43 = vpop.f32.mrf.mxu2  ;;  %v2730_v52 = vpop.f32.mrf.mxu3 }
 0x28d   : > { %v1290_v53 = vpop.f32.mrf.mxu0  ;;  %v1319_v54 = vpop.f32.mrf.mxu1 }
 0x28e   : > { %v1331_v9 = vadd.f32 %v1290_v53, %v1215_v5  ;;  %v1332_v10 = vadd.f32 %v1319_v54, %v1216_v31  ;;  %v1219_v54 = vadd.f32 %v2720_v49, %v1103_v35 }
 0x294   : > { %v1406_v55 = vpop.f32.mrf.mxu2  ;;  %v1435_v56 = vpop.f32.mrf.mxu3 }
 0x295   : > { %v1293_v47 = vpop.f32.mrf.mxu0  ;;  %v1322_v57 = vpop.f32.mrf.mxu1  ;;  %v1447_v11 = vadd.f32 %v1406_v55, %v1331_v9  ;;  %v1448_v12 = vadd.f32 %v1435_v56, %v1332_v10  ;;  %v1220_v55 = vadd.f32 %v2722_v50, %v1104_v44 }
 0x296   : > { %v1333_v30 = vadd.f32 %v1293_v47, %v1217_v19  ;;  %v1334_v36 = vadd.f32 %v1322_v57, %v1218_v7  ;;  %v1699_v57 = vpop.permute.xlu1 %1698 }
 0x29c   : > { %v1409_v58 = vpop.f32.mrf.mxu2  ;;  %v1438_v59 = vpop.f32.mrf.mxu3 }
 0x29d   : > { %v1296_v60 = vpop.f32.mrf.mxu0  ;;  %v1325_v61 = vpop.f32.mrf.mxu1  ;;  %v1449_v27 = vadd.f32 %v1409_v58, %v1333_v30  ;;  %v1450_v29 = vadd.f32 %v1438_v59, %v1334_v36 }
 0x29e   : > { %v1335_v1 = vadd.f32 %v1296_v60, %v1219_v54  ;;  %v1336_v2 = vadd.f32 %v1325_v61, %v1220_v55 }
 0x2a4   : > { %v1412_v62 = vpop.f32.mrf.mxu2  ;;  %v1441_v63 = vpop.f32.mrf.mxu3 }
 0x2a5   : > { %v2732_v38 = vpop.f32.mrf.mxu0  ;;  %v2734_v0 = vpop.f32.mrf.mxu1  ;;  %v1451_v5 = vadd.f32 %v1412_v62, %v1335_v1  ;;  %v1452_v31 = vadd.f32 %v1441_v63, %v1336_v2 }
 0x2ac   : > { %v2736_v3 = vpop.f32.mrf.mxu2  ;;  %v2738_v4 = vpop.f32.mrf.mxu3 }
 0x2ad   : > { %v1522_v39 = vpop.f32.mrf.mxu0  ;;  %v1551_v6 = vpop.f32.mrf.mxu1 }
 0x2ae   : > { %v1563_v17 = vadd.f32 %v1522_v39, %v1447_v11  ;;  %v1564_v18 = vadd.f32 %v1551_v6, %v1448_v12  ;;  %v1105_v39 = vadd.f32 %v2724_v34, %v2716_v40  ;;  %v1106_v6 = vadd.f32 %v2726_v51, %v2718_v41  ;;  %v1704_v11 = vpop.permute.xlu2 %1703 }
 0x2b0   : > { %v1221_v12 = vadd.f32 %v2728_v43, %v1105_v39  ;;  %v1222_v62 = vadd.f32 %v2730_v52, %v1106_v6 }
 0x2b2   : > { %v1337_v40 = vadd.f32 %v2732_v38, %v1221_v12  ;;  %v1338_v41 = vadd.f32 %v2734_v0, %v1222_v62 }
 0x2b4   : > { %v1638_v8 = vpop.f32.mrf.mxu2  ;;  %v1667_v20 = vpop.f32.mrf.mxu3  ;;  %v1454_v43 = vadd.f32 %v2738_v4, %v1338_v41 }
 0x2b5   : > { %v1679_v21 = vadd.f32 %v1638_v8, %v1563_v17  ;;  %v1680_v22 = vadd.f32 %v1667_v20, %v1564_v18  ;;  %v1525_v25 = vpop.f32.mrf.mxu0  ;;  %v1554_v26 = vpop.f32.mrf.mxu1  ;;  %v1453_v18 = vadd.f32 %v2736_v3, %v1337_v40 }
 0x2b6   : > { %v1565_v32 = vadd.f32 %v1525_v25, %v1449_v27  ;;  %v1566_v53 = vadd.f32 %v1554_v26, %v1450_v29 }
 0x2b7   : > { %v1711_v37 = vadd.f32 %v1694_v28, %v1679_v21  ;;  %v1712_v42 = vadd.f32 %v1694_v28, %v1680_v22  ;;  %v1709_v28 = vpop.permute.xlu0 %1708 }
 0x2b9   : > { %vm1719_vm7 = vcmp.gt.f32.partialorder %v1711_v37, 0.0  ;;  %v1727_v15 = vmul.f32 0.2, %v1711_v37  ;;  %vm1720_vm8 = vcmp.gt.f32.partialorder %v1712_v42, 0.0  ;;  %v1728_v16 = vmul.f32 0.2, %v1712_v42 }
 0x2bb   : > { %v1735_v45 = vsel %vm1719_vm7, %v1711_v37, %v1727_v15  ;;  %v1736_v33 = vsel %vm1720_vm8, %v1712_v42, %v1728_v16 }
 0x2bc   : > { %1743 = vst [vmem:[%s2744_s11] sm:$0xff] %v1735_v45  ;;  %v1641_v56 = vpop.f32.mrf.mxu2  ;;  %v1670_v47 = vpop.f32.mrf.mxu3 }
 0x2bd   : > { %1744 = vst [vmem:[%s2744_s11 + $0x8] sm:$0xff] %v1736_v33  ;;  %v1681_v58 = vadd.f32 %v1641_v56, %v1565_v32  ;;  %v1682_v59 = vadd.f32 %v1670_v47, %v1566_v53  ;;  %v1528_v23 = vpop.f32.mrf.mxu0  ;;  %v1557_v46 = vpop.f32.mrf.mxu1 }
 0x2be   : > { %v1567_v9 = vadd.f32 %v1528_v23, %v1451_v5  ;;  %v1568_v10 = vadd.f32 %v1557_v46, %v1452_v31 }
 0x2bf   : > { %v1713_v24 = vadd.f32 %v1699_v57, %v1681_v58  ;;  %v1714_v48 = vadd.f32 %v1699_v57, %v1682_v59 }
 0x2c1   : > { %vm1721_vm9 = vcmp.gt.f32.partialorder %v1713_v24, 0.0  ;;  %v1729_v49 = vmul.f32 0.2, %v1713_v24  ;;  %vm1722_vm10 = vcmp.gt.f32.partialorder %v1714_v48, 0.0  ;;  %v1730_v50 = vmul.f32 0.2, %v1714_v48 }
 0x2c3   : > { %v1737_v60 = vsel %vm1721_vm9, %v1713_v24, %v1729_v49  ;;  %v1738_v61 = vsel %vm1722_vm10, %v1714_v48, %v1730_v50 }
 0x2c4   : > { %1745 = vst [vmem:[%s2744_s11 + $0x10] sm:$0xff] %v1737_v60  ;;  %v1644_v63 = vpop.f32.mrf.mxu2  ;;  %v1673_v13 = vpop.f32.mrf.mxu3 }
 0x2c5   : > { %1746 = vst [vmem:[%s2744_s11 + $0x18] sm:$0xff] %v1738_v61  ;;  %v1683_v14 = vadd.f32 %v1644_v63, %v1567_v9  ;;  %v1684_v17 = vadd.f32 %v1673_v13, %v1568_v10  ;;  %v1531_v19 = vpop.f32.mrf.mxu0  ;;  %v1560_v52 = vpop.f32.mrf.mxu1 }
 0x2c6   : > { %v1569_v22 = vadd.f32 %v1531_v19, %v1453_v18  ;;  %v1570_v38 = vadd.f32 %v1560_v52, %v1454_v43 }
 0x2c7   : > { %v1715_v34 = vadd.f32 %v1704_v11, %v1683_v14  ;;  %v1716_v51 = vadd.f32 %v1704_v11, %v1684_v17 }
 0x2c9   : > { %vm1723_vm11 = vcmp.gt.f32.partialorder %v1715_v34, 0.0  ;;  %vm1724_vm12 = vcmp.gt.f32.partialorder %v1716_v51, 0.0  ;;  %v1731_v7 = vmul.f32 0.2, %v1715_v34  ;;  %v1732_v8 = vmul.f32 0.2, %v1716_v51 }
 0x2cb   : > { %v1739_v20 = vsel %vm1723_vm11, %v1715_v34, %v1731_v7  ;;  %v1740_v21 = vsel %vm1724_vm12, %v1716_v51, %v1732_v8 }
 0x2cc   : > { %1747 = vst [vmem:[%s2744_s11 + $0x20] sm:$0xff] %v1739_v20  ;;  %v1647_v0 = vpop.f32.mrf.mxu2  ;;  %v1676_v25 = vpop.f32.mrf.mxu3 }
 0x2cd   : > { %1748 = vst [vmem:[%s2744_s11 + $0x28] sm:$0xff] %v1740_v21  ;;  %v1685_v26 = vadd.f32 %v1647_v0, %v1569_v22  ;;  %v1686_v3 = vadd.f32 %v1676_v25, %v1570_v38 }
 0x2cf   : > { %v1717_v4 = vadd.f32 %v1709_v28, %v1685_v26  ;;  %v1718_v30 = vadd.f32 %v1709_v28, %v1686_v3 }
 0x2d1   : > { %vm1725_vm13 = vcmp.gt.f32.partialorder %v1717_v4, 0.0  ;;  %v1733_v36 = vmul.f32 0.2, %v1717_v4  ;;  %vm1726_vm14 = vcmp.gt.f32.partialorder %v1718_v30, 0.0  ;;  %v1734_v37 = vmul.f32 0.2, %v1718_v30 }
 0x2d3   : > { %v1741_v42 = vsel %vm1725_vm13, %v1717_v4, %v1733_v36  ;;  %v1742_v27 = vsel %vm1726_vm14, %v1718_v30, %v1734_v37 }
 0x2d4   : > { %1749 = vst [vmem:[%s2744_s11 + $0x30] sm:$0xff] %v1741_v42 }
 0x2d5   : > { %1750 = vst [vmem:[%s2744_s11 + $0x38] sm:$0xff] %v1742_v27 }
 0x2d6 PF: > { %s18_s29 = sadd.s32 1, %s2197_s29   ;;  %s2786_s27 = smov %s2193_s28 }
 0x2d7   : > { %p15_p5 = scmp.ge.s32.totalorder %s18_s29, 4   ;;  %s2787_s28 = smov %s2789_s30 }
 0x2d9   :  { %17 = sbr.rel (!%p15_p5) target bundleno = 2 (0x2), region = 93 }

</bundles_post_ra>
